<compile_context>
chip_gen: v5e
topology: v5e:2x2
jax: 0.10.0
libtpu: 0.0.40
codegen_flags: <defaults>
</compile_context>

<pallas_src>
import jax
import jax.numpy as jnp
from jax import lax
from jax.experimental import pallas as pl
from jax.experimental.pallas import tpu as pltpu


def _round_up(x, m):
    return (x + m - 1) // m * m


def _gate_sigmoid(x):
    # Single EUP op (tanh); the mul/add land on the VALU which has slack on
    # the serial recurrence path.
    return 0.5 * jnp.tanh(0.5 * x) + 0.5


def _exact_sigmoid(x):
    # Exact sigmoid for the user-visible output (no approx-reciprocal wobble).
    return 1.0 / (1.0 + jnp.exp(-x))


# --------------------------------------------------------------------------
# TPU generation gating: VMEM limit + number of TensorCores per chip.
# --------------------------------------------------------------------------
def _tpu_generation():
    """Returns (num_tensorcores_per_chip, vmem_limit_bytes)."""
    vmem_cap = None
    try:
        vmem_cap = int(pltpu.get_tpu_info().vmem_capacity_bytes)
    except Exception:
        vmem_cap = None
    kind = ""
    try:
        kind = jax.devices()[0].device_kind.lower()
    except Exception:
        kind = ""
    is_v7 = ("v7" in kind) or (vmem_cap is not None and
                               vmem_cap <= 64 * 1024 * 1024)
    if is_v7:
        # 64 MiB physical per TensorCore: leave headroom for Mosaic internals.
        return 2, 48 * 1024 * 1024
    # v5e / v6e: 128 MiB physical, one TensorCore.
    return 1, 64 * 1024 * 1024


# --------------------------------------------------------------------------
# Padding helpers: per-gate padding so gate slices stay 128-lane aligned.
# --------------------------------------------------------------------------
def _pad_gate_mat(w, in_pad, H, H_pad):
    """(in, 4H) -> (in_pad, 4*H_pad), padding each gate block separately."""
    in_size = w.shape[0]
    w4 = w.reshape(in_size, 4, H)
    w4 = jnp.pad(w4, ((0, in_pad - in_size), (0, 0), (0, H_pad - H)))
    return w4.reshape(in_pad, 4 * H_pad)


def _pad_gate_bias(b, H, H_pad):
    """(1, 4H) -> (1, 4*H_pad), padding each gate block separately."""
    b4 = b.reshape(1, 4, H)
    b4 = jnp.pad(b4, ((0, 0), (0, 0), (0, H_pad - H)))
    return b4.reshape(1, 4 * H_pad)


def _invariant_spec(shape, index_map):
    """Grid-invariant operand: single-buffer it (constant index_map)."""
    try:
        return pl.BlockSpec(shape, index_map, pipeline_mode=pl.Buffered(1))
    except Exception:  # older jax without pipeline_mode: default buffering
        return pl.BlockSpec(shape, index_map)


def _layer_vmem_estimate(t_blk, b_blk, E, H):
    """Rough VMEM bytes needed by one recurrent-layer grid step."""
    G = 4 * H
    bf16, f32 = 2, 4
    x_blk = 2 * t_blk * b_blk * E * bf16        # double-buffered input block
    y_blk = 2 * t_blk * b_blk * H * bf16        # double-buffered output block
    gx_sc = t_blk * b_blk * G * f32             # projection scratch (single)
    weights = (E * G + H * G) * bf16 + G * f32  # single-buffered invariants
    state = 2 * b_blk * H * f32                 # h/c scratch
    small = 8 * b_blk * H * f32                 # h0/c0 + hN/cN blocks
    return x_blk + y_blk + gx_sc + weights + state + small


# --------------------------------------------------------------------------
# One LSTM layer, fused: per-time-block input projection (MXU, off the serial
# path) + serial recurrence with h/c carried in vregs.
# grid = (batch blocks "parallel", time blocks "arbitrary").
# --------------------------------------------------------------------------
def _make_lstm_layer_kernel(t_blk, T_actual, T_pad):
    mask_tail = (T_pad != T_actual)
    unroll = max(1, min(t_blk, 8))   # partial unroll; the h dependency is serial

    def kernel(x_ref, h0_ref, c0_ref, wih_ref, whh_ref, b_ref,
               y_ref, hN_ref, cN_ref, h_sc, c_sc, gx_sc):
        tb = pl.program_id(1)                    # time-block index (serial axis)
        _, b_blk, E = x_ref.shape
        H = h_sc.shape[-1]
        G = whh_ref.shape[-1]

        @pl.when(tb == 0)
        def _():
            h_sc[...] = h0_ref[...]
            c_sc[...] = c0_ref[...]

        # Hoisted input projection for the whole time block: one big MXU
        # matmul, result kept in VMEM scratch (never round-trips through HBM).
        x_flat = x_ref[...].reshape(t_blk * b_blk, E)
        gx = jnp.dot(x_flat, wih_ref[...],
                     preferred_element_type=jnp.float32) + b_ref[...]
        gx_sc[...] = gx.reshape(t_blk, b_blk, G)

        def step(i, carry):
            h, c = carry                         # f32, carried in vregs
            # Only the recurrent matmul sits on the serial path.
            # TODO(synk): for small H, hold W_hh resident in MXU staging via
            # pltpu.matmul_push_rhs/_acc_lhs instead of re-streaming it.
            gates = gx_sc[i] + jnp.dot(h.astype(jnp.bfloat16), whh_ref[...],
                                       preferred_element_type=jnp.float32)
            # 128-lane-aligned gate slices (H is padded to a multiple of 128).
            i_g = _gate_sigmoid(gates[:, 0 * H:1 * H])
            f_g = _gate_sigmoid(gates[:, 1 * H:2 * H])
            g_g = jnp.tanh(gates[:, 2 * H:3 * H])
            o_g = _gate_sigmoid(gates[:, 3 * H:4 * H])
            c_new = f_g * c + i_g * g_g
            h_new = o_g * jnp.tanh(c_new)
            if mask_tail:  # static: only when T was padded up to a t_blk multiple
                valid = (tb * t_blk + i) < T_actual
                h_new = jnp.where(valid, h_new, h)
                c_new = jnp.where(valid, c_new, c)
            y_ref[i] = h_new.astype(y_ref.dtype)
            return (h_new, c_new)

        h_fin, c_fin = lax.fori_loop(0, t_blk, step,
                                     (h_sc[...], c_sc[...]), unroll=unroll)
        # Cross-block state carry: one scratch write per block (not per step).
        h_sc[...] = h_fin
        c_sc[...] = c_fin

        # Final-state writes only once, on the last time block.
        @pl.when(tb == pl.num_programs(1) - 1)
        def _():
            hN_ref[...] = h_fin
            cN_ref[...] = c_fin

    return kernel


def lstm_layer(x, h0, c0, wih, whh, b, *, t_blk, b_blk, T_actual, vmem_limit):
    """x: (T_pad, B, E) bf16; h0/c0: (B, H) f32; wih: (E, 4H) bf16;
    whh: (H, 4H) bf16; b: (1, 4H) f32.
    Returns y (T_pad, B, H) bf16, h_n (B, H) f32, c_n (B, H) f32."""
    T_pad, B, E = x.shape
    H = h0.shape[-1]
    G = whh.shape[-1]
    nb, nt = B // b_blk, T_pad // t_blk

    kernel = _make_lstm_layer_kernel(t_blk, T_actual, T_pad)

    grid_spec = pltpu.PrefetchScalarGridSpec(
        num_scalar_prefetch=0,
        grid=(nb, nt),                        # batch "parallel", time "arbitrary"
        in_specs=[
            pl.BlockSpec((t_blk, b_blk, E), lambda bb, tb: (tb, bb, 0)),  # x
            pl.BlockSpec((b_blk, H), lambda bb, tb: (bb, 0)),             # h0
            pl.BlockSpec((b_blk, H), lambda bb, tb: (bb, 0)),             # c0
            _invariant_spec((E, G), lambda bb, tb: (0, 0)),               # W_ih^T
            _invariant_spec((H, G), lambda bb, tb: (0, 0)),               # W_hh^T
            _invariant_spec((1, G), lambda bb, tb: (0, 0)),               # bias
        ],
        out_specs=[
            pl.BlockSpec((t_blk, b_blk, H), lambda bb, tb: (tb, bb, 0)),  # y
            pl.BlockSpec((b_blk, H), lambda bb, tb: (bb, 0)),             # final h
            pl.BlockSpec((b_blk, H), lambda bb, tb: (bb, 0)),             # final c
        ],
        scratch_shapes=[pltpu.VMEM((b_blk, H), jnp.float32),              # h carry
                        pltpu.VMEM((b_blk, H), jnp.float32),              # c carry
                        pltpu.VMEM((t_blk, b_blk, G), jnp.float32)],      # gates_x
    )
    return pl.pallas_call(
        kernel,
        out_shape=(jax.ShapeDtypeStruct((T_pad, B, H), jnp.bfloat16),
                   jax.ShapeDtypeStruct((B, H), jnp.float32),
                   jax.ShapeDtypeStruct((B, H), jnp.float32)),
        grid_spec=grid_spec,
        compiler_params=pltpu.CompilerParams(
            dimension_semantics=("parallel", "arbitrary"),
            vmem_limit_bytes=vmem_limit),
    )(x, h0, c0, wih, whh, b)


# --------------------------------------------------------------------------
# FC + sigmoid on the LAST timestep's hidden state only, single weight column
# (lane-padded to 128), exact sigmoid, explicit VMEM placement.
# --------------------------------------------------------------------------
def _fc_sigmoid_kernel(h_ref, w_ref, b_ref, o_ref):
    y = jnp.dot(h_ref[...].astype(jnp.bfloat16), w_ref[...],
                preferred_element_type=jnp.float32) + b_ref[...]
    o_ref[...] = _exact_sigmoid(y)


def fc_sigmoid(h, w, b):
    """h: (B, H) f32, w: (H, O) bf16, b: (1, O) f32 -> (B, O) f32."""
    B = h.shape[0]
    O = w.shape[1]
    vmem = pl.BlockSpec(memory_space=pltpu.MemorySpace.VMEM)
    # TODO(synk): could be fused into the last layer's pl.when epilogue to
    # save this extra (tiny) pallas_call launch.
    return pl.pallas_call(
        _fc_sigmoid_kernel,
        out_shape=jax.ShapeDtypeStruct((B, O), jnp.float32),
        in_specs=[vmem, vmem, vmem],
        out_specs=vmem,
    )(h, w, b)


# --------------------------------------------------------------------------
# Full forward pass (embedding lookup, padding and reshapes are JAX glue).
# --------------------------------------------------------------------------
def lstm_forward(x_ids, hidden, params, *, t_block=64):
    h0_all, c0_all = hidden                   # each (n_layers, B, H)
    B, T = x_ids.shape
    H = params["hidden_size"]
    L = params["n_layers"]
    E = params["embedding"].shape[1]
    O = params["fc_w"].shape[1]

    num_tc, vmem_limit = _tpu_generation()

    # (8, 128) vreg-tile padding.
    H_pad = _round_up(H, 128)
    E_pad = _round_up(E, 128)
    B_pad = _round_up(B, 8)
    O_col = 128                               # single consumed FC column, lane-padded

    # Batch split only where a second TensorCore can absorb it (v7x); on
    # single-TC chips a split just doubles serial grid steps / underfills MXU.
    b_blk = B_pad // 2 if (num_tc >= 2 and B_pad % 16 == 0) else B_pad

    # Time block: start large, shrink until the VMEM estimate fits under the
    # per-generation budget. Awkward T is handled by padding up + masking.
    t_blk = max(1, min(t_block, T))
    in_pad_max = max(E_pad, H_pad)
    while (t_blk > 8 and
           _layer_vmem_estimate(t_blk, b_blk, in_pad_max, H_pad) > vmem_limit // 2):
        t_blk //= 2
    T_pad = pl.cdiv(T, t_blk) * t_blk

    # Embedding lookup stays in XLA, but gathers directly into time-major
    # (T, B, E): the transpose happens on the tiny int ids, not the activations.
    # TODO(synk): fuse the embedding row gather into the first layer via
    # scalar-prefetched ids + a pl.Element row BlockSpec (manual DMA gather).
    x = jnp.take(params["embedding"], x_ids.T, axis=0)        # (T, B, E)
    x = jnp.pad(x, ((0, T_pad - T), (0, B_pad - B), (0, E_pad - E)))
    x = x.astype(jnp.bfloat16)                                # bf16 matmul operand

    h0p = jnp.pad(h0_all, ((0, 0), (0, B_pad - B), (0, H_pad - H)))
    c0p = jnp.pad(c0_all, ((0, 0), (0, B_pad - B), (0, H_pad - H)))

    h_out, c_out = [], []
    hN = None
    for l in range(L):
        in_pad = E_pad if l == 0 else H_pad
        wih_p = _pad_gate_mat(params["wih"][l], in_pad, H, H_pad).astype(jnp.bfloat16)
        whh_p = _pad_gate_mat(params["whh"][l], H_pad, H, H_pad).astype(jnp.bfloat16)
        b_p = _pad_gate_bias(params["b"][l], H, H_pad)        # f32

        y, hN, cN = lstm_layer(x, h0p[l], c0p[l], wih_p, whh_p, b_p,
                               t_blk=t_blk, b_blk=b_blk, T_actual=T,
                               vmem_limit=vmem_limit)
        # TODO(synk): inter-layer LSTM dropout (p=0.5) skipped (eval semantics).
        x = y                                                 # bf16 (T_pad, B_pad, H_pad)
        h_out.append(hN)
        c_out.append(cN)

    # TODO(synk): nn.Dropout(0.3) skipped (eval semantics).
    # Only sigmoid_out.view(B, -1)[:, -1] is consumed == FC output feature O-1
    # at the last timestep -> FC with a single weight column on the final
    # hidden state only.
    fc_w = jnp.pad(params["fc_w"][:, O - 1:O],
                   ((0, H_pad - H), (0, O_col - 1))).astype(jnp.bfloat16)
    fc_b = jnp.pad(params["fc_b"][:, O - 1:O], ((0, 0), (0, O_col - 1)))
    sig = fc_sigmoid(hN, fc_w, fc_b)                          # (B_pad, 128)
    out = sig[:B, 0]                                          # (B,)

    h_n = jnp.stack(h_out)[:, :B, :H]
    c_n = jnp.stack(c_out)[:, :B, :H]
    return out, (h_n, c_n)


# --------------------------------------------------------------------------
# Deterministic parameter initialization (synthetic, not a checkpoint load).
# Weights stored pre-transposed: W_ih^T (in, 4H), W_hh^T (H, 4H), bias summed.
# --------------------------------------------------------------------------
def init_params(key, vocabulary_size, output_size, embedding_size,
                hidden_size, n_layers):
    keys = jax.random.split(key, 2 + 4 * n_layers + 2)
    k_it = iter(keys)
    scale = 1.0 / jnp.sqrt(hidden_size)

    params = {
        "n_layers": n_layers,
        "hidden_size": hidden_size,
        "embedding": jax.random.normal(
            next(k_it), (vocabulary_size, embedding_size), jnp.float32),
        "wih": [], "whh": [], "b": [],
    }
    for l in range(n_layers):
        in_size = embedding_size if l == 0 else hidden_size
        params["wih"].append(scale * jax.random.normal(
            next(k_it), (in_size, 4 * hidden_size), jnp.float32))
        params["whh"].append(scale * jax.random.normal(
            next(k_it), (hidden_size, 4 * hidden_size), jnp.float32))
        b_ih = scale * jax.random.normal(
            next(k_it), (1, 4 * hidden_size), jnp.float32)
        b_hh = scale * jax.random.normal(
            next(k_it), (1, 4 * hidden_size), jnp.float32)
        params["b"].append(b_ih + b_hh)
    params["fc_w"] = scale * jax.random.normal(
        next(k_it), (hidden_size, output_size), jnp.float32)
    params["fc_b"] = scale * jax.random.normal(
        next(k_it), (1, output_size), jnp.float32)
    return params


def init_hidden(n_layers, batch_size, hidden_size):
    z = jnp.zeros((n_layers, batch_size, hidden_size), jnp.float32)
    return (z, z)


if __name__ == "__main__":
    VOCAB = 50
    OUTPUT_SIZE = 1
    EMBEDDING_SIZE = 32
    HIDDEN_SIZE = 32
    N_LAYERS = 2
    BATCH = 2
    SEQ = 8

    key = jax.random.PRNGKey(0)
    k_params, k_ids = jax.random.split(key)

    params = init_params(k_params, VOCAB, OUTPUT_SIZE, EMBEDDING_SIZE,
                         HIDDEN_SIZE, N_LAYERS)
    x_ids = jax.random.randint(k_ids, (BATCH, SEQ), 0, VOCAB, dtype=jnp.int32)
    hidden = init_hidden(N_LAYERS, BATCH, HIDDEN_SIZE)

    sigmoid_out, (h_n, c_n) = lstm_forward(x_ids, hidden, params)
    jax.block_until_ready((sigmoid_out, h_n, c_n))

    assert sigmoid_out.shape == (BATCH,)
    assert h_n.shape == (N_LAYERS, BATCH, HIDDEN_SIZE)
    assert c_n.shape == (N_LAYERS, BATCH, HIDDEN_SIZE)
    assert bool(jnp.all(jnp.isfinite(sigmoid_out)))
    assert bool(jnp.all(jnp.isfinite(h_n))) and bool(jnp.all(jnp.isfinite(c_n)))
    print("KERNEL_OK")
</pallas_src>

<mosaic_0001>
module attributes {stable_mosaic.version = 11 : i64} {
  func.func @kernel(%arg0: i32, %arg1: i32, %arg2: memref<8x8x128xbf16, #tpu.memory_space<vmem>>, %arg3: memref<8x128xf32, #tpu.memory_space<vmem>>, %arg4: memref<8x128xf32, #tpu.memory_space<vmem>>, %arg5: memref<128x512xbf16, #tpu.memory_space<vmem>>, %arg6: memref<128x512xbf16, #tpu.memory_space<vmem>>, %arg7: memref<1x512xf32, #tpu.memory_space<vmem>>, %arg8: memref<8x8x128xbf16, #tpu.memory_space<vmem>>, %arg9: memref<8x128xf32, #tpu.memory_space<vmem>>, %arg10: memref<8x128xf32, #tpu.memory_space<vmem>>, %arg11: memref<8x128xf32, #tpu.memory_space<vmem>>, %arg12: memref<8x128xf32, #tpu.memory_space<vmem>>, %arg13: memref<8x8x512xf32, #tpu.memory_space<vmem>>) attributes {dimension_semantics = [#tpu.dimension_semantics<parallel>, #tpu.dimension_semantics<arbitrary>], iteration_bounds = array<i64: 1, 1>, scalar_prefetch = 0 : i64, scratch_operands = 3 : i64, tpu.core_type = #tpu.core_type<tc>, window_params = [{transform_indices = @transform_0, window_bounds = array<i64: 8, 8, 128>}, {transform_indices = @transform_1, window_bounds = array<i64: 8, 128>}, {transform_indices = @transform_2, window_bounds = array<i64: 8, 128>}, {pipeline_mode = #tpu.pipeline_mode<synchronous>, transform_indices = @transform_3, window_bounds = array<i64: 128, 512>}, {pipeline_mode = #tpu.pipeline_mode<synchronous>, transform_indices = @transform_4, window_bounds = array<i64: 128, 512>}, {pipeline_mode = #tpu.pipeline_mode<synchronous>, transform_indices = @transform_5, window_bounds = array<i64: 1, 512>}, {transform_indices = @transform_6, window_bounds = array<i64: 8, 8, 128>}, {transform_indices = @transform_7, window_bounds = array<i64: 8, 128>}, {transform_indices = @transform_8, window_bounds = array<i64: 8, 128>}]} {
    %c0_i32 = arith.constant 0 : i32
    %0 = arith.cmpi eq, %arg1, %c0_i32 : i32
    %1 = arith.extui %0 : i1 to i32
    %c0_i32_0 = arith.constant 0 : i32
    %2 = arith.cmpi ne, %1, %c0_i32_0 : i32
    scf.if %2 {
      %c0_149 = arith.constant 0 : index
      %c0_150 = arith.constant 0 : index
      %363 = vector.load %arg3[%c0_149, %c0_150] : memref<8x128xf32, #tpu.memory_space<vmem>>, vector<8x128xf32>
      %c0_151 = arith.constant 0 : index
      %c0_152 = arith.constant 0 : index
      %364 = vector.load %arg11[%c0_151, %c0_152] : memref<8x128xf32, #tpu.memory_space<vmem>>, vector<8x128xf32>
      tpu.vector_store %arg11[%c0_151, %c0_152], %363 {strides = array<i32>} : memref<8x128xf32, #tpu.memory_space<vmem>>, vector<8x128xf32>,
      %c0_153 = arith.constant 0 : index
      %c0_154 = arith.constant 0 : index
      %365 = vector.load %arg4[%c0_153, %c0_154] : memref<8x128xf32, #tpu.memory_space<vmem>>, vector<8x128xf32>
      %c0_155 = arith.constant 0 : index
      %c0_156 = arith.constant 0 : index
      %366 = vector.load %arg12[%c0_155, %c0_156] : memref<8x128xf32, #tpu.memory_space<vmem>>, vector<8x128xf32>
      tpu.vector_store %arg12[%c0_155, %c0_156], %365 {strides = array<i32>} : memref<8x128xf32, #tpu.memory_space<vmem>>, vector<8x128xf32>,
    } else {
    }
    %c0 = arith.constant 0 : index
    %c0_1 = arith.constant 0 : index
    %c0_2 = arith.constant 0 : index
    %3 = vector.load %arg2[%c0, %c0_1, %c0_2] : memref<8x8x128xbf16, #tpu.memory_space<vmem>>, vector<8x8x128xbf16>
    %4 = vector.shape_cast %3 : vector<8x8x128xbf16> to vector<64x128xbf16>
    %c0_3 = arith.constant 0 : index
    %c0_4 = arith.constant 0 : index
    %5 = vector.load %arg5[%c0_3, %c0_4] : memref<128x512xbf16, #tpu.memory_space<vmem>>, vector<128x512xbf16>
    %cst = arith.constant dense<0.000000e+00> : vector<64x512xf32>
    %6 = tpu.matmul %4, %5, %cst {dimension_numbers = #tpu.dot_dimension_numbers<[1], [0], [0], [1], [0, 0, 1, 1], [], []>} : vector<64x128xbf16>, vector<128x512xbf16>, vector<64x512xf32> -> vector<64x512xf32>
    %c0_5 = arith.constant 0 : index
    %c0_6 = arith.constant 0 : index
    %7 = vector.load %arg7[%c0_5, %c0_6] : memref<1x512xf32, #tpu.memory_space<vmem>>, vector<1x512xf32>
    %8 = vector.broadcast %7 : vector<1x512xf32> to vector<64x512xf32>
    %9 = arith.addf %6, %8 : vector<64x512xf32>
    %10 = vector.shape_cast %9 : vector<64x512xf32> to vector<8x8x512xf32>
    %c0_7 = arith.constant 0 : index
    %c0_8 = arith.constant 0 : index
    %c0_9 = arith.constant 0 : index
    %11 = vector.load %arg13[%c0_7, %c0_8, %c0_9] : memref<8x8x512xf32, #tpu.memory_space<vmem>>, vector<8x8x512xf32>
    tpu.vector_store %arg13[%c0_7, %c0_8, %c0_9], %10 {strides = array<i32>} : memref<8x8x512xf32, #tpu.memory_space<vmem>>, vector<8x8x512xf32>,
    %c0_10 = arith.constant 0 : index
    %c0_11 = arith.constant 0 : index
    %12 = vector.load %arg11[%c0_10, %c0_11] : memref<8x128xf32, #tpu.memory_space<vmem>>, vector<8x128xf32>
    %c0_12 = arith.constant 0 : index
    %c0_13 = arith.constant 0 : index
    %13 = vector.load %arg12[%c0_12, %c0_13] : memref<8x128xf32, #tpu.memory_space<vmem>>, vector<8x128xf32>
    %c0_i32_14 = arith.constant 0 : i32
    %14 = arith.index_cast %c0_i32_14 : i32 to index
    %c0_15 = arith.constant 0 : index
    %c0_16 = arith.constant 0 : index
    %15 = vector.load %arg13[%14, %c0_15, %c0_16] : memref<8x8x512xf32, #tpu.memory_space<vmem>>, vector<1x8x512xf32>
    %16 = vector.shape_cast %15 : vector<1x8x512xf32> to vector<8x512xf32>
    %17 = arith.truncf %12 : vector<8x128xf32> to vector<8x128xbf16>
    %c0_17 = arith.constant 0 : index
    %c0_18 = arith.constant 0 : index
    %18 = vector.load %arg6[%c0_17, %c0_18] : memref<128x512xbf16, #tpu.memory_space<vmem>>, vector<128x512xbf16>
    %cst_19 = arith.constant dense<0.000000e+00> : vector<8x512xf32>
    %19 = tpu.matmul %17, %18, %cst_19 {dimension_numbers = #tpu.dot_dimension_numbers<[1], [0], [0], [1], [0, 0, 1, 1], [], []>} : vector<8x128xbf16>, vector<128x512xbf16>, vector<8x512xf32> -> vector<8x512xf32>
    %20 = arith.addf %16, %19 : vector<8x512xf32>
    %21 = vector.extract_strided_slice %20 {offsets = [0, 0], sizes = [8, 128], strides = [1, 1]} : vector<8x512xf32> to vector<8x128xf32>
    %cst_20 = arith.constant 5.000000e-01 : f32
    %22 = vector.broadcast %cst_20 : f32 to vector<8x128xf32>
    %23 = arith.mulf %22, %21 : vector<8x128xf32>
    %24 = math.tanh %23 : vector<8x128xf32>
    %cst_21 = arith.constant 5.000000e-01 : f32
    %25 = vector.broadcast %cst_21 : f32 to vector<8x128xf32>
    %26 = arith.mulf %25, %24 : vector<8x128xf32>
    %cst_22 = arith.constant 5.000000e-01 : f32
    %27 = vector.broadcast %cst_22 : f32 to vector<8x128xf32>
    %28 = arith.addf %26, %27 : vector<8x128xf32>
    %29 = vector.extract_strided_slice %20 {offsets = [0, 128], sizes = [8, 128], strides = [1, 1]} : vector<8x512xf32> to vector<8x128xf32>
    %cst_23 = arith.constant 5.000000e-01 : f32
    %30 = vector.broadcast %cst_23 : f32 to vector<8x128xf32>
    %31 = arith.mulf %30, %29 : vector<8x128xf32>
    %32 = math.tanh %31 : vector<8x128xf32>
    %cst_24 = arith.constant 5.000000e-01 : f32
    %33 = vector.broadcast %cst_24 : f32 to vector<8x128xf32>
    %34 = arith.mulf %33, %32 : vector<8x128xf32>
    %cst_25 = arith.constant 5.000000e-01 : f32
    %35 = vector.broadcast %cst_25 : f32 to vector<8x128xf32>
    %36 = arith.addf %34, %35 : vector<8x128xf32>
    %37 = vector.extract_strided_slice %20 {offsets = [0, 256], sizes = [8, 128], strides = [1, 1]} : vector<8x512xf32> to vector<8x128xf32>
    %38 = math.tanh %37 : vector<8x128xf32>
    %39 = vector.extract_strided_slice %20 {offsets = [0, 384], sizes = [8, 128], strides = [1, 1]} : vector<8x512xf32> to vector<8x128xf32>
    %cst_26 = arith.constant 5.000000e-01 : f32
    %40 = vector.broadcast %cst_26 : f32 to vector<8x128xf32>
    %41 = arith.mulf %40, %39 : vector<8x128xf32>
    %42 = math.tanh %41 : vector<8x128xf32>
    %cst_27 = arith.constant 5.000000e-01 : f32
    %43 = vector.broadcast %cst_27 : f32 to vector<8x128xf32>
    %44 = arith.mulf %43, %42 : vector<8x128xf32>
    %cst_28 = arith.constant 5.000000e-01 : f32
    %45 = vector.broadcast %cst_28 : f32 to vector<8x128xf32>
    %46 = arith.addf %44, %45 : vector<8x128xf32>
    %47 = arith.mulf %36, %13 : vector<8x128xf32>
    %48 = arith.mulf %28, %38 : vector<8x128xf32>
    %49 = arith.addf %47, %48 : vector<8x128xf32>
    %50 = math.tanh %49 : vector<8x128xf32>
    %51 = arith.mulf %46, %50 : vector<8x128xf32>
    %52 = arith.truncf %51 : vector<8x128xf32> to vector<8x128xbf16>
    %53 = arith.index_cast %c0_i32_14 : i32 to index
    %c0_29 = arith.constant 0 : index
    %c0_30 = arith.constant 0 : index
    %54 = vector.load %arg8[%53, %c0_29, %c0_30] : memref<8x8x128xbf16, #tpu.memory_space<vmem>>, vector<1x8x128xbf16>
    %55 = vector.shape_cast %54 : vector<1x8x128xbf16> to vector<8x128xbf16>
    %56 = vector.shape_cast %52 : vector<8x128xbf16> to vector<1x8x128xbf16>
    tpu.vector_store %arg8[%53, %c0_29, %c0_30], %56 {strides = array<i32>} : memref<8x8x128xbf16, #tpu.memory_space<vmem>>, vector<1x8x128xbf16>,
    %c1_i32 = arith.constant 1 : i32
    %57 = arith.index_cast %c1_i32 : i32 to index
    %c0_31 = arith.constant 0 : index
    %c0_32 = arith.constant 0 : index
    %58 = vector.load %arg13[%57, %c0_31, %c0_32] : memref<8x8x512xf32, #tpu.memory_space<vmem>>, vector<1x8x512xf32>
    %59 = vector.shape_cast %58 : vector<1x8x512xf32> to vector<8x512xf32>
    %60 = arith.truncf %51 : vector<8x128xf32> to vector<8x128xbf16>
    %c0_33 = arith.constant 0 : index
    %c0_34 = arith.constant 0 : index
    %61 = vector.load %arg6[%c0_33, %c0_34] : memref<128x512xbf16, #tpu.memory_space<vmem>>, vector<128x512xbf16>
    %cst_35 = arith.constant dense<0.000000e+00> : vector<8x512xf32>
    %62 = tpu.matmul %60, %61, %cst_35 {dimension_numbers = #tpu.dot_dimension_numbers<[1], [0], [0], [1], [0, 0, 1, 1], [], []>} : vector<8x128xbf16>, vector<128x512xbf16>, vector<8x512xf32> -> vector<8x512xf32>
    %63 = arith.addf %59, %62 : vector<8x512xf32>
    %64 = vector.extract_strided_slice %63 {offsets = [0, 0], sizes = [8, 128], strides = [1, 1]} : vector<8x512xf32> to vector<8x128xf32>
    %cst_36 = arith.constant 5.000000e-01 : f32
    %65 = vector.broadcast %cst_36 : f32 to vector<8x128xf32>
    %66 = arith.mulf %65, %64 : vector<8x128xf32>
    %67 = math.tanh %66 : vector<8x128xf32>
    %cst_37 = arith.constant 5.000000e-01 : f32
    %68 = vector.broadcast %cst_37 : f32 to vector<8x128xf32>
    %69 = arith.mulf %68, %67 : vector<8x128xf32>
    %cst_38 = arith.constant 5.000000e-01 : f32
    %70 = vector.broadcast %cst_38 : f32 to vector<8x128xf32>
    %71 = arith.addf %69, %70 : vector<8x128xf32>
    %72 = vector.extract_strided_slice %63 {offsets = [0, 128], sizes = [8, 128], strides = [1, 1]} : vector<8x512xf32> to vector<8x128xf32>
    %cst_39 = arith.constant 5.000000e-01 : f32
    %73 = vector.broadcast %cst_39 : f32 to vector<8x128xf32>
    %74 = arith.mulf %73, %72 : vector<8x128xf32>
    %75 = math.tanh %74 : vector<8x128xf32>
    %cst_40 = arith.constant 5.000000e-01 : f32
    %76 = vector.broadcast %cst_40 : f32 to vector<8x128xf32>
    %77 = arith.mulf %76, %75 : vector<8x128xf32>
    %cst_41 = arith.constant 5.000000e-01 : f32
    %78 = vector.broadcast %cst_41 : f32 to vector<8x128xf32>
    %79 = arith.addf %77, %78 : vector<8x128xf32>
    %80 = vector.extract_strided_slice %63 {offsets = [0, 256], sizes = [8, 128], strides = [1, 1]} : vector<8x512xf32> to vector<8x128xf32>
    %81 = math.tanh %80 : vector<8x128xf32>
    %82 = vector.extract_strided_slice %63 {offsets = [0, 384], sizes = [8, 128], strides = [1, 1]} : vector<8x512xf32> to vector<8x128xf32>
    %cst_42 = arith.constant 5.000000e-01 : f32
    %83 = vector.broadcast %cst_42 : f32 to vector<8x128xf32>
    %84 = arith.mulf %83, %82 : vector<8x128xf32>
    %85 = math.tanh %84 : vector<8x128xf32>
    %cst_43 = arith.constant 5.000000e-01 : f32
    %86 = vector.broadcast %cst_43 : f32 to vector<8x128xf32>
    %87 = arith.mulf %86, %85 : vector<8x128xf32>
    %cst_44 = arith.constant 5.000000e-01 : f32
    %88 = vector.broadcast %cst_44 : f32 to vector<8x128xf32>
    %89 = arith.addf %87, %88 : vector<8x128xf32>
    %90 = arith.mulf %79, %49 : vector<8x128xf32>
    %91 = arith.mulf %71, %81 : vector<8x128xf32>
    %92 = arith.addf %90, %91 : vector<8x128xf32>
    %93 = math.tanh %92 : vector<8x128xf32>
    %94 = arith.mulf %89, %93 : vector<8x128xf32>
    %95 = arith.truncf %94 : vector<8x128xf32> to vector<8x128xbf16>
    %96 = arith.index_cast %c1_i32 : i32 to index
    %c0_45 = arith.constant 0 : index
    %c0_46 = arith.constant 0 : index
    %97 = vector.load %arg8[%96, %c0_45, %c0_46] : memref<8x8x128xbf16, #tpu.memory_space<vmem>>, vector<1x8x128xbf16>
    %98 = vector.shape_cast %97 : vector<1x8x128xbf16> to vector<8x128xbf16>
    %99 = vector.shape_cast %95 : vector<8x128xbf16> to vector<1x8x128xbf16>
    tpu.vector_store %arg8[%96, %c0_45, %c0_46], %99 {strides = array<i32>} : memref<8x8x128xbf16, #tpu.memory_space<vmem>>, vector<1x8x128xbf16>,
    %c2_i32 = arith.constant 2 : i32
    %100 = arith.index_cast %c2_i32 : i32 to index
    %c0_47 = arith.constant 0 : index
    %c0_48 = arith.constant 0 : index
    %101 = vector.load %arg13[%100, %c0_47, %c0_48] : memref<8x8x512xf32, #tpu.memory_space<vmem>>, vector<1x8x512xf32>
    %102 = vector.shape_cast %101 : vector<1x8x512xf32> to vector<8x512xf32>
    %103 = arith.truncf %94 : vector<8x128xf32> to vector<8x128xbf16>
    %c0_49 = arith.constant 0 : index
    %c0_50 = arith.constant 0 : index
    %104 = vector.load %arg6[%c0_49, %c0_50] : memref<128x512xbf16, #tpu.memory_space<vmem>>, vector<128x512xbf16>
    %cst_51 = arith.constant dense<0.000000e+00> : vector<8x512xf32>
    %105 = tpu.matmul %103, %104, %cst_51 {dimension_numbers = #tpu.dot_dimension_numbers<[1], [0], [0], [1], [0, 0, 1, 1], [], []>} : vector<8x128xbf16>, vector<128x512xbf16>, vector<8x512xf32> -> vector<8x512xf32>
    %106 = arith.addf %102, %105 : vector<8x512xf32>
    %107 = vector.extract_strided_slice %106 {offsets = [0, 0], sizes = [8, 128], strides = [1, 1]} : vector<8x512xf32> to vector<8x128xf32>
    %cst_52 = arith.constant 5.000000e-01 : f32
    %108 = vector.broadcast %cst_52 : f32 to vector<8x128xf32>
    %109 = arith.mulf %108, %107 : vector<8x128xf32>
    %110 = math.tanh %109 : vector<8x128xf32>
    %cst_53 = arith.constant 5.000000e-01 : f32
    %111 = vector.broadcast %cst_53 : f32 to vector<8x128xf32>
    %112 = arith.mulf %111, %110 : vector<8x128xf32>
    %cst_54 = arith.constant 5.000000e-01 : f32
    %113 = vector.broadcast %cst_54 : f32 to vector<8x128xf32>
    %114 = arith.addf %112, %113 : vector<8x128xf32>
    %115 = vector.extract_strided_slice %106 {offsets = [0, 128], sizes = [8, 128], strides = [1, 1]} : vector<8x512xf32> to vector<8x128xf32>
    %cst_55 = arith.constant 5.000000e-01 : f32
    %116 = vector.broadcast %cst_55 : f32 to vector<8x128xf32>
    %117 = arith.mulf %116, %115 : vector<8x128xf32>
    %118 = math.tanh %117 : vector<8x128xf32>
    %cst_56 = arith.constant 5.000000e-01 : f32
    %119 = vector.broadcast %cst_56 : f32 to vector<8x128xf32>
    %120 = arith.mulf %119, %118 : vector<8x128xf32>
    %cst_57 = arith.constant 5.000000e-01 : f32
    %121 = vector.broadcast %cst_57 : f32 to vector<8x128xf32>
    %122 = arith.addf %120, %121 : vector<8x128xf32>
    %123 = vector.extract_strided_slice %106 {offsets = [0, 256], sizes = [8, 128], strides = [1, 1]} : vector<8x512xf32> to vector<8x128xf32>
    %124 = math.tanh %123 : vector<8x128xf32>
    %125 = vector.extract_strided_slice %106 {offsets = [0, 384], sizes = [8, 128], strides = [1, 1]} : vector<8x512xf32> to vector<8x128xf32>
    %cst_58 = arith.constant 5.000000e-01 : f32
    %126 = vector.broadcast %cst_58 : f32 to vector<8x128xf32>
    %127 = arith.mulf %126, %125 : vector<8x128xf32>
    %128 = math.tanh %127 : vector<8x128xf32>
    %cst_59 = arith.constant 5.000000e-01 : f32
    %129 = vector.broadcast %cst_59 : f32 to vector<8x128xf32>
    %130 = arith.mulf %129, %128 : vector<8x128xf32>
    %cst_60 = arith.constant 5.000000e-01 : f32
    %131 = vector.broadcast %cst_60 : f32 to vector<8x128xf32>
    %132 = arith.addf %130, %131 : vector<8x128xf32>
    %133 = arith.mulf %122, %92 : vector<8x128xf32>
    %134 = arith.mulf %114, %124 : vector<8x128xf32>
    %135 = arith.addf %133, %134 : vector<8x128xf32>
    %136 = math.tanh %135 : vector<8x128xf32>
    %137 = arith.mulf %132, %136 : vector<8x128xf32>
    %138 = arith.truncf %137 : vector<8x128xf32> to vector<8x128xbf16>
    %139 = arith.index_cast %c2_i32 : i32 to index
    %c0_61 = arith.constant 0 : index
    %c0_62 = arith.constant 0 : index
    %140 = vector.load %arg8[%139, %c0_61, %c0_62] : memref<8x8x128xbf16, #tpu.memory_space<vmem>>, vector<1x8x128xbf16>
    %141 = vector.shape_cast %140 : vector<1x8x128xbf16> to vector<8x128xbf16>
    %142 = vector.shape_cast %138 : vector<8x128xbf16> to vector<1x8x128xbf16>
    tpu.vector_store %arg8[%139, %c0_61, %c0_62], %142 {strides = array<i32>} : memref<8x8x128xbf16, #tpu.memory_space<vmem>>, vector<1x8x128xbf16>,
    %c3_i32 = arith.constant 3 : i32
    %143 = arith.index_cast %c3_i32 : i32 to index
    %c0_63 = arith.constant 0 : index
    %c0_64 = arith.constant 0 : index
    %144 = vector.load %arg13[%143, %c0_63, %c0_64] : memref<8x8x512xf32, #tpu.memory_space<vmem>>, vector<1x8x512xf32>
    %145 = vector.shape_cast %144 : vector<1x8x512xf32> to vector<8x512xf32>
    %146 = arith.truncf %137 : vector<8x128xf32> to vector<8x128xbf16>
    %c0_65 = arith.constant 0 : index
    %c0_66 = arith.constant 0 : index
    %147 = vector.load %arg6[%c0_65, %c0_66] : memref<128x512xbf16, #tpu.memory_space<vmem>>, vector<128x512xbf16>
    %cst_67 = arith.constant dense<0.000000e+00> : vector<8x512xf32>
    %148 = tpu.matmul %146, %147, %cst_67 {dimension_numbers = #tpu.dot_dimension_numbers<[1], [0], [0], [1], [0, 0, 1, 1], [], []>} : vector<8x128xbf16>, vector<128x512xbf16>, vector<8x512xf32> -> vector<8x512xf32>
    %149 = arith.addf %145, %148 : vector<8x512xf32>
    %150 = vector.extract_strided_slice %149 {offsets = [0, 0], sizes = [8, 128], strides = [1, 1]} : vector<8x512xf32> to vector<8x128xf32>
    %cst_68 = arith.constant 5.000000e-01 : f32
    %151 = vector.broadcast %cst_68 : f32 to vector<8x128xf32>
    %152 = arith.mulf %151, %150 : vector<8x128xf32>
    %153 = math.tanh %152 : vector<8x128xf32>
    %cst_69 = arith.constant 5.000000e-01 : f32
    %154 = vector.broadcast %cst_69 : f32 to vector<8x128xf32>
    %155 = arith.mulf %154, %153 : vector<8x128xf32>
    %cst_70 = arith.constant 5.000000e-01 : f32
    %156 = vector.broadcast %cst_70 : f32 to vector<8x128xf32>
    %157 = arith.addf %155, %156 : vector<8x128xf32>
    %158 = vector.extract_strided_slice %149 {offsets = [0, 128], sizes = [8, 128], strides = [1, 1]} : vector<8x512xf32> to vector<8x128xf32>
    %cst_71 = arith.constant 5.000000e-01 : f32
    %159 = vector.broadcast %cst_71 : f32 to vector<8x128xf32>
    %160 = arith.mulf %159, %158 : vector<8x128xf32>
    %161 = math.tanh %160 : vector<8x128xf32>
    %cst_72 = arith.constant 5.000000e-01 : f32
    %162 = vector.broadcast %cst_72 : f32 to vector<8x128xf32>
    %163 = arith.mulf %162, %161 : vector<8x128xf32>
    %cst_73 = arith.constant 5.000000e-01 : f32
    %164 = vector.broadcast %cst_73 : f32 to vector<8x128xf32>
    %165 = arith.addf %163, %164 : vector<8x128xf32>
    %166 = vector.extract_strided_slice %149 {offsets = [0, 256], sizes = [8, 128], strides = [1, 1]} : vector<8x512xf32> to vector<8x128xf32>
    %167 = math.tanh %166 : vector<8x128xf32>
    %168 = vector.extract_strided_slice %149 {offsets = [0, 384], sizes = [8, 128], strides = [1, 1]} : vector<8x512xf32> to vector<8x128xf32>
    %cst_74 = arith.constant 5.000000e-01 : f32
    %169 = vector.broadcast %cst_74 : f32 to vector<8x128xf32>
    %170 = arith.mulf %169, %168 : vector<8x128xf32>
    %171 = math.tanh %170 : vector<8x128xf32>
    %cst_75 = arith.constant 5.000000e-01 : f32
    %172 = vector.broadcast %cst_75 : f32 to vector<8x128xf32>
    %173 = arith.mulf %172, %171 : vector<8x128xf32>
    %cst_76 = arith.constant 5.000000e-01 : f32
    %174 = vector.broadcast %cst_76 : f32 to vector<8x128xf32>
    %175 = arith.addf %173, %174 : vector<8x128xf32>
    %176 = arith.mulf %165, %135 : vector<8x128xf32>
    %177 = arith.mulf %157, %167 : vector<8x128xf32>
    %178 = arith.addf %176, %177 : vector<8x128xf32>
    %179 = math.tanh %178 : vector<8x128xf32>
    %180 = arith.mulf %175, %179 : vector<8x128xf32>
    %181 = arith.truncf %180 : vector<8x128xf32> to vector<8x128xbf16>
    %182 = arith.index_cast %c3_i32 : i32 to index
    %c0_77 = arith.constant 0 : index
    %c0_78 = arith.constant 0 : index
    %183 = vector.load %arg8[%182, %c0_77, %c0_78] : memref<8x8x128xbf16, #tpu.memory_space<vmem>>, vector<1x8x128xbf16>
    %184 = vector.shape_cast %183 : vector<1x8x128xbf16> to vector<8x128xbf16>
    %185 = vector.shape_cast %181 : vector<8x128xbf16> to vector<1x8x128xbf16>
    tpu.vector_store %arg8[%182, %c0_77, %c0_78], %185 {strides = array<i32>} : memref<8x8x128xbf16, #tpu.memory_space<vmem>>, vector<1x8x128xbf16>,
    %c4_i32 = arith.constant 4 : i32
    %186 = arith.index_cast %c4_i32 : i32 to index
    %c0_79 = arith.constant 0 : index
    %c0_80 = arith.constant 0 : index
    %187 = vector.load %arg13[%186, %c0_79, %c0_80] : memref<8x8x512xf32, #tpu.memory_space<vmem>>, vector<1x8x512xf32>
    %188 = vector.shape_cast %187 : vector<1x8x512xf32> to vector<8x512xf32>
    %189 = arith.truncf %180 : vector<8x128xf32> to vector<8x128xbf16>
    %c0_81 = arith.constant 0 : index
    %c0_82 = arith.constant 0 : index
    %190 = vector.load %arg6[%c0_81, %c0_82] : memref<128x512xbf16, #tpu.memory_space<vmem>>, vector<128x512xbf16>
    %cst_83 = arith.constant dense<0.000000e+00> : vector<8x512xf32>
    %191 = tpu.matmul %189, %190, %cst_83 {dimension_numbers = #tpu.dot_dimension_numbers<[1], [0], [0], [1], [0, 0, 1, 1], [], []>} : vector<8x128xbf16>, vector<128x512xbf16>, vector<8x512xf32> -> vector<8x512xf32>
    %192 = arith.addf %188, %191 : vector<8x512xf32>
    %193 = vector.extract_strided_slice %192 {offsets = [0, 0], sizes = [8, 128], strides = [1, 1]} : vector<8x512xf32> to vector<8x128xf32>
    %cst_84 = arith.constant 5.000000e-01 : f32
    %194 = vector.broadcast %cst_84 : f32 to vector<8x128xf32>
    %195 = arith.mulf %194, %193 : vector<8x128xf32>
    %196 = math.tanh %195 : vector<8x128xf32>
    %cst_85 = arith.constant 5.000000e-01 : f32
    %197 = vector.broadcast %cst_85 : f32 to vector<8x128xf32>
    %198 = arith.mulf %197, %196 : vector<8x128xf32>
    %cst_86 = arith.constant 5.000000e-01 : f32
    %199 = vector.broadcast %cst_86 : f32 to vector<8x128xf32>
    %200 = arith.addf %198, %199 : vector<8x128xf32>
    %201 = vector.extract_strided_slice %192 {offsets = [0, 128], sizes = [8, 128], strides = [1, 1]} : vector<8x512xf32> to vector<8x128xf32>
    %cst_87 = arith.constant 5.000000e-01 : f32
    %202 = vector.broadcast %cst_87 : f32 to vector<8x128xf32>
    %203 = arith.mulf %202, %201 : vector<8x128xf32>
    %204 = math.tanh %203 : vector<8x128xf32>
    %cst_88 = arith.constant 5.000000e-01 : f32
    %205 = vector.broadcast %cst_88 : f32 to vector<8x128xf32>
    %206 = arith.mulf %205, %204 : vector<8x128xf32>
    %cst_89 = arith.constant 5.000000e-01 : f32
    %207 = vector.broadcast %cst_89 : f32 to vector<8x128xf32>
    %208 = arith.addf %206, %207 : vector<8x128xf32>
    %209 = vector.extract_strided_slice %192 {offsets = [0, 256], sizes = [8, 128], strides = [1, 1]} : vector<8x512xf32> to vector<8x128xf32>
    %210 = math.tanh %209 : vector<8x128xf32>
    %211 = vector.extract_strided_slice %192 {offsets = [0, 384], sizes = [8, 128], strides = [1, 1]} : vector<8x512xf32> to vector<8x128xf32>
    %cst_90 = arith.constant 5.000000e-01 : f32
    %212 = vector.broadcast %cst_90 : f32 to vector<8x128xf32>
    %213 = arith.mulf %212, %211 : vector<8x128xf32>
    %214 = math.tanh %213 : vector<8x128xf32>
    %cst_91 = arith.constant 5.000000e-01 : f32
    %215 = vector.broadcast %cst_91 : f32 to vector<8x128xf32>
    %216 = arith.mulf %215, %214 : vector<8x128xf32>
    %cst_92 = arith.constant 5.000000e-01 : f32
    %217 = vector.broadcast %cst_92 : f32 to vector<8x128xf32>
    %218 = arith.addf %216, %217 : vector<8x128xf32>
    %219 = arith.mulf %208, %178 : vector<8x128xf32>
    %220 = arith.mulf %200, %210 : vector<8x128xf32>
    %221 = arith.addf %219, %220 : vector<8x128xf32>
    %222 = math.tanh %221 : vector<8x128xf32>
    %223 = arith.mulf %218, %222 : vector<8x128xf32>
    %224 = arith.truncf %223 : vector<8x128xf32> to vector<8x128xbf16>
    %225 = arith.index_cast %c4_i32 : i32 to index
    %c0_93 = arith.constant 0 : index
    %c0_94 = arith.constant 0 : index
    %226 = vector.load %arg8[%225, %c0_93, %c0_94] : memref<8x8x128xbf16, #tpu.memory_space<vmem>>, vector<1x8x128xbf16>
    %227 = vector.shape_cast %226 : vector<1x8x128xbf16> to vector<8x128xbf16>
    %228 = vector.shape_cast %224 : vector<8x128xbf16> to vector<1x8x128xbf16>
    tpu.vector_store %arg8[%225, %c0_93, %c0_94], %228 {strides = array<i32>} : memref<8x8x128xbf16, #tpu.memory_space<vmem>>, vector<1x8x128xbf16>,
    %c5_i32 = arith.constant 5 : i32
    %229 = arith.index_cast %c5_i32 : i32 to index
    %c0_95 = arith.constant 0 : index
    %c0_96 = arith.constant 0 : index
    %230 = vector.load %arg13[%229, %c0_95, %c0_96] : memref<8x8x512xf32, #tpu.memory_space<vmem>>, vector<1x8x512xf32>
    %231 = vector.shape_cast %230 : vector<1x8x512xf32> to vector<8x512xf32>
    %232 = arith.truncf %223 : vector<8x128xf32> to vector<8x128xbf16>
    %c0_97 = arith.constant 0 : index
    %c0_98 = arith.constant 0 : index
    %233 = vector.load %arg6[%c0_97, %c0_98] : memref<128x512xbf16, #tpu.memory_space<vmem>>, vector<128x512xbf16>
    %cst_99 = arith.constant dense<0.000000e+00> : vector<8x512xf32>
    %234 = tpu.matmul %232, %233, %cst_99 {dimension_numbers = #tpu.dot_dimension_numbers<[1], [0], [0], [1], [0, 0, 1, 1], [], []>} : vector<8x128xbf16>, vector<128x512xbf16>, vector<8x512xf32> -> vector<8x512xf32>
    %235 = arith.addf %231, %234 : vector<8x512xf32>
    %236 = vector.extract_strided_slice %235 {offsets = [0, 0], sizes = [8, 128], strides = [1, 1]} : vector<8x512xf32> to vector<8x128xf32>
    %cst_100 = arith.constant 5.000000e-01 : f32
    %237 = vector.broadcast %cst_100 : f32 to vector<8x128xf32>
    %238 = arith.mulf %237, %236 : vector<8x128xf32>
    %239 = math.tanh %238 : vector<8x128xf32>
    %cst_101 = arith.constant 5.000000e-01 : f32
    %240 = vector.broadcast %cst_101 : f32 to vector<8x128xf32>
    %241 = arith.mulf %240, %239 : vector<8x128xf32>
    %cst_102 = arith.constant 5.000000e-01 : f32
    %242 = vector.broadcast %cst_102 : f32 to vector<8x128xf32>
    %243 = arith.addf %241, %242 : vector<8x128xf32>
    %244 = vector.extract_strided_slice %235 {offsets = [0, 128], sizes = [8, 128], strides = [1, 1]} : vector<8x512xf32> to vector<8x128xf32>
    %cst_103 = arith.constant 5.000000e-01 : f32
    %245 = vector.broadcast %cst_103 : f32 to vector<8x128xf32>
    %246 = arith.mulf %245, %244 : vector<8x128xf32>
    %247 = math.tanh %246 : vector<8x128xf32>
    %cst_104 = arith.constant 5.000000e-01 : f32
    %248 = vector.broadcast %cst_104 : f32 to vector<8x128xf32>
    %249 = arith.mulf %248, %247 : vector<8x128xf32>
    %cst_105 = arith.constant 5.000000e-01 : f32
    %250 = vector.broadcast %cst_105 : f32 to vector<8x128xf32>
    %251 = arith.addf %249, %250 : vector<8x128xf32>
    %252 = vector.extract_strided_slice %235 {offsets = [0, 256], sizes = [8, 128], strides = [1, 1]} : vector<8x512xf32> to vector<8x128xf32>
    %253 = math.tanh %252 : vector<8x128xf32>
    %254 = vector.extract_strided_slice %235 {offsets = [0, 384], sizes = [8, 128], strides = [1, 1]} : vector<8x512xf32> to vector<8x128xf32>
    %cst_106 = arith.constant 5.000000e-01 : f32
    %255 = vector.broadcast %cst_106 : f32 to vector<8x128xf32>
    %256 = arith.mulf %255, %254 : vector<8x128xf32>
    %257 = math.tanh %256 : vector<8x128xf32>
    %cst_107 = arith.constant 5.000000e-01 : f32
    %258 = vector.broadcast %cst_107 : f32 to vector<8x128xf32>
    %259 = arith.mulf %258, %257 : vector<8x128xf32>
    %cst_108 = arith.constant 5.000000e-01 : f32
    %260 = vector.broadcast %cst_108 : f32 to vector<8x128xf32>
    %261 = arith.addf %259, %260 : vector<8x128xf32>
    %262 = arith.mulf %251, %221 : vector<8x128xf32>
    %263 = arith.mulf %243, %253 : vector<8x128xf32>
    %264 = arith.addf %262, %263 : vector<8x128xf32>
    %265 = math.tanh %264 : vector<8x128xf32>
    %266 = arith.mulf %261, %265 : vector<8x128xf32>
    %267 = arith.truncf %266 : vector<8x128xf32> to vector<8x128xbf16>
    %268 = arith.index_cast %c5_i32 : i32 to index
    %c0_109 = arith.constant 0 : index
    %c0_110 = arith.constant 0 : index
    %269 = vector.load %arg8[%268, %c0_109, %c0_110] : memref<8x8x128xbf16, #tpu.memory_space<vmem>>, vector<1x8x128xbf16>
    %270 = vector.shape_cast %269 : vector<1x8x128xbf16> to vector<8x128xbf16>
    %271 = vector.shape_cast %267 : vector<8x128xbf16> to vector<1x8x128xbf16>
    tpu.vector_store %arg8[%268, %c0_109, %c0_110], %271 {strides = array<i32>} : memref<8x8x128xbf16, #tpu.memory_space<vmem>>, vector<1x8x128xbf16>,
    %c6_i32 = arith.constant 6 : i32
    %272 = arith.index_cast %c6_i32 : i32 to index
    %c0_111 = arith.constant 0 : index
    %c0_112 = arith.constant 0 : index
    %273 = vector.load %arg13[%272, %c0_111, %c0_112] : memref<8x8x512xf32, #tpu.memory_space<vmem>>, vector<1x8x512xf32>
    %274 = vector.shape_cast %273 : vector<1x8x512xf32> to vector<8x512xf32>
    %275 = arith.truncf %266 : vector<8x128xf32> to vector<8x128xbf16>
    %c0_113 = arith.constant 0 : index
    %c0_114 = arith.constant 0 : index
    %276 = vector.load %arg6[%c0_113, %c0_114] : memref<128x512xbf16, #tpu.memory_space<vmem>>, vector<128x512xbf16>
    %cst_115 = arith.constant dense<0.000000e+00> : vector<8x512xf32>
    %277 = tpu.matmul %275, %276, %cst_115 {dimension_numbers = #tpu.dot_dimension_numbers<[1], [0], [0], [1], [0, 0, 1, 1], [], []>} : vector<8x128xbf16>, vector<128x512xbf16>, vector<8x512xf32> -> vector<8x512xf32>
    %278 = arith.addf %274, %277 : vector<8x512xf32>
    %279 = vector.extract_strided_slice %278 {offsets = [0, 0], sizes = [8, 128], strides = [1, 1]} : vector<8x512xf32> to vector<8x128xf32>
    %cst_116 = arith.constant 5.000000e-01 : f32
    %280 = vector.broadcast %cst_116 : f32 to vector<8x128xf32>
    %281 = arith.mulf %280, %279 : vector<8x128xf32>
    %282 = math.tanh %281 : vector<8x128xf32>
    %cst_117 = arith.constant 5.000000e-01 : f32
    %283 = vector.broadcast %cst_117 : f32 to vector<8x128xf32>
    %284 = arith.mulf %283, %282 : vector<8x128xf32>
    %cst_118 = arith.constant 5.000000e-01 : f32
    %285 = vector.broadcast %cst_118 : f32 to vector<8x128xf32>
    %286 = arith.addf %284, %285 : vector<8x128xf32>
    %287 = vector.extract_strided_slice %278 {offsets = [0, 128], sizes = [8, 128], strides = [1, 1]} : vector<8x512xf32> to vector<8x128xf32>
    %cst_119 = arith.constant 5.000000e-01 : f32
    %288 = vector.broadcast %cst_119 : f32 to vector<8x128xf32>
    %289 = arith.mulf %288, %287 : vector<8x128xf32>
    %290 = math.tanh %289 : vector<8x128xf32>
    %cst_120 = arith.constant 5.000000e-01 : f32
    %291 = vector.broadcast %cst_120 : f32 to vector<8x128xf32>
    %292 = arith.mulf %291, %290 : vector<8x128xf32>
    %cst_121 = arith.constant 5.000000e-01 : f32
    %293 = vector.broadcast %cst_121 : f32 to vector<8x128xf32>
    %294 = arith.addf %292, %293 : vector<8x128xf32>
    %295 = vector.extract_strided_slice %278 {offsets = [0, 256], sizes = [8, 128], strides = [1, 1]} : vector<8x512xf32> to vector<8x128xf32>
    %296 = math.tanh %295 : vector<8x128xf32>
    %297 = vector.extract_strided_slice %278 {offsets = [0, 384], sizes = [8, 128], strides = [1, 1]} : vector<8x512xf32> to vector<8x128xf32>
    %cst_122 = arith.constant 5.000000e-01 : f32
    %298 = vector.broadcast %cst_122 : f32 to vector<8x128xf32>
    %299 = arith.mulf %298, %297 : vector<8x128xf32>
    %300 = math.tanh %299 : vector<8x128xf32>
    %cst_123 = arith.constant 5.000000e-01 : f32
    %301 = vector.broadcast %cst_123 : f32 to vector<8x128xf32>
    %302 = arith.mulf %301, %300 : vector<8x128xf32>
    %cst_124 = arith.constant 5.000000e-01 : f32
    %303 = vector.broadcast %cst_124 : f32 to vector<8x128xf32>
    %304 = arith.addf %302, %303 : vector<8x128xf32>
    %305 = arith.mulf %294, %264 : vector<8x128xf32>
    %306 = arith.mulf %286, %296 : vector<8x128xf32>
    %307 = arith.addf %305, %306 : vector<8x128xf32>
    %308 = math.tanh %307 : vector<8x128xf32>
    %309 = arith.mulf %304, %308 : vector<8x128xf32>
    %310 = arith.truncf %309 : vector<8x128xf32> to vector<8x128xbf16>
    %311 = arith.index_cast %c6_i32 : i32 to index
    %c0_125 = arith.constant 0 : index
    %c0_126 = arith.constant 0 : index
    %312 = vector.load %arg8[%311, %c0_125, %c0_126] : memref<8x8x128xbf16, #tpu.memory_space<vmem>>, vector<1x8x128xbf16>
    %313 = vector.shape_cast %312 : vector<1x8x128xbf16> to vector<8x128xbf16>
    %314 = vector.shape_cast %310 : vector<8x128xbf16> to vector<1x8x128xbf16>
    tpu.vector_store %arg8[%311, %c0_125, %c0_126], %314 {strides = array<i32>} : memref<8x8x128xbf16, #tpu.memory_space<vmem>>, vector<1x8x128xbf16>,
    %c7_i32 = arith.constant 7 : i32
    %315 = arith.index_cast %c7_i32 : i32 to index
    %c0_127 = arith.constant 0 : index
    %c0_128 = arith.constant 0 : index
    %316 = vector.load %arg13[%315, %c0_127, %c0_128] : memref<8x8x512xf32, #tpu.memory_space<vmem>>, vector<1x8x512xf32>
    %317 = vector.shape_cast %316 : vector<1x8x512xf32> to vector<8x512xf32>
    %318 = arith.truncf %309 : vector<8x128xf32> to vector<8x128xbf16>
    %c0_129 = arith.constant 0 : index
    %c0_130 = arith.constant 0 : index
    %319 = vector.load %arg6[%c0_129, %c0_130] : memref<128x512xbf16, #tpu.memory_space<vmem>>, vector<128x512xbf16>
    %cst_131 = arith.constant dense<0.000000e+00> : vector<8x512xf32>
    %320 = tpu.matmul %318, %319, %cst_131 {dimension_numbers = #tpu.dot_dimension_numbers<[1], [0], [0], [1], [0, 0, 1, 1], [], []>} : vector<8x128xbf16>, vector<128x512xbf16>, vector<8x512xf32> -> vector<8x512xf32>
    %321 = arith.addf %317, %320 : vector<8x512xf32>
    %322 = vector.extract_strided_slice %321 {offsets = [0, 0], sizes = [8, 128], strides = [1, 1]} : vector<8x512xf32> to vector<8x128xf32>
    %cst_132 = arith.constant 5.000000e-01 : f32
    %323 = vector.broadcast %cst_132 : f32 to vector<8x128xf32>
    %324 = arith.mulf %323, %322 : vector<8x128xf32>
    %325 = math.tanh %324 : vector<8x128xf32>
    %cst_133 = arith.constant 5.000000e-01 : f32
    %326 = vector.broadcast %cst_133 : f32 to vector<8x128xf32>
    %327 = arith.mulf %326, %325 : vector<8x128xf32>
    %cst_134 = arith.constant 5.000000e-01 : f32
    %328 = vector.broadcast %cst_134 : f32 to vector<8x128xf32>
    %329 = arith.addf %327, %328 : vector<8x128xf32>
    %330 = vector.extract_strided_slice %321 {offsets = [0, 128], sizes = [8, 128], strides = [1, 1]} : vector<8x512xf32> to vector<8x128xf32>
    %cst_135 = arith.constant 5.000000e-01 : f32
    %331 = vector.broadcast %cst_135 : f32 to vector<8x128xf32>
    %332 = arith.mulf %331, %330 : vector<8x128xf32>
    %333 = math.tanh %332 : vector<8x128xf32>
    %cst_136 = arith.constant 5.000000e-01 : f32
    %334 = vector.broadcast %cst_136 : f32 to vector<8x128xf32>
    %335 = arith.mulf %334, %333 : vector<8x128xf32>
    %cst_137 = arith.constant 5.000000e-01 : f32
    %336 = vector.broadcast %cst_137 : f32 to vector<8x128xf32>
    %337 = arith.addf %335, %336 : vector<8x128xf32>
    %338 = vector.extract_strided_slice %321 {offsets = [0, 256], sizes = [8, 128], strides = [1, 1]} : vector<8x512xf32> to vector<8x128xf32>
    %339 = math.tanh %338 : vector<8x128xf32>
    %340 = vector.extract_strided_slice %321 {offsets = [0, 384], sizes = [8, 128], strides = [1, 1]} : vector<8x512xf32> to vector<8x128xf32>
    %cst_138 = arith.constant 5.000000e-01 : f32
    %341 = vector.broadcast %cst_138 : f32 to vector<8x128xf32>
    %342 = arith.mulf %341, %340 : vector<8x128xf32>
    %343 = math.tanh %342 : vector<8x128xf32>
    %cst_139 = arith.constant 5.000000e-01 : f32
    %344 = vector.broadcast %cst_139 : f32 to vector<8x128xf32>
    %345 = arith.mulf %344, %343 : vector<8x128xf32>
    %cst_140 = arith.constant 5.000000e-01 : f32
    %346 = vector.broadcast %cst_140 : f32 to vector<8x128xf32>
    %347 = arith.addf %345, %346 : vector<8x128xf32>
    %348 = arith.mulf %337, %307 : vector<8x128xf32>
    %349 = arith.mulf %329, %339 : vector<8x128xf32>
    %350 = arith.addf %348, %349 : vector<8x128xf32>
    %351 = math.tanh %350 : vector<8x128xf32>
    %352 = arith.mulf %347, %351 : vector<8x128xf32>
    %353 = arith.truncf %352 : vector<8x128xf32> to vector<8x128xbf16>
    %354 = arith.index_cast %c7_i32 : i32 to index
    %c0_141 = arith.constant 0 : index
    %c0_142 = arith.constant 0 : index
    %355 = vector.load %arg8[%354, %c0_141, %c0_142] : memref<8x8x128xbf16, #tpu.memory_space<vmem>>, vector<1x8x128xbf16>
    %356 = vector.shape_cast %355 : vector<1x8x128xbf16> to vector<8x128xbf16>
    %357 = vector.shape_cast %353 : vector<8x128xbf16> to vector<1x8x128xbf16>
    tpu.vector_store %arg8[%354, %c0_141, %c0_142], %357 {strides = array<i32>} : memref<8x8x128xbf16, #tpu.memory_space<vmem>>, vector<1x8x128xbf16>,
    %c8_i32 = arith.constant 8 : i32
    %c0_143 = arith.constant 0 : index
    %c0_144 = arith.constant 0 : index
    %358 = vector.load %arg11[%c0_143, %c0_144] : memref<8x128xf32, #tpu.memory_space<vmem>>, vector<8x128xf32>
    tpu.vector_store %arg11[%c0_143, %c0_144], %352 {strides = array<i32>} : memref<8x128xf32, #tpu.memory_space<vmem>>, vector<8x128xf32>,
    %c0_145 = arith.constant 0 : index
    %c0_146 = arith.constant 0 : index
    %359 = vector.load %arg12[%c0_145, %c0_146] : memref<8x128xf32, #tpu.memory_space<vmem>>, vector<8x128xf32>
    tpu.vector_store %arg12[%c0_145, %c0_146], %350 {strides = array<i32>} : memref<8x128xf32, #tpu.memory_space<vmem>>, vector<8x128xf32>,
    %c0_i32_147 = arith.constant 0 : i32
    %360 = arith.cmpi eq, %arg1, %c0_i32_147 : i32
    %361 = arith.extui %360 : i1 to i32
    %c0_i32_148 = arith.constant 0 : i32
    %362 = arith.cmpi ne, %361, %c0_i32_148 : i32
    scf.if %362 {
      %c0_149 = arith.constant 0 : index
      %c0_150 = arith.constant 0 : index
      %363 = vector.load %arg9[%c0_149, %c0_150] : memref<8x128xf32, #tpu.memory_space<vmem>>, vector<8x128xf32>
      tpu.vector_store %arg9[%c0_149, %c0_150], %352 {strides = array<i32>} : memref<8x128xf32, #tpu.memory_space<vmem>>, vector<8x128xf32>,
      %c0_151 = arith.constant 0 : index
      %c0_152 = arith.constant 0 : index
      %364 = vector.load %arg10[%c0_151, %c0_152] : memref<8x128xf32, #tpu.memory_space<vmem>>, vector<8x128xf32>
      tpu.vector_store %arg10[%c0_151, %c0_152], %350 {strides = array<i32>} : memref<8x128xf32, #tpu.memory_space<vmem>>, vector<8x128xf32>,
    } else {
    }
    return
  }
  func.func @transform_0(%arg0: i32, %arg1: i32) -> (i32, i32, i32) {
    %c0_i32 = arith.constant 0 : i32
    %c0_i32_0 = arith.constant 0 : i32
    return %arg1, %arg0, %c0_i32 : i32, i32, i32
  }
  func.func @transform_1(%arg0: i32, %arg1: i32) -> (i32, i32) {
    %c0_i32 = arith.constant 0 : i32
    %c0_i32_0 = arith.constant 0 : i32
    return %arg0, %c0_i32 : i32, i32
  }
  func.func @transform_2(%arg0: i32, %arg1: i32) -> (i32, i32) {
    %c0_i32 = arith.constant 0 : i32
    %c0_i32_0 = arith.constant 0 : i32
    return %arg0, %c0_i32 : i32, i32
  }
  func.func @transform_3(%arg0: i32, %arg1: i32) -> (i32, i32) {
    %c0_i32 = arith.constant 0 : i32
    %c0_i32_0 = arith.constant 0 : i32
    %c0_i32_1 = arith.constant 0 : i32
    return %c0_i32, %c0_i32_0 : i32, i32
  }
  func.func @transform_4(%arg0: i32, %arg1: i32) -> (i32, i32) {
    %c0_i32 = arith.constant 0 : i32
    %c0_i32_0 = arith.constant 0 : i32
    %c0_i32_1 = arith.constant 0 : i32
    return %c0_i32, %c0_i32_0 : i32, i32
  }
  func.func @transform_5(%arg0: i32, %arg1: i32) -> (i32, i32) {
    %c0_i32 = arith.constant 0 : i32
    %c0_i32_0 = arith.constant 0 : i32
    %c0_i32_1 = arith.constant 0 : i32
    return %c0_i32, %c0_i32_0 : i32, i32
  }
  func.func @transform_6(%arg0: i32, %arg1: i32) -> (i32, i32, i32) {
    %c0_i32 = arith.constant 0 : i32
    %c0_i32_0 = arith.constant 0 : i32
    return %arg1, %arg0, %c0_i32 : i32, i32, i32
  }
  func.func @transform_7(%arg0: i32, %arg1: i32) -> (i32, i32) {
    %c0_i32 = arith.constant 0 : i32
    %c0_i32_0 = arith.constant 0 : i32
    return %arg0, %c0_i32 : i32, i32
  }
  func.func @transform_8(%arg0: i32, %arg1: i32) -> (i32, i32) {
    %c0_i32 = arith.constant 0 : i32
    %c0_i32_0 = arith.constant 0 : i32
    return %arg0, %c0_i32 : i32, i32
  }
}

</mosaic_0001>

<bundles_post_ra>
// kernel: tpu_custom_call.1
= control target key start
LH: loop header
LB: loop body
LE: loop exit
PB: predicated region body
PF: predicated region fallthrough
CT: control target
= control target key end

     0   :  { %14 = vsyncpa [#allocation6], 0  ;;  %s4748_s0 = inlined_call_operand.hbm [shape: bf16[8,8,128], index: 0, kind: input, shape index: {}]   ;;  %s4749_s1 = inlined_call_operand.hbm [shape: f32[8,128], index: 1, kind: input, shape index: {}]   ;;  %s4750_s2 = inlined_call_operand.hbm [shape: f32[8,128], index: 2, kind: input, shape index: {}]   ;;  %s4751_s3 = inlined_call_operand.hbm [shape: bf16[128,512], index: 3, kind: input, shape index: {}]   ;;  %s4752_s4 = inlined_call_operand.hbm [shape: bf16[128,512], index: 4, kind: input, shape index: {}]   ;;  %s4753_s5 = inlined_call_operand.vmem [shape: f32[1,512], index: 5, kind: input, shape index: {}]   ;;  %s4754_s6 = inlined_call_operand.hbm [shape: bf16[8,8,128], index: 6, kind: output, shape index: {0}]   ;;  %s4755_s7 = inlined_call_operand.hbm [shape: f32[8,128], index: 7, kind: output, shape index: {1}]   ;;  %s4756_s8 = inlined_call_operand.hbm [shape: f32[8,128], index: 8, kind: output, shape index: {2}]  }
   0x1   :  { %15 = vsyncpa [#allocation9], 0 }
   0x2   :  { %16 = vsyncpa [#allocation12], 0 }
   0x3   :  { %17 = vsyncpa [#allocation7], 0  ;;  %s37_s29 = sshll.u32 %s4749_s1, 4  ;;  %s38_s29 = int_to_ptr.hbm [resolvable:$true] %s37_s29 }
   0x4   :  { %18 = vsyncpa [#allocation16], 0  ;;  %s4498_s30 = smov [#allocation8]   ;;  %s58_s12 = sshll.u32 %s4751_s3, 4  ;;  %s59_s12 = int_to_ptr.hbm [resolvable:$true] %s58_s12 }
   0x5   :  { %s39_s9 = sshll.u32 %s4498_s30, 4  ;;  %s4499_s13 = smov [#allocation11]   ;;  %s40_s9 = int_to_ptr.vmem [resolvable:$true] %s39_s9 }
   0x6   :  { %42 = dma.hbm_to_vmem [thread:$0]  %s38_s29, 128, %s40_s9, [#allocation9]  }
   0x7   :  { %s60_s14 = sshll.u32 %s4499_s13, 4  ;;  %s4500_s15 = smov 256   ;;  %s61_s14 = int_to_ptr.vmem [resolvable:$true] %s60_s14 }
   0x8   :  { %s4501_s16 = smov 16   ;;  %s23_s1 = sshll.u32 %s4748_s0, 4  ;;  %s24_s1 = int_to_ptr.hbm [resolvable:$true] %s23_s1 }
   0x9   :  { %66 = dma.hbm_to_vmem [thread:$0]  %s59_s12, 4096, %s61_s14, [#allocation12], %s4500_s15, %s4500_s15, %s4501_s16  }
   0xa   :  { %s4502_s19 = smov [#allocation5]   ;;  %s48_s3 = sshll.u32 %s4750_s2, 4  ;;  %s49_s3 = int_to_ptr.hbm [resolvable:$true] %s48_s3 }
   0xb   :  { %s25_s20 = sshll.u32 %s4502_s19, 4  ;;  %s4503_s23 = smov 64   ;;  %s26_s20 = int_to_ptr.vmem [resolvable:$true] %s25_s20 }
   0xc   :  { %s4504_s24 = smov 4   ;;  %s4505_s25 = smov [#allocation10]  }
   0xd   :  { %31 = dma.hbm_to_vmem [thread:$0]  %s24_s1, 512, %s26_s20, [#allocation6], %s4503_s23, %s4503_s23, %s4504_s24  }
   0xe   :  { %s50_s26 = sshll.u32 %s4505_s25, 4  ;;  %s71_s0 = sshll.u32 %s4752_s4, 4  ;;  %s51_s26 = int_to_ptr.vmem [resolvable:$true] %s50_s26  ;;  %s72_s0 = int_to_ptr.hbm [resolvable:$true] %s71_s0 }
   0xf   :  { %53 = dma.hbm_to_vmem [thread:$0]  %s49_s3, 128, %s51_s26, [#allocation9]  }
  0x10   :  { %s4506_s29 = smov [#allocation13]  }
  0x11   :  { %s73_s30 = sshll.u32 %s4506_s29, 4  ;;  %s74_s30 = int_to_ptr.vmem [resolvable:$true] %s73_s30 }
  0x12   :  { %79 = dma.hbm_to_vmem [thread:$0]  %s72_s0, 4096, %s74_s30, [#allocation12], %s4500_s15, %s4500_s15, %s4501_s16  }
  0x13   :  { %4488 = dma.done.wait [#allocation6], 512  }
  0x14   :  { %4489 = vsyncadd [#allocation6], 4294966784 }
  0x15   :  { %4490 = dma.done.wait [#allocation9], 256  }
  0x16   :  { %4491 = vsyncadd [#allocation9], 4294967040 }
  0x17   :  { %4492 = dma.done.wait [#allocation12], 8192  }
  0x18   :  { %4493 = vsyncadd [#allocation12], 4294959104  ;;  %v2874_v0 = vld [vmem:[#allocation11 + $0xe0] sm:$0xf]  ;;  %v3946_v1 = vld [vmem:[#allocation11 + $0xec] sm:$0xf0] }
  0x19   :  { %v3944_v2 = vld [vmem:[#allocation11 + $0xe4] sm:$0xf]  ;;  %v2875_v3 = vor.u32 %v3946_v1, %v2874_v0  ;;  %v2876_v4 = vld [vmem:[#allocation11 + $0xf0] sm:$0xf0]  ;;  %v2882_v5 = vld [vmem:[#allocation11 + $0xe8] sm:$0xf] }
  0x1a   :  { %v3947_v6 = vld [vmem:[#allocation11 + $0xf4] sm:$0xf0]  ;;  %v2879_v7 = vor.u32 %v3944_v2, %v2876_v4  ;;  %v3945_v9 = vld [vmem:[#allocation11 + $0xec] sm:$0xf]  ;;  %v2884_v10 = vld [vmem:[#allocation11 + $0xf8] sm:$0xf0] }
  0x1b   :  { %v2883_v8 = vor.u32 %v3947_v6, %v2882_v5  ;;  %v2858_v11 = vld [vmem:[#allocation11 + $0xc0] sm:$0xf]  ;;  %344 = vmatpush.bf16.msra.mxu0 %v2875_v3  ;;  %v2887_v12 = vor.u32 %v3945_v9, %v2884_v10  ;;  %v3942_v13 = vld [vmem:[#allocation11 + $0xcc] sm:$0xf0]  ;;  %v3940_v14 = vld [vmem:[#allocation11 + $0xc4] sm:$0xf] }
  0x1c   :  { %v2860_v15 = vld [vmem:[#allocation11 + $0xd0] sm:$0xf0]  ;;  %373 = vmatpush.bf16.msra.mxu1 %v2879_v7  ;;  %v2859_v16 = vor.u32 %v3942_v13, %v2858_v11  ;;  %v2866_v18 = vld [vmem:[#allocation11 + $0xc8] sm:$0xf]  ;;  %v3943_v19 = vld [vmem:[#allocation11 + $0xd4] sm:$0xf0] }
  0x1d   :  { %402 = vmatpush.bf16.msra.mxu2 %v2883_v8  ;;  %v2863_v17 = vor.u32 %v3940_v14, %v2860_v15  ;;  %v3941_v20 = vld [vmem:[#allocation11 + $0xcc] sm:$0xf]  ;;  %431 = vmatpush.bf16.msra.mxu3 %v2887_v12  ;;  %v2867_v21 = vor.u32 %v3943_v19, %v2866_v18  ;;  %v2868_v22 = vld [vmem:[#allocation11 + $0xd8] sm:$0xf0]  ;;  %v2842_v23 = vld [vmem:[#allocation11 + $0xa0] sm:$0xf] }
  0x1e   :  { %v3938_v24 = vld [vmem:[#allocation11 + $0xac] sm:$0xf0]  ;;  %v2871_v25 = vor.u32 %v3941_v20, %v2868_v22  ;;  %v3936_v26 = vld [vmem:[#allocation11 + $0xa4] sm:$0xf]  ;;  %v2844_v27 = vld [vmem:[#allocation11 + $0xb0] sm:$0xf0] }
  0x1f   :  { %v2850_v28 = vld [vmem:[#allocation11 + $0xa8] sm:$0xf]  ;;  %345 = vmatpush.bf16.msra.mxu0 %v2859_v16  ;;  %v2843_v29 = vor.u32 %v3938_v24, %v2842_v23  ;;  %v3939_v30 = vld [vmem:[#allocation11 + $0xb4] sm:$0xf0]  ;;  %v3937_v31 = vld [vmem:[#allocation11 + $0xac] sm:$0xf]  ;;  %v2847_v33 = vor.u32 %v3936_v26, %v2844_v27 }
  0x20   :  { %v2852_v32 = vld [vmem:[#allocation11 + $0xb8] sm:$0xf0]  ;;  %374 = vmatpush.bf16.msra.mxu1 %v2863_v17  ;;  %v2851_v34 = vor.u32 %v3939_v30, %v2850_v28  ;;  %v2826_v35 = vld [vmem:[#allocation11 + $0x80] sm:$0xf]  ;;  %v3934_v36 = vld [vmem:[#allocation11 + $0x8c] sm:$0xf0] }
  0x21   :  { %403 = vmatpush.bf16.msra.mxu2 %v2867_v21  ;;  %v3932_v37 = vld [vmem:[#allocation11 + $0x84] sm:$0xf]  ;;  %432 = vmatpush.bf16.msra.mxu3 %v2871_v25  ;;  %v2855_v38 = vor.u32 %v3937_v31, %v2852_v32  ;;  %v2828_v39 = vld [vmem:[#allocation11 + $0x90] sm:$0xf0]  ;;  %v2834_v40 = vld [vmem:[#allocation11 + $0x88] sm:$0xf]  ;;  %v2827_v44 = vor.u32 %v3934_v36, %v2826_v35 }
  0x22   :  { %v3935_v41 = vld [vmem:[#allocation11 + $0x94] sm:$0xf0]  ;;  %v3933_v42 = vld [vmem:[#allocation11 + $0x8c] sm:$0xf]  ;;  %v2836_v43 = vld [vmem:[#allocation11 + $0x98] sm:$0xf0]  ;;  %v2831_v45 = vor.u32 %v3932_v37, %v2828_v39 }
  0x23   :  { %346 = vmatpush.bf16.msra.mxu0 %v2843_v29  ;;  %v2835_v46 = vor.u32 %v3935_v41, %v2834_v40  ;;  %v2810_v47 = vld [vmem:[#allocation11 + $0x60] sm:$0xf]  ;;  %v3930_v48 = vld [vmem:[#allocation11 + $0x6c] sm:$0xf0]  ;;  %v3928_v49 = vld [vmem:[#allocation11 + $0x64] sm:$0xf]  ;;  %v2839_v50 = vor.u32 %v3933_v42, %v2836_v43 }
  0x24   :  { %375 = vmatpush.bf16.msra.mxu1 %v2847_v33  ;;  %v2812_v51 = vld [vmem:[#allocation11 + $0x70] sm:$0xf0]  ;;  %v2818_v52 = vld [vmem:[#allocation11 + $0x68] sm:$0xf]  ;;  %v3931_v53 = vld [vmem:[#allocation11 + $0x74] sm:$0xf0]  ;;  %v2811_v56 = vor.u32 %v3930_v48, %v2810_v47 }
  0x25   :  { %404 = vmatpush.bf16.msra.mxu2 %v2851_v34  ;;  %433 = vmatpush.bf16.msra.mxu3 %v2855_v38  ;;  %v3929_v54 = vld [vmem:[#allocation11 + $0x6c] sm:$0xf]  ;;  %v2820_v55 = vld [vmem:[#allocation11 + $0x78] sm:$0xf0]  ;;  %v2815_v57 = vor.u32 %v3928_v49, %v2812_v51  ;;  %v2819_v58 = vor.u32 %v3931_v53, %v2818_v52  ;;  %v2794_v59 = vld [vmem:[#allocation11 + $0x40] sm:$0xf] }
  0x26   :  { %v3926_v60 = vld [vmem:[#allocation11 + $0x4c] sm:$0xf0]  ;;  %v3924_v61 = vld [vmem:[#allocation11 + $0x44] sm:$0xf]  ;;  %v2823_v62 = vor.u32 %v3929_v54, %v2820_v55  ;;  %v2796_v63 = vld [vmem:[#allocation11 + $0x50] sm:$0xf0] }
  0x27   :  { %347 = vmatpush.bf16.msra.mxu0 %v2827_v44  ;;  %v2802_v0 = vld [vmem:[#allocation11 + $0x48] sm:$0xf]  ;;  %v3927_v1 = vld [vmem:[#allocation11 + $0x54] sm:$0xf0]  ;;  %v3925_v2 = vld [vmem:[#allocation11 + $0x4c] sm:$0xf]  ;;  %v2795_v4 = vor.u32 %v3926_v60, %v2794_v59  ;;  %v2799_v5 = vor.u32 %v3924_v61, %v2796_v63 }
  0x28   :  { %376 = vmatpush.bf16.msra.mxu1 %v2831_v45  ;;  %v2804_v3 = vld [vmem:[#allocation11 + $0x58] sm:$0xf0]  ;;  %v2803_v6 = vor.u32 %v3927_v1, %v2802_v0  ;;  %v2778_v7 = vld [vmem:[#allocation11 + $0x20] sm:$0xf]  ;;  %v3922_v8 = vld [vmem:[#allocation11 + $0x2c] sm:$0xf0] }
  0x29   :  { %405 = vmatpush.bf16.msra.mxu2 %v2835_v46  ;;  %434 = vmatpush.bf16.msra.mxu3 %v2839_v50  ;;  %v3920_v9 = vld [vmem:[#allocation11 + $0x24] sm:$0xf]  ;;  %v2807_v10 = vor.u32 %v3925_v2, %v2804_v3  ;;  %v2780_v11 = vld [vmem:[#allocation11 + $0x30] sm:$0xf0]  ;;  %v2786_v12 = vld [vmem:[#allocation11 + $0x28] sm:$0xf]  ;;  %v2779_v16 = vor.u32 %v3922_v8, %v2778_v7 }
  0x2a   :  { %v3923_v13 = vld [vmem:[#allocation11 + $0x34] sm:$0xf0]  ;;  %v3921_v14 = vld [vmem:[#allocation11 + $0x2c] sm:$0xf]  ;;  %v2788_v15 = vld [vmem:[#allocation11 + $0x38] sm:$0xf0]  ;;  %v2783_v18 = vor.u32 %v3920_v9, %v2780_v11 }
  0x2b   :  { %348 = vmatpush.bf16.msra.mxu0 %v2811_v56  ;;  %v2762_v17 = vld [vmem:[#allocation11] sm:$0xf]  ;;  %v2787_v19 = vor.u32 %v3923_v13, %v2786_v12  ;;  %v3918_v20 = vld [vmem:[#allocation11 + $0xc] sm:$0xf0]  ;;  %v3916_v21 = vld [vmem:[#allocation11 + $0x4] sm:$0xf]  ;;  %v2791_v23 = vor.u32 %v3921_v14, %v2788_v15 }
  0x2c   :  { %377 = vmatpush.bf16.msra.mxu1 %v2815_v57  ;;  %v2764_v22 = vld [vmem:[#allocation11 + $0x10] sm:$0xf0]  ;;  %v2770_v24 = vld [vmem:[#allocation11 + $0x8] sm:$0xf]  ;;  %v3919_v25 = vld [vmem:[#allocation11 + $0x14] sm:$0xf0]  ;;  %v2763_v30 = vor.u32 %v3918_v20, %v2762_v17 }
  0x2d   :  { %406 = vmatpush.bf16.msra.mxu2 %v2819_v58  ;;  %435 = vmatpush.bf16.msra.mxu3 %v2823_v62  ;;  %v3917_v26 = vld [vmem:[#allocation11 + $0xc] sm:$0xf]  ;;  %v2772_v27 = vld [vmem:[#allocation11 + $0x18] sm:$0xf0]  ;;  %v3002_v28 = vld [vmem:[#allocation13 + $0xe0] sm:$0xf]  ;;  %v2767_v33 = vor.u32 %v3916_v21, %v2764_v22  ;;  %v2771_v34 = vor.u32 %v3919_v25, %v2770_v24 }
  0x2e   :  { %v3978_v29 = vld [vmem:[#allocation13 + $0xec] sm:$0xf0]  ;;  %v3976_v31 = vld [vmem:[#allocation13 + $0xe4] sm:$0xf]  ;;  %v3004_v32 = vld [vmem:[#allocation13 + $0xf0] sm:$0xf0]  ;;  %v2775_v36 = vor.u32 %v3917_v26, %v2772_v27 }
  0x2f   :  { %349 = vmatpush.bf16.msra.mxu0 %v2795_v4  ;;  %v3912_v35 = vld [vmem:[#allocation5] sm:$0xff]  ;;  %v3003_v37 = vor.u32 %v3978_v29, %v3002_v28  ;;  %v3010_v38 = vld [vmem:[#allocation13 + $0xe8] sm:$0xf]  ;;  %v3979_v39 = vld [vmem:[#allocation13 + $0xf4] sm:$0xf0]  ;;  %v3007_v41 = vor.u32 %v3976_v31, %v3004_v32  ;;  %s2712_s12 = sshll.u32 %s4755_s7, 4  ;;  %s2713_s12 = int_to_ptr.hbm [resolvable:$true] %s2712_s12 }
  0x30   :  { %378 = vmatpush.bf16.msra.mxu1 %v2799_v5  ;;  %v3977_v40 = vld [vmem:[#allocation13 + $0xec] sm:$0xf]  ;;  %v3012_v42 = vld [vmem:[#allocation13 + $0xf8] sm:$0xf0]  ;;  %v2986_v43 = vld [vmem:[#allocation13 + $0xc0] sm:$0xf]  ;;  %v3011_v47 = vor.u32 %v3979_v39, %v3010_v38 }
  0x31   :  { %407 = vmatpush.bf16.msra.mxu2 %v2803_v6  ;;  %436 = vmatpush.bf16.msra.mxu3 %v2807_v10  ;;  %v3974_v44 = vld [vmem:[#allocation13 + $0xcc] sm:$0xf0]  ;;  %v3972_v45 = vld [vmem:[#allocation13 + $0xc4] sm:$0xf]  ;;  %v2988_v46 = vld [vmem:[#allocation13 + $0xd0] sm:$0xf0]  ;;  %v3015_v48 = vor.u32 %v3977_v40, %v3012_v42 }
  0x32   :  { %v2987_v49 = vor.u32 %v3974_v44, %v2986_v43  ;;  %v2994_v50 = vld [vmem:[#allocation13 + $0xc8] sm:$0xf]  ;;  %v3975_v51 = vld [vmem:[#allocation13 + $0xd4] sm:$0xf0]  ;;  %v3973_v52 = vld [vmem:[#allocation13 + $0xcc] sm:$0xf]  ;;  %v2991_v53 = vor.u32 %v3972_v45, %v2988_v46 }
  0x33   :  { %350 = vmatpush.bf16.msra.mxu0 %v2779_v16  ;;  %v2996_v54 = vld [vmem:[#allocation13 + $0xd8] sm:$0xf0]  ;;  %v2970_v55 = vld [vmem:[#allocation13 + $0xa0] sm:$0xf]  ;;  %v3970_v56 = vld [vmem:[#allocation13 + $0xac] sm:$0xf0]  ;;  %v2995_v59 = vor.u32 %v3975_v51, %v2994_v50 }
  0x34   :  { %379 = vmatpush.bf16.msra.mxu1 %v2783_v18  ;;  %v3968_v57 = vld [vmem:[#allocation13 + $0xa4] sm:$0xf]  ;;  %v2972_v58 = vld [vmem:[#allocation13 + $0xb0] sm:$0xf0]  ;;  %v2999_v60 = vor.u32 %v3973_v52, %v2996_v54  ;;  %v2971_v61 = vor.u32 %v3970_v56, %v2970_v55  ;;  %v2978_v62 = vld [vmem:[#allocation13 + $0xa8] sm:$0xf] }
  0x35   :  { %408 = vmatpush.bf16.msra.mxu2 %v2787_v19  ;;  %437 = vmatpush.bf16.msra.mxu3 %v2791_v23  ;;  %v3971_v63 = vld [vmem:[#allocation13 + $0xb4] sm:$0xf0]  ;;  %v3969_v0 = vld [vmem:[#allocation13 + $0xac] sm:$0xf]  ;;  %v2975_v1 = vor.u32 %v3968_v57, %v2972_v58  ;;  %v2980_v2 = vld [vmem:[#allocation13 + $0xb8] sm:$0xf0] }
  0x36   :  { %v2954_v3 = vld [vmem:[#allocation13 + $0x80] sm:$0xf]  ;;  %v3966_v4 = vld [vmem:[#allocation13 + $0x8c] sm:$0xf0]  ;;  %v3964_v5 = vld [vmem:[#allocation13 + $0x84] sm:$0xf]  ;;  %v2979_v7 = vor.u32 %v3971_v63, %v2978_v62  ;;  %v2983_v8 = vor.u32 %v3969_v0, %v2980_v2 }
  0x37   :  { %351 = vmatpush.bf16.msra.mxu0 %v2763_v30  ;;  %v2956_v6 = vld [vmem:[#allocation13 + $0x90] sm:$0xf0]  ;;  %v2955_v9 = vor.u32 %v3966_v4, %v2954_v3  ;;  %v2962_v10 = vld [vmem:[#allocation13 + $0x88] sm:$0xf]  ;;  %v3967_v11 = vld [vmem:[#allocation13 + $0x94] sm:$0xf0] }
  0x38   :  { %380 = vmatpush.bf16.msra.mxu1 %v2767_v33  ;;  %v3965_v12 = vld [vmem:[#allocation13 + $0x8c] sm:$0xf]  ;;  %v2959_v13 = vor.u32 %v3964_v5, %v2956_v6  ;;  %v2964_v14 = vld [vmem:[#allocation13 + $0x98] sm:$0xf0]  ;;  %v2938_v15 = vld [vmem:[#allocation13 + $0x60] sm:$0xf]  ;;  %v2963_v20 = vor.u32 %v3967_v11, %v2962_v10 }
  0x39   :  { %409 = vmatpush.bf16.msra.mxu2 %v2771_v34  ;;  %438 = vmatpush.bf16.msra.mxu3 %v2775_v36  ;;  %v3962_v16 = vld [vmem:[#allocation13 + $0x6c] sm:$0xf0]  ;;  %v3960_v17 = vld [vmem:[#allocation13 + $0x64] sm:$0xf]  ;;  %v2940_v18 = vld [vmem:[#allocation13 + $0x70] sm:$0xf0]  ;;  %v2967_v21 = vor.u32 %v3965_v12, %v2964_v14 }
  0x3a   :  { %352 = vmatmul.bf16.vlgmr.msra.gmra.mxu0 %v3912_v35  ;;  %v3913_v19 = vld [vmem:[#allocation5 + $0x8] sm:$0xff]  ;;  %v2939_v22 = vor.u32 %v3962_v16, %v2938_v15  ;;  %v2946_v23 = vld [vmem:[#allocation13 + $0x68] sm:$0xf]  ;;  %v3961_v25 = vld [vmem:[#allocation13 + $0x6c] sm:$0xf]  ;;  %v2943_v26 = vor.u32 %v3960_v17, %v2940_v18  ;;  %s4508_s13 = smov [#allocation17]  }
  0x3b   :  { %691 = vmatpush.bf16.msrb.mxu0 %v3003_v37  ;;  %381 = vmatmul.bf16.vlgmr.msra.gmra.mxu1 %v3912_v35  ;;  %v3963_v24 = vld [vmem:[#allocation13 + $0x74] sm:$0xf0]  ;;  %v2948_v27 = vld [vmem:[#allocation13 + $0x78] sm:$0xf0]  ;;  %v2922_v28 = vld [vmem:[#allocation13 + $0x40] sm:$0xf] }
  0x3c   :  { %704 = vmatpush.bf16.msrb.mxu1 %v3007_v41  ;;  %410 = vmatmul.bf16.vlgmr.msra.gmra.mxu2 %v3912_v35  ;;  %v3958_v29 = vld [vmem:[#allocation13 + $0x4c] sm:$0xf0]  ;;  %v3956_v30 = vld [vmem:[#allocation13 + $0x44] sm:$0xf]  ;;  %v2924_v31 = vld [vmem:[#allocation13 + $0x50] sm:$0xf0]  ;;  %v2947_v32 = vor.u32 %v3963_v24, %v2946_v23  ;;  %v2951_v33 = vor.u32 %v3961_v25, %v2948_v27 }
  0x3d   :  { %439 = vmatmul.bf16.vlgmr.msra.gmra.mxu3 %v3912_v35  ;;  %717 = vmatpush.bf16.msrb.mxu2 %v3011_v47  ;;  %v2923_v34 = vor.u32 %v3958_v29, %v2922_v28  ;;  %v2930_v35 = vld [vmem:[#allocation13 + $0x48] sm:$0xf]  ;;  %v3959_v36 = vld [vmem:[#allocation13 + $0x54] sm:$0xf0]  ;;  %v2927_v37 = vor.u32 %v3956_v30, %v2924_v31  ;;  %v3957_v38 = vld [vmem:[#allocation13 + $0x4c] sm:$0xf] }
  0x3e   :  { %730 = vmatpush.bf16.msrb.mxu3 %v3015_v48  ;;  %v2932_v39 = vld [vmem:[#allocation13 + $0x58] sm:$0xf0]  ;;  %v2931_v40 = vor.u32 %v3959_v36, %v2930_v35  ;;  %v2906_v41 = vld [vmem:[#allocation13 + $0x20] sm:$0xf]  ;;  %v3954_v42 = vld [vmem:[#allocation13 + $0x2c] sm:$0xf0] }
  0x3f   :  { %692 = vmatpush.bf16.msrb.mxu0 %v2987_v49  ;;  %v3952_v43 = vld [vmem:[#allocation13 + $0x24] sm:$0xf]  ;;  %v2935_v44 = vor.u32 %v3957_v38, %v2932_v39  ;;  %v2907_v45 = vor.u32 %v3954_v42, %v2906_v41  ;;  %v2908_v46 = vld [vmem:[#allocation13 + $0x30] sm:$0xf0]  ;;  %v2914_v47 = vld [vmem:[#allocation13 + $0x28] sm:$0xf] }
  0x40   :  { %705 = vmatpush.bf16.msrb.mxu1 %v2991_v53  ;;  %v3955_v48 = vld [vmem:[#allocation13 + $0x34] sm:$0xf0]  ;;  %v2911_v49 = vor.u32 %v3952_v43, %v2908_v46  ;;  %v3953_v50 = vld [vmem:[#allocation13 + $0x2c] sm:$0xf]  ;;  %v2916_v51 = vld [vmem:[#allocation13 + $0x38] sm:$0xf0] }
  0x41   :  { %718 = vmatpush.bf16.msrb.mxu2 %v2995_v59  ;;  %v2890_v52 = vld [vmem:[#allocation13] sm:$0xf]  ;;  %v3950_v53 = vld [vmem:[#allocation13 + $0xc] sm:$0xf0]  ;;  %v3948_v54 = vld [vmem:[#allocation13 + $0x4] sm:$0xf]  ;;  %v2915_v56 = vor.u32 %v3955_v48, %v2914_v47  ;;  %v2919_v57 = vor.u32 %v3953_v50, %v2916_v51 }
  0x42   :  { %731 = vmatpush.bf16.msrb.mxu3 %v2999_v60  ;;  %v2892_v55 = vld [vmem:[#allocation13 + $0x10] sm:$0xf0]  ;;  %v2891_v58 = vor.u32 %v3950_v53, %v2890_v52  ;;  %v2898_v59 = vld [vmem:[#allocation13 + $0x8] sm:$0xf]  ;;  %v3951_v60 = vld [vmem:[#allocation13 + $0x14] sm:$0xf0] }
  0x43   :  { %693 = vmatpush.bf16.msrb.mxu0 %v2971_v61  ;;  %v2895_v61 = vor.u32 %v3948_v54, %v2892_v55  ;;  %v3949_v62 = vld [vmem:[#allocation13 + $0xc] sm:$0xf]  ;;  %v2900_v63 = vld [vmem:[#allocation13 + $0x18] sm:$0xf0]  ;;  %v2899_v0 = vor.u32 %v3951_v60, %v2898_v59  ;;  %v3914_v2 = vld [vmem:[#allocation5 + $0x10] sm:$0xff]  ;;  %s2721_s14 = sshll.u32 %s4508_s13, 4  ;;  %s2722_s14 = int_to_ptr.vmem [resolvable:$true] %s2721_s14 }
  0x44   :  { %706 = vmatpush.bf16.msrb.mxu1 %v2975_v1  ;;  %v2903_v1 = vor.u32 %v3949_v62, %v2900_v63  ;;  %v3915_v3 = vld [vmem:[#allocation5 + $0x18] sm:$0xff]  ;;  %v106_v4 = vld [vmem:[#allocation8] sm:$0xff]  ;;  %v3130_v36 = vld [vmem:[#allocation13 + $0xe0] sm:$0xf]  ;;  %s2723_s17 = sshll.u32 %s4756_s8, 4  ;;  %s4509_s18 = smov [#allocation14]   ;;  %s2724_s17 = int_to_ptr.hbm [resolvable:$true] %s2723_s17 }
  0x45   :  { %719 = vmatpush.bf16.msrb.mxu2 %v2979_v7  ;;  %v498_v5 = vpack.c.bf16 %v106_v4, %v106_v4  ;;  %v4008_v38 = vld [vmem:[#allocation13 + $0xe4] sm:$0xf]  ;;  %v3132_v43 = vld [vmem:[#allocation13 + $0xf0] sm:$0xf0]  ;;  %v4009_v51 = vld [vmem:[#allocation13 + $0xec] sm:$0xf] }
  0x46   :  { %732 = vmatpush.bf16.msrb.mxu3 %v2983_v8  ;;  %v150_v8 = vld [vmem:[%s4753_s5] sm:$0xf]  ;;  %v3140_v52 = vld [vmem:[#allocation13 + $0xf8] sm:$0xf0]  ;;  %v3114_v55 = vld [vmem:[#allocation13 + $0xc0] sm:$0xf] }
  0x47   :  { %694 = vmatpush.bf16.msrb.mxu0 %v2955_v9  ;;  %v4580_v9 = vperm.slane %v150_v8, 0  ;;  %v4584_v11 = vperm.slane %v150_v8, 1  ;;  %v4594_v17 = vperm.slane %v150_v8, 2  ;;  %v4596_v18 = vperm.slane %v150_v8, 3  ;;  %v3116_v59 = vld [vmem:[#allocation13 + $0xd0] sm:$0xf0] }
  0x48   :  { %707 = vmatpush.bf16.msrb.mxu1 %v2959_v13  ;;  %v3143_v54 = vor.u32 %v4009_v51, %v3140_v52  ;;  %v3122_v60 = vld [vmem:[#allocation13 + $0xc8] sm:$0xf]  ;;  %v3098_v4 = vld [vmem:[#allocation13 + $0xa0] sm:$0xf]  ;;  %v4000_v8 = vld [vmem:[#allocation13 + $0xa4] sm:$0xf] }
  0x49   :  { %720 = vmatpush.bf16.msrb.mxu2 %v2963_v20  ;;  %s4507_s5 = smov [#allocation15]   ;;  %s2696_s1 = sshll.u32 %s4509_s18, 4  ;;  %s2697_s1 = int_to_ptr.vmem [resolvable:$true] %s2696_s1 }
  0x4a   :  { %733 = vmatpush.bf16.msrb.mxu3 %v2967_v21  ;;  %357 = vmatmul.bf16.gmra.mxu0 %v3913_v19  ;;  %s2710_s9 = sshll.u32 %s4507_s5, 4  ;;  %s2698_s21 = sshll.u32 %s4754_s6, 4  ;;  %s2711_s9 = int_to_ptr.vmem [resolvable:$true] %s2710_s9  ;;  %s2699_s21 = int_to_ptr.hbm [resolvable:$true] %s2698_s21 }
  0x4b   :  { %695 = vmatpush.bf16.msrb.mxu0 %v2939_v22  ;;  %386 = vmatmul.bf16.gmra.mxu1 %v3913_v19 }
  0x4c   :  { %708 = vmatpush.bf16.msrb.mxu1 %v2943_v26  ;;  %415 = vmatmul.bf16.gmra.mxu2 %v3913_v19 }
  0x4d   :  { %444 = vmatmul.bf16.gmra.mxu3 %v3913_v19  ;;  %721 = vmatpush.bf16.msrb.mxu2 %v2947_v32 }
  0x4e   :  { %734 = vmatpush.bf16.msrb.mxu3 %v2951_v33 }
  0x4f   :  { %696 = vmatpush.bf16.msrb.mxu0 %v2923_v34 }
  0x50   :  { %709 = vmatpush.bf16.msrb.mxu1 %v2927_v37  ;;  %v4010_v37 = vld [vmem:[#allocation13 + $0xec] sm:$0xf0] }
  0x51   :  { %722 = vmatpush.bf16.msrb.mxu2 %v2931_v40  ;;  %v3131_v42 = vor.u32 %v4010_v37, %v3130_v36  ;;  %v4001_v37 = vld [vmem:[#allocation13 + $0xac] sm:$0xf] }
  0x52   :  { %735 = vmatpush.bf16.msrb.mxu3 %v2935_v44  ;;  %v3138_v44 = vld [vmem:[#allocation13 + $0xe8] sm:$0xf] }
  0x53   :  { %697 = vmatpush.bf16.msrb.mxu0 %v2907_v45  ;;  %v4011_v45 = vld [vmem:[#allocation13 + $0xf4] sm:$0xf0] }
  0x54   :  { %710 = vmatpush.bf16.msrb.mxu1 %v2911_v49  ;;  %v3135_v49 = vor.u32 %v4008_v38, %v3132_v43  ;;  %v3139_v50 = vor.u32 %v4011_v45, %v3138_v44  ;;  %v3108_v38 = vld [vmem:[#allocation13 + $0xb8] sm:$0xf0]  ;;  %v3998_v43 = vld [vmem:[#allocation13 + $0x8c] sm:$0xf0]  ;;  %v3996_v44 = vld [vmem:[#allocation13 + $0x84] sm:$0xf] }
  0x55   :  { %723 = vmatpush.bf16.msrb.mxu2 %v2915_v56  ;;  %v4006_v56 = vld [vmem:[#allocation13 + $0xcc] sm:$0xf0] }
  0x56   :  { %736 = vmatpush.bf16.msrb.mxu3 %v2919_v57  ;;  %v4004_v57 = vld [vmem:[#allocation13 + $0xc4] sm:$0xf] }
  0x57   :  { %698 = vmatpush.bf16.msrb.mxu0 %v2891_v58  ;;  %v3115_v58 = vor.u32 %v4006_v56, %v3114_v55  ;;  %v3119_v62 = vor.u32 %v4004_v57, %v3116_v59  ;;  %v3092_v55 = vld [vmem:[#allocation13 + $0x98] sm:$0xf0]  ;;  %v3994_v59 = vld [vmem:[#allocation13 + $0x6c] sm:$0xf0] }
  0x58   :  { %711 = vmatpush.bf16.msrb.mxu1 %v2895_v61  ;;  %v4007_v61 = vld [vmem:[#allocation13 + $0xd4] sm:$0xf0] }
  0x59   :  { %724 = vmatpush.bf16.msrb.mxu2 %v2899_v0  ;;  %v3123_v63 = vor.u32 %v4007_v61, %v3122_v60  ;;  %v4005_v0 = vld [vmem:[#allocation13 + $0xcc] sm:$0xf]  ;;  %v3992_v60 = vld [vmem:[#allocation13 + $0x64] sm:$0xf] }
  0x5a   :  { %737 = vmatpush.bf16.msrb.mxu3 %v2903_v1  ;;  %362 = vmatmul.bf16.gmra.mxu0 %v3914_v2  ;;  %v3124_v1 = vld [vmem:[#allocation13 + $0xd8] sm:$0xf0] }
  0x5b   :  { %391 = vmatmul.bf16.gmra.mxu1 %v3914_v2  ;;  %964 = vmatpush.bf16.msra.mxu0 %v3131_v42  ;;  %v3082_v42 = vld [vmem:[#allocation13 + $0x80] sm:$0xf] }
  0x5c   :  { %420 = vmatmul.bf16.gmra.mxu2 %v3914_v2  ;;  %977 = vmatpush.bf16.msra.mxu1 %v3135_v49  ;;  %v3083_v45 = vor.u32 %v3998_v43, %v3082_v42  ;;  %v3090_v49 = vld [vmem:[#allocation13 + $0x88] sm:$0xf]  ;;  %v3991_v42 = vld [vmem:[#allocation13 + $0x54] sm:$0xf0] }
  0x5d   :  { %449 = vmatmul.bf16.gmra.mxu3 %v3914_v2  ;;  %990 = vmatpush.bf16.msra.mxu2 %v3139_v50  ;;  %v3127_v2 = vor.u32 %v4005_v0, %v3124_v1  ;;  %v3999_v50 = vld [vmem:[#allocation13 + $0x94] sm:$0xf0]  ;;  %v3068_v1 = vld [vmem:[#allocation13 + $0x70] sm:$0xf0] }
  0x5e   :  { %1003 = vmatpush.bf16.msra.mxu3 %v3143_v54  ;;  %v3091_v52 = vor.u32 %v3999_v50, %v3090_v49  ;;  %v3997_v54 = vld [vmem:[#allocation13 + $0x8c] sm:$0xf] }
  0x5f   :  { %965 = vmatpush.bf16.msra.mxu0 %v3115_v58  ;;  %v3095_v56 = vor.u32 %v3997_v54, %v3092_v55  ;;  %v3066_v58 = vld [vmem:[#allocation13 + $0x60] sm:$0xf]  ;;  %v3984_v54 = vld [vmem:[#allocation13 + $0x24] sm:$0xf] }
  0x60   :  { %978 = vmatpush.bf16.msra.mxu1 %v3119_v62  ;;  %v3067_v0 = vor.u32 %v3994_v59, %v3066_v58  ;;  %v3036_v59 = vld [vmem:[#allocation13 + $0x30] sm:$0xf0] }
  0x61   :  { %991 = vmatpush.bf16.msra.mxu2 %v3123_v63 }
  0x62   :  { %1004 = vmatpush.bf16.msra.mxu3 %v3127_v2  ;;  %v3074_v2 = vld [vmem:[#allocation13 + $0x68] sm:$0xf] }
  0x6a   :  { %367 = vmatmul.bf16.gmra.mxu0 %v3915_v3 }
  0x6b   :  { %396 = vmatmul.bf16.gmra.mxu1 %v3915_v3 }
  0x6c   :  { %425 = vmatmul.bf16.gmra.mxu2 %v3915_v3 }
  0x6d   :  { %454 = vmatmul.bf16.gmra.mxu3 %v3915_v3 }
  0x7a   :  { %699 = vmatmul.bf16.vlgmr.msrb.gmra.mxu0 %v498_v5 }
  0x7b   :  { %712 = vmatmul.bf16.vlgmr.msrb.gmra.mxu1 %v498_v5 }
  0x7c   :  { %725 = vmatmul.bf16.vlgmr.msrb.gmra.mxu2 %v498_v5 }
  0x7d   :  { %738 = vmatmul.bf16.vlgmr.msrb.gmra.mxu3 %v498_v5  ;;  %v4002_v5 = vld [vmem:[#allocation13 + $0xac] sm:$0xf0] }
  0xb7   :  { %v4573_v6 = vpop.f32.mrf.mxu0 }
  0xb8   :  { %v4575_v7 = vpop.f32.mrf.mxu1 }
  0xbf   :  { %v4582_v10 = vpop.f32.mrf.mxu2  ;;  %v355_v13 = vpop.f32.mrf.mxu0 }
  0xc0   :  { %v4586_v12 = vpop.f32.mrf.mxu3  ;;  %v4589_v14 = vadd.f32 %v355_v13, %v4580_v9  ;;  %v384_v15 = vpop.f32.mrf.mxu1 }
  0xc1   :  { %v4592_v16 = vadd.f32 %v384_v15, %v4584_v11 }
  0xc7   :  { %v413_v19 = vpop.f32.mrf.mxu2  ;;  %v358_v22 = vpop.f32.mrf.mxu0 }
  0xc8   :  { %v4599_v20 = vadd.f32 %v413_v19, %v4594_v17  ;;  %v442_v21 = vpop.f32.mrf.mxu3  ;;  %v4605_v24 = vadd.f32 %v358_v22, %v4580_v9  ;;  %v387_v25 = vpop.f32.mrf.mxu1  ;;  %v3100_v22 = vld [vmem:[#allocation13 + $0xb0] sm:$0xf0] }
  0xc9   :  { %v4602_v23 = vadd.f32 %v442_v21, %v4596_v18  ;;  %v4608_v26 = vadd.f32 %v387_v25, %v4584_v11  ;;  %v3099_v21 = vor.u32 %v4002_v5, %v3098_v4  ;;  %v3106_v25 = vld [vmem:[#allocation13 + $0xa8] sm:$0xf] }
  0xcb   :  { %966 = vmatpush.bf16.msra.mxu0 %v3099_v21  ;;  %v3993_v21 = vld [vmem:[#allocation13 + $0x6c] sm:$0xf] }
  0xcf   :  { %v416_v27 = vpop.f32.mrf.mxu2  ;;  %v360_v30 = vpop.f32.mrf.mxu0  ;;  %967 = vmatpush.bf16.msra.mxu0 %v3083_v45  ;;  %v3989_v45 = vld [vmem:[#allocation13 + $0x4c] sm:$0xf] }
  0xd0   :  { %v4611_v28 = vadd.f32 %v416_v27, %v4594_v17  ;;  %v445_v29 = vpop.f32.mrf.mxu3  ;;  %v4617_v32 = vadd.f32 %v360_v30, %v4580_v9  ;;  %v389_v33 = vpop.f32.mrf.mxu1  ;;  %v4003_v27 = vld [vmem:[#allocation13 + $0xb4] sm:$0xf0] }
  0xd1   :  { %v4614_v31 = vadd.f32 %v445_v29, %v4596_v18  ;;  %v4620_v34 = vadd.f32 %v389_v33, %v4584_v11  ;;  %v3107_v36 = vor.u32 %v4003_v27, %v3106_v25 }
  0xd3   :  { %992 = vmatpush.bf16.msra.mxu2 %v3107_v36  ;;  %968 = vmatpush.bf16.msra.mxu0 %v3067_v0  ;;  %v3988_v36 = vld [vmem:[#allocation13 + $0x44] sm:$0xf] }
  0xd7   :  { %v418_v35 = vpop.f32.mrf.mxu2  ;;  %v363_v41 = vpop.f32.mrf.mxu0  ;;  %993 = vmatpush.bf16.msra.mxu2 %v3091_v52  ;;  %v3986_v52 = vld [vmem:[#allocation13 + $0x2c] sm:$0xf0] }
  0xd8   :  { %v4623_v39 = vadd.f32 %v418_v35, %v4594_v17  ;;  %v447_v40 = vpop.f32.mrf.mxu3  ;;  %v4629_v47 = vadd.f32 %v363_v41, %v4580_v9  ;;  %v392_v48 = vpop.f32.mrf.mxu1  ;;  %v3103_v35 = vor.u32 %v4000_v8, %v3100_v22  ;;  %v3111_v41 = vor.u32 %v4001_v37, %v3108_v38  ;;  %v3076_v22 = vld [vmem:[#allocation13 + $0x78] sm:$0xf0]  ;;  %v3052_v38 = vld [vmem:[#allocation13 + $0x50] sm:$0xf0] }
  0xd9   :  { %v4626_v46 = vadd.f32 %v447_v40, %v4596_v18  ;;  %v4632_v53 = vadd.f32 %v392_v48, %v4584_v11  ;;  %v3084_v48 = vld [vmem:[#allocation13 + $0x90] sm:$0xf0]  ;;  %v3079_v27 = vor.u32 %v3993_v21, %v3076_v22  ;;  %v3055_v43 = vor.u32 %v3988_v36, %v3052_v38  ;;  %v3018_v22 = vld [vmem:[#allocation13] sm:$0xf]  ;;  %v3983_v38 = vld [vmem:[#allocation13 + $0x14] sm:$0xf0] }
  0xda   :  { %979 = vmatpush.bf16.msra.mxu1 %v3103_v35  ;;  %1005 = vmatpush.bf16.msra.mxu3 %v3111_v41  ;;  %v3087_v51 = vor.u32 %v3996_v44, %v3084_v48  ;;  %v3990_v35 = vld [vmem:[#allocation13 + $0x4c] sm:$0xf0]  ;;  %v3058_v41 = vld [vmem:[#allocation13 + $0x48] sm:$0xf]  ;;  %v3060_v48 = vld [vmem:[#allocation13 + $0x58] sm:$0xf0] }
  0xdb   :  { %v3059_v44 = vor.u32 %v3991_v42, %v3058_v41  ;;  %v3063_v49 = vor.u32 %v3989_v45, %v3060_v48  ;;  %v3020_v36 = vld [vmem:[#allocation13 + $0x10] sm:$0xf0]  ;;  %v354_v48 = vadd.f32 %v4573_v6, %v4580_v9 }
  0xde   :  { %980 = vmatpush.bf16.msra.mxu1 %v3087_v51  ;;  %1006 = vmatpush.bf16.msra.mxu3 %v3095_v56  ;;  %v3034_v51 = vld [vmem:[#allocation13 + $0x20] sm:$0xf] }
  0xdf   :  { %v421_v3 = vpop.f32.mrf.mxu2  ;;  %v365_v19 = vpop.f32.mrf.mxu0  ;;  %v3035_v58 = vor.u32 %v3986_v52, %v3034_v51 }
  0xe0   :  { %v4635_v13 = vadd.f32 %v421_v3, %v4594_v17  ;;  %v450_v15 = vpop.f32.mrf.mxu3  ;;  %v4641_v30 = vadd.f32 %v365_v19, %v4580_v9  ;;  %v394_v33 = vpop.f32.mrf.mxu1  ;;  %v3995_v3 = vld [vmem:[#allocation13 + $0x74] sm:$0xf0] }
  0xe1   :  { %v4638_v29 = vadd.f32 %v450_v15, %v4596_v18  ;;  %v4644_v40 = vadd.f32 %v394_v33, %v4584_v11  ;;  %v3071_v15 = vor.u32 %v3992_v60, %v3068_v1  ;;  %v3075_v19 = vor.u32 %v3995_v3, %v3074_v2  ;;  %v3050_v33 = vld [vmem:[#allocation13 + $0x40] sm:$0xf]  ;;  %v3042_v60 = vld [vmem:[#allocation13 + $0x28] sm:$0xf] }
  0xe2   :  { %1007 = vmatpush.bf16.msra.mxu3 %v3079_v27  ;;  %v3051_v37 = vor.u32 %v3990_v35, %v3050_v33  ;;  %v3039_v2 = vor.u32 %v3984_v54, %v3036_v59  ;;  %v3982_v27 = vld [vmem:[#allocation13 + $0xc] sm:$0xf0]  ;;  %v3980_v33 = vld [vmem:[#allocation13 + $0x4] sm:$0xf] }
  0xe3   :  { %981 = vmatpush.bf16.msra.mxu1 %v3071_v15  ;;  %994 = vmatpush.bf16.msra.mxu2 %v3075_v19  ;;  %v3044_v15 = vld [vmem:[#allocation13 + $0x38] sm:$0xf0]  ;;  %v3019_v35 = vor.u32 %v3982_v27, %v3018_v22  ;;  %v3023_v41 = vor.u32 %v3980_v33, %v3020_v36 }
  0xe4   :  { %969 = vmatpush.bf16.msra.mxu0 %v3051_v37  ;;  %v3026_v37 = vld [vmem:[#allocation13 + $0x8] sm:$0xf]  ;;  %v108_v36 = vld [vmem:[#allocation10] sm:$0xff] }
  0xe5   :  { %v3027_v42 = vor.u32 %v3983_v38, %v3026_v37 }
  0xe6   :  { %1008 = vmatpush.bf16.msra.mxu3 %v3063_v49 }
  0xe7   :  { %v423_v57 = vpop.f32.mrf.mxu2  ;;  %v368_v63 = vpop.f32.mrf.mxu0  ;;  %982 = vmatpush.bf16.msra.mxu1 %v3055_v43  ;;  %995 = vmatpush.bf16.msra.mxu2 %v3059_v44  ;;  %v3981_v43 = vld [vmem:[#allocation13 + $0xc] sm:$0xf]  ;;  %v3028_v44 = vld [vmem:[#allocation13 + $0x18] sm:$0xf0] }
  0xe8   :  { %v4647_v61 = vadd.f32 %v423_v57, %v4594_v17  ;;  %v452_v62 = vpop.f32.mrf.mxu3  ;;  %v4653_v5 = vadd.f32 %v368_v63, %v4580_v9  ;;  %v397_v8 = vpop.f32.mrf.mxu1  ;;  %970 = vmatpush.bf16.msra.mxu0 %v3035_v58  ;;  %v3031_v45 = vor.u32 %v3981_v43, %v3028_v44 }
  0xe9   :  { %v4650_v4 = vadd.f32 %v452_v62, %v4596_v18  ;;  %v4656_v25 = vadd.f32 %v397_v8, %v4584_v11  ;;  %v3987_v62 = vld [vmem:[#allocation13 + $0x34] sm:$0xf0]  ;;  %v3985_v8 = vld [vmem:[#allocation13 + $0x2c] sm:$0xf] }
  0xea   :  { %v3043_v3 = vor.u32 %v3987_v62, %v3042_v60  ;;  %v3047_v21 = vor.u32 %v3985_v8, %v3044_v15 }
  0xeb   :  { %983 = vmatpush.bf16.msra.mxu1 %v3039_v2 }
  0xec   :  { %996 = vmatpush.bf16.msra.mxu2 %v3043_v3  ;;  %1009 = vmatpush.bf16.msra.mxu3 %v3047_v21 }
  0xed   :  { %971 = vmatpush.bf16.msra.mxu0 %v3019_v35 }
  0xef   :  { %v426_v50 = vpop.f32.mrf.mxu2  ;;  %v370_v57 = vpop.f32.mrf.mxu0  ;;  %984 = vmatpush.bf16.msra.mxu1 %v3023_v41 }
  0xf0   :  { %v4659_v55 = vadd.f32 %v426_v50, %v4594_v17  ;;  %v455_v56 = vpop.f32.mrf.mxu3  ;;  %v4665_v0 = vadd.f32 %v370_v57, %v4580_v9  ;;  %v399_v1 = vpop.f32.mrf.mxu1  ;;  %997 = vmatpush.bf16.msra.mxu2 %v3027_v42  ;;  %v383_v50 = vadd.f32 %v4575_v7, %v4584_v11  ;;  %1010 = vmatpush.bf16.msra.mxu3 %v3031_v45 }
  0xf1   :  { %v4662_v63 = vadd.f32 %v455_v56, %v4596_v18  ;;  %v4668_v19 = vadd.f32 %v399_v1, %v4584_v11  ;;  %v412_v9 = vadd.f32 %v4582_v10, %v4594_v17  ;;  %v441_v7 = vadd.f32 %v4586_v12, %v4596_v18 }
  0xf7   :  { %v428_v49 = vpop.f32.mrf.mxu2  ;;  %v700_v54 = vpop.f32.mrf.mxu0 }
  0xf8   :  { %v4675_v51 = vadd.f32 %v428_v49, %v4594_v17  ;;  %v457_v52 = vpop.f32.mrf.mxu3  ;;  %v743_v57 = vadd.f32 %v700_v54, %v354_v48  ;;  %v713_v58 = vpop.f32.mrf.mxu1  ;;  %v4040_v54 = vld [vmem:[#allocation13 + $0xe4] sm:$0xf] }
  0xf9   :  { %v4678_v56 = vadd.f32 %v457_v52, %v4596_v18  ;;  %v744_v59 = vadd.f32 %v713_v58, %v383_v50  ;;  %v3258_v50 = vld [vmem:[#allocation13 + $0xe0] sm:$0xf]  ;;  %v4042_v52 = vld [vmem:[#allocation13 + $0xec] sm:$0xf0]  ;;  %v3260_v58 = vld [vmem:[#allocation13 + $0xf0] sm:$0xf0] }
  0xfa   :  { %v747_v60 = vmul.f32 0.5, %v743_v57  ;;  %v3259_v57 = vor.u32 %v4042_v52, %v3258_v50  ;;  %v3210_v52 = vld [vmem:[#allocation13 + $0x80] sm:$0xf] }
  0xfb   :  { %v751_v6 = vmul.f32 0.5, %v744_v59  ;;  %v3266_v59 = vld [vmem:[#allocation13 + $0xe8] sm:$0xf] }
  0xfc   :  { %4216 = vtanh.f32 %v747_v60  ;;  %v4043_v60 = vld [vmem:[#allocation13 + $0xf4] sm:$0xf0]  ;;  %1238 = vmatpush.bf16.msrb.mxu0 %v3259_v57  ;;  %v4028_v57 = vld [vmem:[#allocation13 + $0x84] sm:$0xf] }
  0xfd   :  { %4218 = vtanh.f32 %v751_v6  ;;  %v3263_v6 = vor.u32 %v4040_v54, %v3260_v58  ;;  %v4030_v54 = vld [vmem:[#allocation13 + $0x8c] sm:$0xf0] }
  0xfe   :  { %v3211_v58 = vor.u32 %v4030_v54, %v3210_v52  ;;  %v3162_v54 = vld [vmem:[#allocation13 + $0x20] sm:$0xf] }
  0xff   :  { %v726_v11 = vpop.f32.mrf.mxu2  ;;  %v702_v2 = vpop.f32.mrf.mxu0  ;;  %1251 = vmatpush.bf16.msrb.mxu1 %v3263_v6  ;;  %v4031_v6 = vld [vmem:[#allocation13 + $0x94] sm:$0xf0] }
 0x100   :  { %v745_v62 = vadd.f32 %v726_v11, %v412_v9  ;;  %v739_v1 = vpop.f32.mrf.mxu3  ;;  %v715_v8 = vpop.f32.mrf.mxu1  ;;  %v3267_v9 = vor.u32 %v4043_v60, %v3266_v59  ;;  %v3268_v11 = vld [vmem:[#allocation13 + $0xf8] sm:$0xf0]  ;;  %v4038_v2 = vld [vmem:[#allocation13 + $0xcc] sm:$0xf0]  ;;  %v3212_v59 = vld [vmem:[#allocation13 + $0x90] sm:$0xf0] }
 0x101   :  { %v746_v3 = vadd.f32 %v739_v1, %v441_v7  ;;  %v4041_v7 = vld [vmem:[#allocation13 + $0xec] sm:$0xf]  ;;  %v3242_v1 = vld [vmem:[#allocation13 + $0xc0] sm:$0xf]  ;;  %v3218_v60 = vld [vmem:[#allocation13 + $0x88] sm:$0xf] }
 0x102   :  { %4220 = vtanh.f32 %v745_v62  ;;  %v4217_v15 = vpop.eup %4216  ;;  %v3271_v62 = vor.u32 %v4041_v7, %v3268_v11  ;;  %1264 = vmatpush.bf16.msrb.mxu2 %v3267_v9  ;;  %v3243_v8 = vor.u32 %v4038_v2, %v3242_v1  ;;  %v3215_v9 = vor.u32 %v4028_v57, %v3212_v59  ;;  %v4029_v11 = vld [vmem:[#allocation13 + $0x8c] sm:$0xf]  ;;  %v3194_v2 = vld [vmem:[#allocation13 + $0x60] sm:$0xf]  ;;  %v4018_v57 = vld [vmem:[#allocation13 + $0x2c] sm:$0xf0] }
 0x103   :  { %v756_v21 = vmul.f32 0.5, %v746_v3  ;;  %v4219_v22 = vpop.eup %4218  ;;  %v749_v27 = vmul.f32 0.5, %v4217_v15  ;;  %v4036_v3 = vld [vmem:[#allocation13 + $0xc4] sm:$0xf]  ;;  %v3244_v15 = vld [vmem:[#allocation13 + $0xd0] sm:$0xf0]  ;;  %v3219_v7 = vor.u32 %v4031_v6, %v3218_v60  ;;  %v3163_v59 = vor.u32 %v4018_v57, %v3162_v54 }
 0x104   :  { %v753_v33 = vmul.f32 0.5, %v4219_v22  ;;  %1277 = vmatpush.bf16.msrb.mxu3 %v3271_v62  ;;  %v4039_v22 = vld [vmem:[#allocation13 + $0xd4] sm:$0xf0]  ;;  %1239 = vmatpush.bf16.msrb.mxu0 %v3243_v8  ;;  %v3220_v62 = vld [vmem:[#allocation13 + $0x98] sm:$0xf0] }
 0x105   :  { %4222 = vtanh.f32 %v756_v21  ;;  %v750_v35 = vadd.f32 0.5, %v749_v27  ;;  %v3250_v21 = vld [vmem:[#allocation13 + $0xc8] sm:$0xf]  ;;  %v3247_v27 = vor.u32 %v4036_v3, %v3244_v15  ;;  %v3223_v1 = vor.u32 %v4029_v11, %v3220_v62  ;;  %v4026_v3 = vld [vmem:[#allocation13 + $0x6c] sm:$0xf0] }
 0x106   :  { %v754_v10 = vadd.f32 0.5, %v753_v33  ;;  %v3251_v33 = vor.u32 %v4039_v22, %v3250_v21  ;;  %v4024_v8 = vld [vmem:[#allocation13 + $0x64] sm:$0xf]  ;;  %v3195_v15 = vor.u32 %v4026_v3, %v3194_v2  ;;  %v3196_v21 = vld [vmem:[#allocation13 + $0x70] sm:$0xf0] }
 0x107   :  { %v728_v17 = vpop.f32.mrf.mxu2  ;;  %1252 = vmatpush.bf16.msrb.mxu1 %v3247_v27  ;;  %v3202_v22 = vld [vmem:[#allocation13 + $0x68] sm:$0xf]  ;;  %v4027_v27 = vld [vmem:[#allocation13 + $0x74] sm:$0xf0]  ;;  %v3164_v60 = vld [vmem:[#allocation13 + $0x30] sm:$0xf0] }
 0x108   :  { %v4221_v37 = vpop.eup %4220  ;;  %v741_v38 = vpop.f32.mrf.mxu3  ;;  %v760_v12 = vmul.f32 %v754_v10, %v108_v36  ;;  %v3252_v36 = vld [vmem:[#allocation13 + $0xd8] sm:$0xf0]  ;;  %1265 = vmatpush.bf16.msrb.mxu2 %v3251_v33  ;;  %v3226_v17 = vld [vmem:[#allocation13 + $0xa0] sm:$0xf]  ;;  %v3199_v33 = vor.u32 %v4024_v8, %v3196_v21  ;;  %v3170_v6 = vld [vmem:[#allocation13 + $0x28] sm:$0xf] }
 0x109   :  { %v761_v18 = vmul.f32 %v4221_v37, %v750_v35  ;;  %v4037_v35 = vld [vmem:[#allocation13 + $0xcc] sm:$0xf]  ;;  %v4034_v37 = vld [vmem:[#allocation13 + $0xac] sm:$0xf0]  ;;  %v4032_v38 = vld [vmem:[#allocation13 + $0xa4] sm:$0xf] }
 0x10a   :  { %v3255_v10 = vor.u32 %v4037_v35, %v3252_v36  ;;  %v3203_v35 = vor.u32 %v4027_v27, %v3202_v22  ;;  %v4025_v36 = vld [vmem:[#allocation13 + $0x6c] sm:$0xf]  ;;  %v3146_v3 = vld [vmem:[#allocation13] sm:$0xf]  ;;  %v4014_v8 = vld [vmem:[#allocation13 + $0xc] sm:$0xf0] }
 0x10b   :  { %v4223_v41 = vpop.eup %4222  ;;  %v4684_v42 = vadd.f32 %v761_v18, %v760_v12  ;;  %v3227_v12 = vor.u32 %v4034_v37, %v3226_v17  ;;  %v3228_v18 = vld [vmem:[#allocation13 + $0xb0] sm:$0xf0]  ;;  %v3178_v37 = vld [vmem:[#allocation13 + $0x40] sm:$0xf]  ;;  %v4017_v62 = vld [vmem:[#allocation13 + $0x2c] sm:$0xf]  ;;  %v3147_v21 = vor.u32 %v4014_v8, %v3146_v3 }
 0x10c   :  { %v758_v43 = vmul.f32 0.5, %v4223_v41  ;;  %1278 = vmatpush.bf16.msrb.mxu3 %v3255_v10  ;;  %v3234_v41 = vld [vmem:[#allocation13 + $0xa8] sm:$0xf]  ;;  %v3204_v10 = vld [vmem:[#allocation13 + $0x78] sm:$0xf0] }
 0x10d   :  { %4224 = vtanh.f32 %v4684_v42  ;;  %1240 = vmatpush.bf16.msrb.mxu0 %v3227_v12  ;;  %v3207_v17 = vor.u32 %v4025_v36, %v3204_v10  ;;  %v4020_v12 = vld [vmem:[#allocation13 + $0x44] sm:$0xf]  ;;  %v3148_v22 = vld [vmem:[#allocation13 + $0x10] sm:$0xf0]  ;;  %v3154_v27 = vld [vmem:[#allocation13 + $0x8] sm:$0xf] }
 0x10e   :  { %v759_v44 = vadd.f32 0.5, %v758_v43  ;;  %v4035_v43 = vld [vmem:[#allocation13 + $0xb4] sm:$0xf0]  ;;  %v4013_v10 = vld [vmem:[#allocation13 + $0xc] sm:$0xf] }
 0x111   :  { %1241 = vmatpush.bf16.msrb.mxu0 %v3211_v58  ;;  %v4016_v58 = vld [vmem:[#allocation13 + $0x24] sm:$0xf] }
 0x113   :  { %v4225_v45 = vpop.eup %4224 }
 0x114   :  { %v764_v48 = vmul.f32 %v4225_v45, %v759_v44  ;;  %v3231_v44 = vor.u32 %v4032_v38, %v3228_v18  ;;  %v3235_v45 = vor.u32 %v4035_v43, %v3234_v41  ;;  %v4022_v38 = vld [vmem:[#allocation13 + $0x4c] sm:$0xf0]  ;;  %v3180_v41 = vld [vmem:[#allocation13 + $0x50] sm:$0xf0]  ;;  %v3186_v43 = vld [vmem:[#allocation13 + $0x48] sm:$0xf] }
 0x115   :  { %1242 = vmatpush.bf16.msrb.mxu0 %v3195_v15  ;;  %v3179_v18 = vor.u32 %v4022_v38, %v3178_v37  ;;  %v4012_v15 = vld [vmem:[#allocation13 + $0x4] sm:$0xf] }
 0x116   :  { %v765_v49 = vpack.c.bf16 %v764_v48, %v764_v48  ;;  %v4033_v48 = vld [vmem:[#allocation13 + $0xac] sm:$0xf]  ;;  %1253 = vmatpush.bf16.msrb.mxu1 %v3231_v44  ;;  %1266 = vmatpush.bf16.msrb.mxu2 %v3235_v45  ;;  %v4023_v44 = vld [vmem:[#allocation13 + $0x54] sm:$0xf0]  ;;  %v3183_v45 = vor.u32 %v4020_v12, %v3180_v41 }
 0x118   :  { %766 = vst [vmem:[#allocation14] sm:$0xf] %v765_v49  ;;  %972 = vmatmul.bf16.vlgmr.msra.gmra.mxu0 %v765_v49  ;;  %985 = vmatmul.bf16.vlgmr.msra.gmra.mxu1 %v765_v49 }
 0x119   :  { %998 = vmatmul.bf16.vlgmr.msra.gmra.mxu2 %v765_v49  ;;  %1011 = vmatmul.bf16.vlgmr.msra.gmra.mxu3 %v765_v49  ;;  %v3236_v49 = vld [vmem:[#allocation13 + $0xb8] sm:$0xf0] }
 0x11a   :  { %v3239_v50 = vor.u32 %v4033_v48, %v3236_v49  ;;  %1254 = vmatpush.bf16.msrb.mxu1 %v3215_v9  ;;  %1267 = vmatpush.bf16.msrb.mxu2 %v3219_v7  ;;  %v3187_v48 = vor.u32 %v4023_v44, %v3186_v43  ;;  %v4021_v49 = vld [vmem:[#allocation13 + $0x4c] sm:$0xf]  ;;  %v4019_v9 = vld [vmem:[#allocation13 + $0x34] sm:$0xf0]  ;;  %v3167_v7 = vor.u32 %v4016_v58, %v3164_v60 }
 0x11b   :  { %1243 = vmatpush.bf16.msrb.mxu0 %v3179_v18  ;;  %v3171_v11 = vor.u32 %v4019_v9, %v3170_v6 }
 0x11c   :  { %1279 = vmatpush.bf16.msrb.mxu3 %v3239_v50  ;;  %v3188_v50 = vld [vmem:[#allocation13 + $0x58] sm:$0xf0] }
 0x11d   :  { %v3191_v52 = vor.u32 %v4021_v49, %v3188_v50 }
 0x11e   :  { %1255 = vmatpush.bf16.msrb.mxu1 %v3199_v33  ;;  %1268 = vmatpush.bf16.msrb.mxu2 %v3203_v35  ;;  %v4015_v33 = vld [vmem:[#allocation13 + $0x14] sm:$0xf0]  ;;  %v3151_v35 = vor.u32 %v4012_v15, %v3148_v22  ;;  %v3386_v22 = vld [vmem:[#allocation13 + $0xe0] sm:$0xf] }
 0x11f   :  { %1244 = vmatpush.bf16.msrb.mxu0 %v3163_v59  ;;  %v3155_v36 = vor.u32 %v4015_v33, %v3154_v27  ;;  %v4074_v27 = vld [vmem:[#allocation13 + $0xec] sm:$0xf0]  ;;  %v4072_v33 = vld [vmem:[#allocation13 + $0xe4] sm:$0xf] }
 0x120   :  { %1280 = vmatpush.bf16.msrb.mxu3 %v3223_v1  ;;  %v3172_v1 = vld [vmem:[#allocation13 + $0x38] sm:$0xf0] }
 0x121   :  { %v3175_v2 = vor.u32 %v4017_v62, %v3172_v1 }
 0x122   :  { %1256 = vmatpush.bf16.msrb.mxu1 %v3183_v45  ;;  %1269 = vmatpush.bf16.msrb.mxu2 %v3187_v48 }
 0x123   :  { %1245 = vmatpush.bf16.msrb.mxu0 %v3147_v21 }
 0x124   :  { %1281 = vmatpush.bf16.msrb.mxu3 %v3207_v17  ;;  %v3156_v17 = vld [vmem:[#allocation13 + $0x18] sm:$0xf0] }
 0x125   :  { %v3159_v37 = vor.u32 %v4013_v10, %v3156_v17  ;;  %v4075_v10 = vld [vmem:[#allocation13 + $0xf4] sm:$0xf0] }
 0x126   :  { %1257 = vmatpush.bf16.msrb.mxu1 %v3167_v7  ;;  %1270 = vmatpush.bf16.msrb.mxu2 %v3171_v11 }
 0x128   :  { %1282 = vmatpush.bf16.msrb.mxu3 %v3191_v52 }
 0x12a   :  { %1258 = vmatpush.bf16.msrb.mxu1 %v3151_v35  ;;  %1271 = vmatpush.bf16.msrb.mxu2 %v3155_v36  ;;  %v3388_v35 = vld [vmem:[#allocation13 + $0xf0] sm:$0xf0]  ;;  %v3394_v36 = vld [vmem:[#allocation13 + $0xe8] sm:$0xf] }
 0x12b   :  { %v3391_v17 = vor.u32 %v4072_v33, %v3388_v35  ;;  %v3346_v33 = vld [vmem:[#allocation13 + $0x88] sm:$0xf] }
 0x12c   :  { %1283 = vmatpush.bf16.msrb.mxu3 %v3175_v2 }
 0x12e   :  { %1525 = vmatpush.bf16.msra.mxu1 %v3391_v17  ;;  %v3348_v17 = vld [vmem:[#allocation13 + $0x98] sm:$0xf0] }
 0x130   :  { %1284 = vmatpush.bf16.msrb.mxu3 %v3159_v37  ;;  %v3395_v37 = vor.u32 %v4075_v10, %v3394_v36  ;;  %v4061_v10 = vld [vmem:[#allocation13 + $0x8c] sm:$0xf] }
 0x132   :  { %1538 = vmatpush.bf16.msra.mxu2 %v3395_v37  ;;  %v3351_v37 = vor.u32 %v4061_v10, %v3348_v17  ;;  %v3274_v10 = vld [vmem:[#allocation13] sm:$0xf]  ;;  %v4046_v17 = vld [vmem:[#allocation13 + $0xc] sm:$0xf0] }
 0x195   :  { %v973_v38 = vpop.f32.mrf.mxu0  ;;  %v986_v12 = vpop.f32.mrf.mxu1 }
 0x196   :  { %v1016_v18 = vadd.f32 %v973_v38, %v4589_v14  ;;  %v1017_v41 = vadd.f32 %v986_v12, %v4592_v16  ;;  %v4073_v38 = vld [vmem:[#allocation13 + $0xec] sm:$0xf]  ;;  %v3396_v12 = vld [vmem:[#allocation13 + $0xf8] sm:$0xf0] }
 0x198   :  { %v1020_v43 = vmul.f32 0.5, %v1016_v18  ;;  %v1024_v44 = vmul.f32 0.5, %v1017_v41  ;;  %v3399_v18 = vor.u32 %v4073_v38, %v3396_v12  ;;  %v3370_v41 = vld [vmem:[#allocation13 + $0xc0] sm:$0xf]  ;;  %v4058_v12 = vld [vmem:[#allocation13 + $0x6c] sm:$0xf0] }
 0x199   :  { %v3322_v38 = vld [vmem:[#allocation13 + $0x60] sm:$0xf] }
 0x19a   :  { %4226 = vtanh.f32 %v1020_v43  ;;  %v4070_v43 = vld [vmem:[#allocation13 + $0xcc] sm:$0xf0]  ;;  %1551 = vmatpush.bf16.msra.mxu3 %v3399_v18  ;;  %v4056_v18 = vld [vmem:[#allocation13 + $0x64] sm:$0xf] }
 0x19b   :  { %4228 = vtanh.f32 %v1024_v44  ;;  %v4068_v44 = vld [vmem:[#allocation13 + $0xc4] sm:$0xf] }
 0x19c   :  { %v999_v45 = vpop.f32.mrf.mxu2  ;;  %v1012_v48 = vpop.f32.mrf.mxu3 }
 0x19d   :  { %v1018_v49 = vadd.f32 %v999_v45, %v4599_v20  ;;  %v1019_v50 = vadd.f32 %v1012_v48, %v4602_v23  ;;  %v975_v52 = vpop.f32.mrf.mxu0  ;;  %v988_v54 = vpop.f32.mrf.mxu1  ;;  %v3371_v45 = vor.u32 %v4070_v43, %v3370_v41  ;;  %v3372_v48 = vld [vmem:[#allocation13 + $0xd0] sm:$0xf0]  ;;  %v3323_v41 = vor.u32 %v4058_v12, %v3322_v38 }
 0x19e   :  { %v3375_v52 = vor.u32 %v4068_v44, %v3372_v48  ;;  %v3324_v43 = vld [vmem:[#allocation13 + $0x70] sm:$0xf0]  ;;  %v3330_v44 = vld [vmem:[#allocation13 + $0x68] sm:$0xf]  ;;  %v3275_v38 = vor.u32 %v4046_v17, %v3274_v10  ;;  %v3514_v10 = vld [vmem:[#allocation13 + $0xe0] sm:$0xf] }
 0x19f   :  { %4230 = vtanh.f32 %v1018_v49  ;;  %v1029_v57 = vmul.f32 0.5, %v1019_v50  ;;  %v3378_v49 = vld [vmem:[#allocation13 + $0xc8] sm:$0xf]  ;;  %v4071_v50 = vld [vmem:[#allocation13 + $0xd4] sm:$0xf0]  ;;  %v3327_v48 = vor.u32 %v4056_v18, %v3324_v43 }
 0x1a0   :  { %v4227_v58 = vpop.eup %4226  ;;  %v3379_v54 = vor.u32 %v4071_v50, %v3378_v49  ;;  %1526 = vmatpush.bf16.msra.mxu1 %v3375_v52  ;;  %v4057_v50 = vld [vmem:[#allocation13 + $0x6c] sm:$0xf]  ;;  %v3332_v52 = vld [vmem:[#allocation13 + $0x78] sm:$0xf0]  ;;  %v3276_v12 = vld [vmem:[#allocation13 + $0x10] sm:$0xf0] }
 0x1a1   :  { %v4229_v59 = vpop.eup %4228  ;;  %v1022_v60 = vmul.f32 0.5, %v4227_v58  ;;  %4232 = vtanh.f32 %v1029_v57  ;;  %v4069_v57 = vld [vmem:[#allocation13 + $0xcc] sm:$0xf]  ;;  %v3380_v58 = vld [vmem:[#allocation13 + $0xd8] sm:$0xf0] }
 0x1a2   :  { %v1026_v14 = vmul.f32 0.5, %v4229_v59  ;;  %v3383_v59 = vor.u32 %v4069_v57, %v3380_v58  ;;  %1539 = vmatpush.bf16.msra.mxu2 %v3379_v54  ;;  %v3335_v54 = vor.u32 %v4057_v50, %v3332_v52  ;;  %v3306_v57 = vld [vmem:[#allocation13 + $0x40] sm:$0xf]  ;;  %v4054_v58 = vld [vmem:[#allocation13 + $0x4c] sm:$0xf0] }
 0x1a3   :  { %v1023_v16 = vadd.f32 0.5, %v1022_v60  ;;  %v3354_v60 = vld [vmem:[#allocation13 + $0xa0] sm:$0xf]  ;;  %v3282_v18 = vld [vmem:[#allocation13 + $0x8] sm:$0xf] }
 0x1a4   :  { %v1027_v6 = vadd.f32 0.5, %v1026_v14  ;;  %v1001_v9 = vpop.f32.mrf.mxu2  ;;  %v1014_v7 = vpop.f32.mrf.mxu3  ;;  %v4066_v14 = vld [vmem:[#allocation13 + $0xac] sm:$0xf0]  ;;  %1552 = vmatpush.bf16.msra.mxu3 %v3383_v59  ;;  %v4052_v59 = vld [vmem:[#allocation13 + $0x44] sm:$0xf] }
 0x1a5   :  { %v4231_v11 = vpop.eup %4230  ;;  %v3356_v9 = vld [vmem:[#allocation13 + $0xb0] sm:$0xf0]  ;;  %v3362_v7 = vld [vmem:[#allocation13 + $0xa8] sm:$0xf]  ;;  %v4106_v17 = vld [vmem:[#allocation13 + $0xec] sm:$0xf0] }
 0x1a6   :  { %v1033_v62 = vmul.f32 %v1027_v6, %v4684_v42  ;;  %v1034_v1 = vmul.f32 %v4231_v11, %v1023_v16  ;;  %v3387_v42 = vor.u32 %v4074_v27, %v3386_v22  ;;  %v4064_v16 = vld [vmem:[#allocation13 + $0xa4] sm:$0xf]  ;;  %v3355_v6 = vor.u32 %v4066_v14, %v3354_v60  ;;  %v4067_v11 = vld [vmem:[#allocation13 + $0xb4] sm:$0xf0]  ;;  %v3340_v27 = vld [vmem:[#allocation13 + $0x90] sm:$0xf0] }
 0x1a7   :  { %v4233_v20 = vpop.eup %4232  ;;  %v3307_v60 = vor.u32 %v4054_v58, %v3306_v57  ;;  %v3308_v14 = vld [vmem:[#allocation13 + $0x50] sm:$0xf0] }
 0x1a8   :  { %v4692_v2 = vadd.f32 %v1034_v1, %v1033_v62  ;;  %v1031_v23 = vmul.f32 0.5, %v4233_v20  ;;  %1512 = vmatpush.bf16.msra.mxu0 %v3387_v42  ;;  %v3359_v62 = vor.u32 %v4064_v16, %v3356_v9  ;;  %v3363_v1 = vor.u32 %v4067_v11, %v3362_v7  ;;  %v4065_v20 = vld [vmem:[#allocation13 + $0xac] sm:$0xf]  ;;  %v4063_v42 = vld [vmem:[#allocation13 + $0x94] sm:$0xf0] }
 0x1a9   :  { %v3347_v36 = vor.u32 %v4063_v42, %v3346_v33  ;;  %v3314_v16 = vld [vmem:[#allocation13 + $0x48] sm:$0xf]  ;;  %v3311_v9 = vor.u32 %v4052_v59, %v3308_v14  ;;  %v4053_v11 = vld [vmem:[#allocation13 + $0x4c] sm:$0xf] }
 0x1aa   :  { %4234 = vtanh.f32 %v4692_v2  ;;  %v1032_v3 = vadd.f32 0.5, %v1031_v23  ;;  %v3364_v23 = vld [vmem:[#allocation13 + $0xb8] sm:$0xf0]  ;;  %1527 = vmatpush.bf16.msra.mxu1 %v3359_v62  ;;  %1540 = vmatpush.bf16.msra.mxu2 %v3363_v1  ;;  %v4049_v42 = vld [vmem:[#allocation13 + $0x2c] sm:$0xf] }
 0x1ab   :  { %v3316_v62 = vld [vmem:[#allocation13 + $0x58] sm:$0xf0] }
 0x1ac   :  { %1513 = vmatpush.bf16.msra.mxu0 %v3371_v45  ;;  %v4059_v45 = vld [vmem:[#allocation13 + $0x74] sm:$0xf0]  ;;  %v3319_v1 = vor.u32 %v4053_v11, %v3316_v62 }
 0x1ad   :  { %v3331_v49 = vor.u32 %v4059_v45, %v3330_v44  ;;  %v4045_v45 = vld [vmem:[#allocation13 + $0xc] sm:$0xf] }
 0x1ae   :  { %1541 = vmatpush.bf16.msra.mxu2 %v3347_v36 }
 0x1b0   :  { %v4235_v8 = vpop.eup %4234  ;;  %1514 = vmatpush.bf16.msra.mxu0 %v3355_v6  ;;  %v4055_v6 = vld [vmem:[#allocation13 + $0x54] sm:$0xf0] }
 0x1b1   :  { %v1037_v15 = vmul.f32 %v4235_v8, %v1032_v3  ;;  %v3367_v3 = vor.u32 %v4065_v20, %v3364_v23  ;;  %v3338_v8 = vld [vmem:[#allocation13 + $0x80] sm:$0xf]  ;;  %v3315_v7 = vor.u32 %v4055_v6, %v3314_v16  ;;  %v4050_v23 = vld [vmem:[#allocation13 + $0x2c] sm:$0xf0] }
 0x1b2   :  { %1542 = vmatpush.bf16.msra.mxu2 %v3331_v49  ;;  %v3290_v20 = vld [vmem:[#allocation13 + $0x20] sm:$0xf] }
 0x1b3   :  { %v1038_v21 = vpack.c.bf16 %v1037_v15, %v1037_v15  ;;  %v4062_v15 = vld [vmem:[#allocation13 + $0x8c] sm:$0xf0]  ;;  %1553 = vmatpush.bf16.msra.mxu3 %v3367_v3  ;;  %v4048_v3 = vld [vmem:[#allocation13 + $0x24] sm:$0xf] }
 0x1b4   :  { %v3339_v22 = vor.u32 %v4062_v15, %v3338_v8  ;;  %v3291_v8 = vor.u32 %v4050_v23, %v3290_v20  ;;  %v3292_v15 = vld [vmem:[#allocation13 + $0x30] sm:$0xf0] }
 0x1b5   :  { %1040 = vst [vmem:[#allocation14 + $0x4] sm:$0xf] %v1038_v21  ;;  %1246 = vmatmul.bf16.vlgmr.msrb.gmra.mxu0 %v1038_v21  ;;  %1259 = vmatmul.bf16.vlgmr.msrb.gmra.mxu1 %v1038_v21 }
 0x1b6   :  { %1272 = vmatmul.bf16.vlgmr.msrb.gmra.mxu2 %v1038_v21  ;;  %1285 = vmatmul.bf16.vlgmr.msrb.gmra.mxu3 %v1038_v21  ;;  %v4060_v21 = vld [vmem:[#allocation13 + $0x84] sm:$0xf] }
 0x1b7   :  { %v3343_v35 = vor.u32 %v4060_v21, %v3340_v27  ;;  %1515 = vmatpush.bf16.msra.mxu0 %v3339_v22  ;;  %1554 = vmatpush.bf16.msra.mxu3 %v3351_v37  ;;  %v3298_v21 = vld [vmem:[#allocation13 + $0x28] sm:$0xf]  ;;  %v4051_v22 = vld [vmem:[#allocation13 + $0x34] sm:$0xf0]  ;;  %v3295_v27 = vor.u32 %v4048_v3, %v3292_v15  ;;  %v4044_v37 = vld [vmem:[#allocation13 + $0x4] sm:$0xf] }
 0x1b8   :  { %1543 = vmatpush.bf16.msra.mxu2 %v3315_v7  ;;  %v3299_v33 = vor.u32 %v4051_v22, %v3298_v21  ;;  %v3279_v43 = vor.u32 %v4044_v37, %v3276_v12  ;;  %v4104_v37 = vld [vmem:[#allocation13 + $0xe4] sm:$0xf]  ;;  %v3522_v12 = vld [vmem:[#allocation13 + $0xe8] sm:$0xf] }
 0x1b9   :  { %1528 = vmatpush.bf16.msra.mxu1 %v3343_v35  ;;  %v3300_v35 = vld [vmem:[#allocation13 + $0x38] sm:$0xf0] }
 0x1ba   :  { %v3303_v36 = vor.u32 %v4049_v42, %v3300_v35 }
 0x1bb   :  { %1516 = vmatpush.bf16.msra.mxu0 %v3323_v41  ;;  %1555 = vmatpush.bf16.msra.mxu3 %v3335_v54  ;;  %v4047_v41 = vld [vmem:[#allocation13 + $0x14] sm:$0xf0] }
 0x1bc   :  { %1544 = vmatpush.bf16.msra.mxu2 %v3299_v33  ;;  %v3283_v44 = vor.u32 %v4047_v41, %v3282_v18  ;;  %v4107_v18 = vld [vmem:[#allocation13 + $0xf4] sm:$0xf0] }
 0x1bd   :  { %1529 = vmatpush.bf16.msra.mxu1 %v3327_v48  ;;  %v3284_v48 = vld [vmem:[#allocation13 + $0x18] sm:$0xf0] }
 0x1be   :  { %v3287_v49 = vor.u32 %v4045_v45, %v3284_v48  ;;  %v3524_v45 = vld [vmem:[#allocation13 + $0xf8] sm:$0xf0] }
 0x1bf   :  { %1517 = vmatpush.bf16.msra.mxu0 %v3307_v60  ;;  %1556 = vmatpush.bf16.msra.mxu3 %v3319_v1 }
 0x1c0   :  { %1545 = vmatpush.bf16.msra.mxu2 %v3283_v44  ;;  %v4105_v44 = vld [vmem:[#allocation13 + $0xec] sm:$0xf] }
 0x1c1   :  { %1530 = vmatpush.bf16.msra.mxu1 %v3311_v9  ;;  %v3527_v48 = vor.u32 %v4105_v44, %v3524_v45  ;;  %v3452_v44 = vld [vmem:[#allocation13 + $0x70] sm:$0xf0]  ;;  %v3458_v45 = vld [vmem:[#allocation13 + $0x68] sm:$0xf] }
 0x1c3   :  { %1518 = vmatpush.bf16.msra.mxu0 %v3291_v8  ;;  %1557 = vmatpush.bf16.msra.mxu3 %v3303_v36 }
 0x1c5   :  { %1531 = vmatpush.bf16.msra.mxu1 %v3295_v27 }
 0x1c7   :  { %1519 = vmatpush.bf16.msra.mxu0 %v3275_v38  ;;  %1558 = vmatpush.bf16.msra.mxu3 %v3287_v49  ;;  %v3516_v38 = vld [vmem:[#allocation13 + $0xf0] sm:$0xf0]  ;;  %v3498_v49 = vld [vmem:[#allocation13 + $0xc0] sm:$0xf] }
 0x1c8   :  { %v3519_v41 = vor.u32 %v4104_v37, %v3516_v38  ;;  %v4093_v37 = vld [vmem:[#allocation13 + $0x8c] sm:$0xf] }
 0x1c9   :  { %1532 = vmatpush.bf16.msra.mxu1 %v3279_v43  ;;  %v3523_v43 = vor.u32 %v4107_v18, %v3522_v12  ;;  %v3450_v12 = vld [vmem:[#allocation13 + $0x60] sm:$0xf]  ;;  %v4090_v18 = vld [vmem:[#allocation13 + $0x6c] sm:$0xf0] }
 0x1cb   :  { %1812 = vmatpush.bf16.msrb.mxu2 %v3523_v43  ;;  %1825 = vmatpush.bf16.msrb.mxu3 %v3527_v48  ;;  %v3451_v43 = vor.u32 %v4090_v18, %v3450_v12  ;;  %v4091_v48 = vld [vmem:[#allocation13 + $0x74] sm:$0xf0] }
 0x1cd   :  { %1799 = vmatpush.bf16.msrb.mxu1 %v3519_v41  ;;  %v4088_v41 = vld [vmem:[#allocation13 + $0x64] sm:$0xf] }
 0x232   :  { %v1247_v50 = vpop.f32.mrf.mxu0  ;;  %v1260_v52 = vpop.f32.mrf.mxu1 }
 0x233   :  { %v1290_v54 = vadd.f32 %v1247_v50, %v4605_v24  ;;  %v1291_v57 = vadd.f32 %v1260_v52, %v4608_v26  ;;  %v4102_v50 = vld [vmem:[#allocation13 + $0xcc] sm:$0xf0]  ;;  %v4100_v52 = vld [vmem:[#allocation13 + $0xc4] sm:$0xf] }
 0x235   :  { %v1294_v58 = vmul.f32 0.5, %v1290_v54  ;;  %v1298_v59 = vmul.f32 0.5, %v1291_v57  ;;  %v3499_v54 = vor.u32 %v4102_v50, %v3498_v49  ;;  %v3500_v57 = vld [vmem:[#allocation13 + $0xd0] sm:$0xf0]  ;;  %v3455_v49 = vor.u32 %v4088_v41, %v3452_v44  ;;  %v4077_v41 = vld [vmem:[#allocation13 + $0xc] sm:$0xf] }
 0x236   :  { %v3459_v50 = vor.u32 %v4091_v48, %v3458_v45 }
 0x237   :  { %4236 = vtanh.f32 %v1294_v58  ;;  %v3506_v58 = vld [vmem:[#allocation13 + $0xc8] sm:$0xf] }
 0x238   :  { %4238 = vtanh.f32 %v1298_v59  ;;  %v4103_v59 = vld [vmem:[#allocation13 + $0xd4] sm:$0xf0] }
 0x239   :  { %v1273_v60 = vpop.f32.mrf.mxu2  ;;  %v1286_v14 = vpop.f32.mrf.mxu3 }
 0x23a   :  { %v1292_v16 = vadd.f32 %v1273_v60, %v4611_v28  ;;  %v1293_v6 = vadd.f32 %v1286_v14, %v4614_v31  ;;  %v1249_v9 = vpop.f32.mrf.mxu0  ;;  %v1262_v7 = vpop.f32.mrf.mxu1  ;;  %v3503_v60 = vor.u32 %v4100_v52, %v3500_v57  ;;  %v3507_v14 = vor.u32 %v4103_v59, %v3506_v58  ;;  %v4089_v52 = vld [vmem:[#allocation13 + $0x6c] sm:$0xf]  ;;  %v3434_v58 = vld [vmem:[#allocation13 + $0x40] sm:$0xf]  ;;  %v4086_v59 = vld [vmem:[#allocation13 + $0x4c] sm:$0xf0] }
 0x23b   :  { %v3482_v7 = vld [vmem:[#allocation13 + $0xa0] sm:$0xf] }
 0x23c   :  { %4240 = vtanh.f32 %v1292_v16  ;;  %v1303_v11 = vmul.f32 0.5, %v1293_v6  ;;  %v4101_v16 = vld [vmem:[#allocation13 + $0xcc] sm:$0xf]  ;;  %v3508_v6 = vld [vmem:[#allocation13 + $0xd8] sm:$0xf0]  ;;  %1800 = vmatpush.bf16.msrb.mxu1 %v3503_v60  ;;  %1813 = vmatpush.bf16.msrb.mxu2 %v3507_v14  ;;  %v3435_v14 = vor.u32 %v4086_v59, %v3434_v58 }
 0x23d   :  { %v4237_v62 = vpop.eup %4236  ;;  %v3511_v9 = vor.u32 %v4101_v16, %v3508_v6  ;;  %v4084_v60 = vld [vmem:[#allocation13 + $0x44] sm:$0xf]  ;;  %v3436_v16 = vld [vmem:[#allocation13 + $0x50] sm:$0xf0]  ;;  %v3442_v6 = vld [vmem:[#allocation13 + $0x48] sm:$0xf] }
 0x23e   :  { %v4239_v1 = vpop.eup %4238  ;;  %v1296_v20 = vmul.f32 0.5, %v4237_v62  ;;  %4242 = vtanh.f32 %v1303_v11  ;;  %v4098_v11 = vld [vmem:[#allocation13 + $0xac] sm:$0xf0]  ;;  %v4096_v62 = vld [vmem:[#allocation13 + $0xa4] sm:$0xf] }
 0x23f   :  { %v1300_v24 = vmul.f32 0.5, %v4239_v1  ;;  %1826 = vmatpush.bf16.msrb.mxu3 %v3511_v9  ;;  %v3483_v1 = vor.u32 %v4098_v11, %v3482_v7  ;;  %v4087_v9 = vld [vmem:[#allocation13 + $0x54] sm:$0xf0]  ;;  %v3439_v7 = vor.u32 %v4084_v60, %v3436_v16 }
 0x240   :  { %v1297_v26 = vadd.f32 0.5, %v1296_v20  ;;  %v3484_v20 = vld [vmem:[#allocation13 + $0xb0] sm:$0xf0]  ;;  %v3443_v11 = vor.u32 %v4087_v9, %v3442_v6 }
 0x241   :  { %v1301_v23 = vadd.f32 0.5, %v1300_v24  ;;  %v1275_v3 = vpop.f32.mrf.mxu2  ;;  %v1288_v8 = vpop.f32.mrf.mxu3  ;;  %v3490_v24 = vld [vmem:[#allocation13 + $0xa8] sm:$0xf] }
 0x242   :  { %v4241_v15 = vpop.eup %4240  ;;  %v4097_v8 = vld [vmem:[#allocation13 + $0xac] sm:$0xf] }
 0x243   :  { %v1307_v21 = vmul.f32 %v1301_v23, %v4692_v2  ;;  %v1308_v22 = vmul.f32 %v4241_v15, %v1297_v26  ;;  %v3515_v2 = vor.u32 %v4106_v17, %v3514_v10  ;;  %v4099_v26 = vld [vmem:[#allocation13 + $0xb4] sm:$0xf0]  ;;  %v3487_v23 = vor.u32 %v4096_v62, %v3484_v20  ;;  %v3492_v15 = vld [vmem:[#allocation13 + $0xb8] sm:$0xf0]  ;;  %v4085_v62 = vld [vmem:[#allocation13 + $0x4c] sm:$0xf] }
 0x244   :  { %v4243_v28 = vpop.eup %4242  ;;  %v3491_v3 = vor.u32 %v4099_v26, %v3490_v24  ;;  %v3418_v24 = vld [vmem:[#allocation13 + $0x20] sm:$0xf]  ;;  %v4082_v26 = vld [vmem:[#allocation13 + $0x2c] sm:$0xf0] }
 0x245   :  { %v4700_v27 = vadd.f32 %v1308_v22, %v1307_v21  ;;  %v1305_v31 = vmul.f32 0.5, %v4243_v28  ;;  %1786 = vmatpush.bf16.msrb.mxu0 %v3515_v2  ;;  %v3495_v21 = vor.u32 %v4097_v8, %v3492_v15  ;;  %1801 = vmatpush.bf16.msrb.mxu1 %v3487_v23  ;;  %v3466_v22 = vld [vmem:[#allocation13 + $0x80] sm:$0xf]  ;;  %v4094_v28 = vld [vmem:[#allocation13 + $0x8c] sm:$0xf0] }
 0x246   :  { %1814 = vmatpush.bf16.msrb.mxu2 %v3491_v3  ;;  %v3476_v2 = vld [vmem:[#allocation13 + $0x98] sm:$0xf0]  ;;  %v4080_v23 = vld [vmem:[#allocation13 + $0x24] sm:$0xf]  ;;  %v3419_v3 = vor.u32 %v4082_v26, %v3418_v24  ;;  %v3420_v8 = vld [vmem:[#allocation13 + $0x30] sm:$0xf0] }
 0x247   :  { %4244 = vtanh.f32 %v4700_v27  ;;  %v1306_v33 = vadd.f32 0.5, %v1305_v31  ;;  %v4092_v31 = vld [vmem:[#allocation13 + $0x84] sm:$0xf]  ;;  %1827 = vmatpush.bf16.msrb.mxu3 %v3495_v21  ;;  %v3479_v38 = vor.u32 %v4093_v37, %v3476_v2  ;;  %v3426_v15 = vld [vmem:[#allocation13 + $0x28] sm:$0xf] }
 0x248   :  { %v4083_v21 = vld [vmem:[#allocation13 + $0x34] sm:$0xf0]  ;;  %v3404_v37 = vld [vmem:[#allocation13 + $0x10] sm:$0xf0]  ;;  %v3410_v2 = vld [vmem:[#allocation13 + $0x8] sm:$0xf] }
 0x249   :  { %1787 = vmatpush.bf16.msrb.mxu0 %v3499_v54  ;;  %v3460_v54 = vld [vmem:[#allocation13 + $0x78] sm:$0xf0] }
 0x24a   :  { %v3463_v57 = vor.u32 %v4089_v52, %v3460_v54 }
 0x24b   :  { %1828 = vmatpush.bf16.msrb.mxu3 %v3479_v38  ;;  %v4079_v38 = vld [vmem:[#allocation13 + $0x14] sm:$0xf0] }
 0x24c   :  { %v3411_v18 = vor.u32 %v4079_v38, %v3410_v2  ;;  %v3652_v2 = vld [vmem:[#allocation13 + $0xf8] sm:$0xf0] }
 0x24d   :  { %v4245_v42 = vpop.eup %4244  ;;  %1788 = vmatpush.bf16.msrb.mxu0 %v3483_v1  ;;  %v3444_v1 = vld [vmem:[#allocation13 + $0x58] sm:$0xf0] }
 0x24e   :  { %v1311_v35 = vmul.f32 %v4245_v42, %v1306_v33  ;;  %v3467_v33 = vor.u32 %v4094_v28, %v3466_v22  ;;  %v3468_v42 = vld [vmem:[#allocation13 + $0x90] sm:$0xf0]  ;;  %v3447_v20 = vor.u32 %v4085_v62, %v3444_v1  ;;  %v3423_v22 = vor.u32 %v4080_v23, %v3420_v8 }
 0x24f   :  { %v3471_v10 = vor.u32 %v4092_v31, %v3468_v42  ;;  %1829 = vmatpush.bf16.msrb.mxu3 %v3463_v57  ;;  %v3427_v28 = vor.u32 %v4083_v21, %v3426_v15  ;;  %v4081_v31 = vld [vmem:[#allocation13 + $0x2c] sm:$0xf] }
 0x250   :  { %v1312_v36 = vpack.c.bf16 %v1311_v35, %v1311_v35  ;;  %v3474_v35 = vld [vmem:[#allocation13 + $0x88] sm:$0xf] }
 0x251   :  { %1789 = vmatpush.bf16.msrb.mxu0 %v3467_v33  ;;  %1802 = vmatpush.bf16.msrb.mxu1 %v3471_v10  ;;  %v3428_v33 = vld [vmem:[#allocation13 + $0x38] sm:$0xf0]  ;;  %v4076_v10 = vld [vmem:[#allocation13 + $0x4] sm:$0xf] }
 0x252   :  { %1314 = vst [vmem:[#allocation14 + $0x8] sm:$0xf] %v1312_v36  ;;  %1520 = vmatmul.bf16.vlgmr.msra.gmra.mxu0 %v1312_v36  ;;  %1533 = vmatmul.bf16.vlgmr.msra.gmra.mxu1 %v1312_v36  ;;  %v3431_v42 = vor.u32 %v4081_v31, %v3428_v33  ;;  %v3407_v12 = vor.u32 %v4076_v10, %v3404_v37  ;;  %v4138_v31 = vld [vmem:[#allocation13 + $0xec] sm:$0xf0]  ;;  %v4136_v33 = vld [vmem:[#allocation13 + $0xe4] sm:$0xf] }
 0x253   :  { %1546 = vmatmul.bf16.vlgmr.msra.gmra.mxu2 %v1312_v36  ;;  %1559 = vmatmul.bf16.vlgmr.msra.gmra.mxu3 %v1312_v36  ;;  %v4095_v36 = vld [vmem:[#allocation13 + $0x94] sm:$0xf0]  ;;  %v4137_v37 = vld [vmem:[#allocation13 + $0xec] sm:$0xf] }
 0x254   :  { %v3475_v17 = vor.u32 %v4095_v36, %v3474_v35  ;;  %1830 = vmatpush.bf16.msrb.mxu3 %v3447_v20  ;;  %v3402_v35 = vld [vmem:[#allocation13] sm:$0xf]  ;;  %v4078_v36 = vld [vmem:[#allocation13 + $0xc] sm:$0xf0]  ;;  %v3655_v38 = vor.u32 %v4137_v37, %v3652_v2  ;;  %v4121_v2 = vld [vmem:[#allocation13 + $0x6c] sm:$0xf] }
 0x255   :  { %1790 = vmatpush.bf16.msrb.mxu0 %v3451_v43  ;;  %1803 = vmatpush.bf16.msrb.mxu1 %v3455_v49  ;;  %v3412_v43 = vld [vmem:[#allocation13 + $0x18] sm:$0xf0] }
 0x256   :  { %1815 = vmatpush.bf16.msrb.mxu2 %v3475_v17  ;;  %v3403_v17 = vor.u32 %v4078_v36, %v3402_v35  ;;  %v3415_v44 = vor.u32 %v4077_v41, %v3412_v43  ;;  %v3650_v35 = vld [vmem:[#allocation13 + $0xe8] sm:$0xf]  ;;  %v4139_v36 = vld [vmem:[#allocation13 + $0xf4] sm:$0xf0]  ;;  %v4132_v41 = vld [vmem:[#allocation13 + $0xc4] sm:$0xf] }
 0x258   :  { %1831 = vmatpush.bf16.msrb.mxu3 %v3431_v42  ;;  %v3644_v42 = vld [vmem:[#allocation13 + $0xf0] sm:$0xf0] }
 0x259   :  { %1791 = vmatpush.bf16.msrb.mxu0 %v3435_v14  ;;  %1804 = vmatpush.bf16.msrb.mxu1 %v3439_v7  ;;  %v3647_v10 = vor.u32 %v4136_v33, %v3644_v42  ;;  %v4122_v33 = vld [vmem:[#allocation13 + $0x6c] sm:$0xf0] }
 0x25a   :  { %1816 = vmatpush.bf16.msrb.mxu2 %v3459_v50 }
 0x25c   :  { %1832 = vmatpush.bf16.msrb.mxu3 %v3415_v44  ;;  %v3628_v44 = vld [vmem:[#allocation13 + $0xd0] sm:$0xf0] }
 0x25d   :  { %1792 = vmatpush.bf16.msrb.mxu0 %v3419_v3  ;;  %1805 = vmatpush.bf16.msrb.mxu1 %v3423_v22 }
 0x25e   :  { %1817 = vmatpush.bf16.msrb.mxu2 %v3443_v11 }
 0x260   :  { %2099 = vmatpush.bf16.msra.mxu3 %v3655_v38  ;;  %v3588_v38 = vld [vmem:[#allocation13 + $0x78] sm:$0xf0] }
 0x261   :  { %1793 = vmatpush.bf16.msrb.mxu0 %v3403_v17  ;;  %1806 = vmatpush.bf16.msrb.mxu1 %v3407_v12  ;;  %v3651_v17 = vor.u32 %v4139_v36, %v3650_v35  ;;  %v3626_v12 = vld [vmem:[#allocation13 + $0xc0] sm:$0xf]  ;;  %v3580_v35 = vld [vmem:[#allocation13 + $0x70] sm:$0xf0]  ;;  %v3586_v36 = vld [vmem:[#allocation13 + $0x68] sm:$0xf] }
 0x262   :  { %1818 = vmatpush.bf16.msrb.mxu2 %v3427_v28  ;;  %v3642_v28 = vld [vmem:[#allocation13 + $0xe0] sm:$0xf] }
 0x265   :  { %2073 = vmatpush.bf16.msra.mxu1 %v3647_v10  ;;  %v4123_v10 = vld [vmem:[#allocation13 + $0x74] sm:$0xf0] }
 0x266   :  { %1819 = vmatpush.bf16.msrb.mxu2 %v3411_v18  ;;  %v4134_v18 = vld [vmem:[#allocation13 + $0xcc] sm:$0xf0]  ;;  %v3587_v37 = vor.u32 %v4123_v10, %v3586_v36 }
 0x267   :  { %v3627_v43 = vor.u32 %v4134_v18, %v3626_v12  ;;  %v3591_v12 = vor.u32 %v4121_v2, %v3588_v38  ;;  %v3562_v18 = vld [vmem:[#allocation13 + $0x40] sm:$0xf] }
 0x26a   :  { %2086 = vmatpush.bf16.msra.mxu2 %v3651_v17 }
 0x2cf   :  { %v1521_v45 = vpop.f32.mrf.mxu0  ;;  %v1534_v48 = vpop.f32.mrf.mxu1 }
 0x2d0   :  { %v1564_v49 = vadd.f32 %v1521_v45, %v4617_v32  ;;  %v1565_v50 = vadd.f32 %v1534_v48, %v4620_v34  ;;  %v3634_v45 = vld [vmem:[#allocation13 + $0xc8] sm:$0xf]  ;;  %v4135_v48 = vld [vmem:[#allocation13 + $0xd4] sm:$0xf0] }
 0x2d2   :  { %v1568_v52 = vmul.f32 0.5, %v1564_v49  ;;  %v1572_v54 = vmul.f32 0.5, %v1565_v50  ;;  %v3631_v49 = vor.u32 %v4132_v41, %v3628_v44  ;;  %v3635_v50 = vor.u32 %v4135_v48, %v3634_v45  ;;  %v4118_v41 = vld [vmem:[#allocation13 + $0x4c] sm:$0xf0]  ;;  %v3564_v45 = vld [vmem:[#allocation13 + $0x50] sm:$0xf0] }
 0x2d3   :  { %v3563_v44 = vor.u32 %v4118_v41, %v3562_v18  ;;  %v3570_v48 = vld [vmem:[#allocation13 + $0x48] sm:$0xf] }
 0x2d4   :  { %4246 = vtanh.f32 %v1568_v52  ;;  %v4133_v52 = vld [vmem:[#allocation13 + $0xcc] sm:$0xf]  ;;  %2074 = vmatpush.bf16.msra.mxu1 %v3631_v49  ;;  %2087 = vmatpush.bf16.msra.mxu2 %v3635_v50  ;;  %v4119_v49 = vld [vmem:[#allocation13 + $0x54] sm:$0xf0] }
 0x2d5   :  { %4248 = vtanh.f32 %v1572_v54  ;;  %v3636_v54 = vld [vmem:[#allocation13 + $0xd8] sm:$0xf0] }
 0x2d6   :  { %v1547_v57 = vpop.f32.mrf.mxu2  ;;  %v1560_v58 = vpop.f32.mrf.mxu3 }
 0x2d7   :  { %v1566_v59 = vadd.f32 %v1547_v57, %v4623_v39  ;;  %v1567_v60 = vadd.f32 %v1560_v58, %v4626_v46  ;;  %v1523_v14 = vpop.f32.mrf.mxu0  ;;  %v1536_v16 = vpop.f32.mrf.mxu1  ;;  %v3639_v57 = vor.u32 %v4133_v52, %v3636_v54  ;;  %v3610_v58 = vld [vmem:[#allocation13 + $0xa0] sm:$0xf]  ;;  %v3571_v52 = vor.u32 %v4119_v49, %v3570_v48  ;;  %v4117_v54 = vld [vmem:[#allocation13 + $0x4c] sm:$0xf] }
 0x2d8   :  { %v3612_v16 = vld [vmem:[#allocation13 + $0xb0] sm:$0xf0] }
 0x2d9   :  { %4250 = vtanh.f32 %v1566_v59  ;;  %v1577_v6 = vmul.f32 0.5, %v1567_v60  ;;  %v4130_v59 = vld [vmem:[#allocation13 + $0xac] sm:$0xf0]  ;;  %v4128_v60 = vld [vmem:[#allocation13 + $0xa4] sm:$0xf]  ;;  %2100 = vmatpush.bf16.msra.mxu3 %v3639_v57 }
 0x2da   :  { %v4247_v9 = vpop.eup %4246  ;;  %v3611_v14 = vor.u32 %v4130_v59, %v3610_v58  ;;  %v3572_v57 = vld [vmem:[#allocation13 + $0x58] sm:$0xf0]  ;;  %v3546_v59 = vld [vmem:[#allocation13 + $0x20] sm:$0xf] }
 0x2db   :  { %v4249_v7 = vpop.eup %4248  ;;  %v1570_v11 = vmul.f32 0.5, %v4247_v9  ;;  %4252 = vtanh.f32 %v1577_v6  ;;  %v3618_v6 = vld [vmem:[#allocation13 + $0xa8] sm:$0xf]  ;;  %v4131_v9 = vld [vmem:[#allocation13 + $0xb4] sm:$0xf0]  ;;  %v3575_v58 = vor.u32 %v4117_v54, %v3572_v57 }
 0x2dc   :  { %v1574_v32 = vmul.f32 0.5, %v4249_v7  ;;  %v3615_v7 = vor.u32 %v4128_v60, %v3612_v16  ;;  %v4114_v60 = vld [vmem:[#allocation13 + $0x2c] sm:$0xf0] }
 0x2dd   :  { %v1571_v34 = vadd.f32 0.5, %v1570_v11  ;;  %v3619_v11 = vor.u32 %v4131_v9, %v3618_v6  ;;  %v3547_v16 = vor.u32 %v4114_v60, %v3546_v59  ;;  %v3548_v6 = vld [vmem:[#allocation13 + $0x30] sm:$0xf0]  ;;  %v3554_v9 = vld [vmem:[#allocation13 + $0x28] sm:$0xf] }
 0x2de   :  { %v1575_v62 = vadd.f32 0.5, %v1574_v32  ;;  %v1549_v1 = vpop.f32.mrf.mxu2  ;;  %v1562_v20 = vpop.f32.mrf.mxu3  ;;  %v4129_v32 = vld [vmem:[#allocation13 + $0xac] sm:$0xf]  ;;  %2075 = vmatpush.bf16.msra.mxu1 %v3615_v7  ;;  %v4115_v7 = vld [vmem:[#allocation13 + $0x34] sm:$0xf0] }
 0x2df   :  { %v4251_v24 = vpop.eup %4250  ;;  %2088 = vmatpush.bf16.msra.mxu2 %v3619_v11  ;;  %v3594_v1 = vld [vmem:[#allocation13 + $0x80] sm:$0xf]  ;;  %v4126_v20 = vld [vmem:[#allocation13 + $0x8c] sm:$0xf0] }
 0x2e0   :  { %v1581_v26 = vmul.f32 %v1575_v62, %v4700_v27  ;;  %v1582_v23 = vmul.f32 %v4251_v24, %v1571_v34  ;;  %v3643_v27 = vor.u32 %v4138_v31, %v3642_v28  ;;  %v3620_v34 = vld [vmem:[#allocation13 + $0xb8] sm:$0xf0]  ;;  %v4124_v24 = vld [vmem:[#allocation13 + $0x84] sm:$0xf]  ;;  %v3578_v31 = vld [vmem:[#allocation13 + $0x60] sm:$0xf] }
 0x2e1   :  { %v4253_v39 = vpop.eup %4252  ;;  %v3623_v62 = vor.u32 %v4129_v32, %v3620_v34  ;;  %v3579_v42 = vor.u32 %v4122_v33, %v3578_v31  ;;  %v3555_v32 = vor.u32 %v4115_v7, %v3554_v9  ;;  %v4113_v34 = vld [vmem:[#allocation13 + $0x2c] sm:$0xf]  ;;  %v4170_v9 = vld [vmem:[#allocation13 + $0xec] sm:$0xf0]  ;;  %v4168_v7 = vld [vmem:[#allocation13 + $0xe4] sm:$0xf] }
 0x2e2   :  { %v4708_v3 = vadd.f32 %v1582_v23, %v1581_v26  ;;  %v1579_v46 = vmul.f32 0.5, %v4253_v39  ;;  %2060 = vmatpush.bf16.msra.mxu0 %v3643_v27  ;;  %v3595_v26 = vor.u32 %v4126_v20, %v3594_v1  ;;  %v3596_v23 = vld [vmem:[#allocation13 + $0x90] sm:$0xf0]  ;;  %v3602_v39 = vld [vmem:[#allocation13 + $0x88] sm:$0xf] }
 0x2e3   :  { %2101 = vmatpush.bf16.msra.mxu3 %v3623_v62  ;;  %v4120_v27 = vld [vmem:[#allocation13 + $0x64] sm:$0xf]  ;;  %v3556_v62 = vld [vmem:[#allocation13 + $0x38] sm:$0xf0]  ;;  %v3530_v20 = vld [vmem:[#allocation13] sm:$0xf] }
 0x2e4   :  { %4254 = vtanh.f32 %v4708_v3  ;;  %v1580_v8 = vadd.f32 0.5, %v1579_v46  ;;  %v4127_v46 = vld [vmem:[#allocation13 + $0x94] sm:$0xf0]  ;;  %v3583_v17 = vor.u32 %v4120_v27, %v3580_v35  ;;  %v3559_v1 = vor.u32 %v4113_v34, %v3556_v62 }
 0x2e5   :  { %v4171_v34 = vld [vmem:[#allocation13 + $0xf4] sm:$0xf0] }
 0x2e6   :  { %2061 = vmatpush.bf16.msra.mxu0 %v3627_v43  ;;  %v4116_v43 = vld [vmem:[#allocation13 + $0x44] sm:$0xf] }
 0x2e7   :  { %v3567_v50 = vor.u32 %v4116_v43, %v3564_v45 }
 0x2ea   :  { %v4255_v15 = vpop.eup %4254  ;;  %2062 = vmatpush.bf16.msra.mxu0 %v3611_v14  ;;  %v4112_v14 = vld [vmem:[#allocation13 + $0x24] sm:$0xf] }
 0x2eb   :  { %v1585_v21 = vmul.f32 %v4255_v15, %v1580_v8  ;;  %v3599_v8 = vor.u32 %v4124_v24, %v3596_v23  ;;  %v3603_v15 = vor.u32 %v4127_v46, %v3602_v39  ;;  %v3551_v11 = vor.u32 %v4112_v14, %v3548_v6  ;;  %v4110_v24 = vld [vmem:[#allocation13 + $0xc] sm:$0xf0]  ;;  %v3532_v39 = vld [vmem:[#allocation13 + $0x10] sm:$0xf0]  ;;  %v3538_v46 = vld [vmem:[#allocation13 + $0x8] sm:$0xf] }
 0x2ec   :  { %v3531_v23 = vor.u32 %v4110_v24, %v3530_v20  ;;  %v3770_v6 = vld [vmem:[#allocation13 + $0xe0] sm:$0xf]  ;;  %v4169_v20 = vld [vmem:[#allocation13 + $0xec] sm:$0xf]  ;;  %v3780_v24 = vld [vmem:[#allocation13 + $0xf8] sm:$0xf0] }
 0x2ed   :  { %v1586_v22 = vpack.c.bf16 %v1585_v21, %v1585_v21  ;;  %v4125_v21 = vld [vmem:[#allocation13 + $0x8c] sm:$0xf]  ;;  %2076 = vmatpush.bf16.msra.mxu1 %v3599_v8  ;;  %2089 = vmatpush.bf16.msra.mxu2 %v3603_v15  ;;  %v4111_v8 = vld [vmem:[#allocation13 + $0x14] sm:$0xf0] }
 0x2ee   :  { %2063 = vmatpush.bf16.msra.mxu0 %v3595_v26  ;;  %v4108_v26 = vld [vmem:[#allocation13 + $0x4] sm:$0xf] }
 0x2ef   :  { %1588 = vst [vmem:[#allocation14 + $0xc] sm:$0xf] %v1586_v22  ;;  %1794 = vmatmul.bf16.vlgmr.msrb.gmra.mxu0 %v1586_v22  ;;  %1807 = vmatmul.bf16.vlgmr.msrb.gmra.mxu1 %v1586_v22  ;;  %v3535_v15 = vor.u32 %v4108_v26, %v3532_v39  ;;  %v3783_v26 = vor.u32 %v4169_v20, %v3780_v24  ;;  %v4166_v39 = vld [vmem:[#allocation13 + $0xcc] sm:$0xf0]  ;;  %v3690_v20 = vld [vmem:[#allocation13 + $0x40] sm:$0xf] }
 0x2f0   :  { %1820 = vmatmul.bf16.vlgmr.msrb.gmra.mxu2 %v1586_v22  ;;  %1833 = vmatmul.bf16.vlgmr.msrb.gmra.mxu3 %v1586_v22  ;;  %v3604_v22 = vld [vmem:[#allocation13 + $0x98] sm:$0xf0]  ;;  %v4150_v24 = vld [vmem:[#allocation13 + $0x4c] sm:$0xf0] }
 0x2f1   :  { %v3607_v28 = vor.u32 %v4125_v21, %v3604_v22  ;;  %2077 = vmatpush.bf16.msra.mxu1 %v3583_v17  ;;  %2090 = vmatpush.bf16.msra.mxu2 %v3587_v37  ;;  %v3539_v21 = vor.u32 %v4111_v8, %v3538_v46  ;;  %v4109_v22 = vld [vmem:[#allocation13 + $0xc] sm:$0xf]  ;;  %v4164_v46 = vld [vmem:[#allocation13 + $0xc4] sm:$0xf] }
 0x2f2   :  { %2064 = vmatpush.bf16.msra.mxu0 %v3579_v42 }
 0x2f3   :  { %2102 = vmatpush.bf16.msra.mxu3 %v3607_v28  ;;  %v3540_v28 = vld [vmem:[#allocation13 + $0x18] sm:$0xf0] }
 0x2f4   :  { %v3543_v31 = vor.u32 %v4109_v22, %v3540_v28  ;;  %v4167_v22 = vld [vmem:[#allocation13 + $0xd4] sm:$0xf0] }
 0x2f5   :  { %2078 = vmatpush.bf16.msra.mxu1 %v3567_v50  ;;  %2091 = vmatpush.bf16.msra.mxu2 %v3571_v52 }
 0x2f6   :  { %2065 = vmatpush.bf16.msra.mxu0 %v3563_v44 }
 0x2f7   :  { %2103 = vmatpush.bf16.msra.mxu3 %v3591_v12 }
 0x2f9   :  { %2079 = vmatpush.bf16.msra.mxu1 %v3551_v11  ;;  %2092 = vmatpush.bf16.msra.mxu2 %v3555_v32  ;;  %v3772_v11 = vld [vmem:[#allocation13 + $0xf0] sm:$0xf0]  ;;  %v3778_v32 = vld [vmem:[#allocation13 + $0xe8] sm:$0xf] }
 0x2fa   :  { %2066 = vmatpush.bf16.msra.mxu0 %v3547_v16  ;;  %v3775_v62 = vor.u32 %v4168_v7, %v3772_v11  ;;  %v3714_v7 = vld [vmem:[#allocation13 + $0x68] sm:$0xf] }
 0x2fb   :  { %2104 = vmatpush.bf16.msra.mxu3 %v3575_v58 }
 0x2fd   :  { %2080 = vmatpush.bf16.msra.mxu1 %v3535_v15  ;;  %2093 = vmatpush.bf16.msra.mxu2 %v3539_v21  ;;  %v3756_v15 = vld [vmem:[#allocation13 + $0xd0] sm:$0xf0]  ;;  %v3762_v21 = vld [vmem:[#allocation13 + $0xc8] sm:$0xf] }
 0x2fe   :  { %2067 = vmatpush.bf16.msra.mxu0 %v3531_v23  ;;  %v3754_v23 = vld [vmem:[#allocation13 + $0xc0] sm:$0xf]  ;;  %v3759_v28 = vor.u32 %v4164_v46, %v3756_v15  ;;  %v3698_v46 = vld [vmem:[#allocation13 + $0x48] sm:$0xf] }
 0x2ff   :  { %2105 = vmatpush.bf16.msra.mxu3 %v3559_v1  ;;  %v3779_v1 = vor.u32 %v4171_v34, %v3778_v32  ;;  %v3755_v8 = vor.u32 %v4166_v39, %v3754_v23  ;;  %v4153_v34 = vld [vmem:[#allocation13 + $0x6c] sm:$0xf]  ;;  %v3691_v23 = vor.u32 %v4150_v24, %v3690_v20  ;;  %v3692_v39 = vld [vmem:[#allocation13 + $0x50] sm:$0xf0] }
 0x301   :  { %2347 = vmatpush.bf16.msrb.mxu1 %v3775_v62  ;;  %2360 = vmatpush.bf16.msrb.mxu2 %v3779_v1  ;;  %v3716_v62 = vld [vmem:[#allocation13 + $0x78] sm:$0xf0] }
 0x302   :  { %v3719_v1 = vor.u32 %v4153_v34, %v3716_v62 }
 0x303   :  { %2106 = vmatpush.bf16.msra.mxu3 %v3543_v31  ;;  %v3763_v31 = vor.u32 %v4167_v22, %v3762_v21  ;;  %v4149_v22 = vld [vmem:[#allocation13 + $0x4c] sm:$0xf] }
 0x305   :  { %2348 = vmatpush.bf16.msrb.mxu1 %v3759_v28  ;;  %2361 = vmatpush.bf16.msrb.mxu2 %v3763_v31  ;;  %v3700_v28 = vld [vmem:[#allocation13 + $0x58] sm:$0xf0] }
 0x306   :  { %v3703_v31 = vor.u32 %v4149_v22, %v3700_v28 }
 0x307   :  { %2373 = vmatpush.bf16.msrb.mxu3 %v3783_v26  ;;  %v4148_v26 = vld [vmem:[#allocation13 + $0x44] sm:$0xf] }
 0x308   :  { %v3695_v15 = vor.u32 %v4148_v26, %v3692_v39 }
 0x36c   :  { %v1795_v33 = vpop.f32.mrf.mxu0  ;;  %v1808_v27 = vpop.f32.mrf.mxu1 }
 0x36d   :  { %v1838_v42 = vadd.f32 %v1795_v33, %v4629_v47  ;;  %v1839_v35 = vadd.f32 %v1808_v27, %v4632_v53  ;;  %v4165_v33 = vld [vmem:[#allocation13 + $0xcc] sm:$0xf]  ;;  %v3764_v27 = vld [vmem:[#allocation13 + $0xd8] sm:$0xf0] }
 0x36f   :  { %v1842_v36 = vmul.f32 0.5, %v1838_v42  ;;  %v1846_v10 = vmul.f32 0.5, %v1839_v35  ;;  %v3767_v42 = vor.u32 %v4165_v33, %v3764_v27  ;;  %v3738_v35 = vld [vmem:[#allocation13 + $0xa0] sm:$0xf]  ;;  %v4146_v27 = vld [vmem:[#allocation13 + $0x2c] sm:$0xf0] }
 0x370   :  { %v3674_v33 = vld [vmem:[#allocation13 + $0x20] sm:$0xf] }
 0x371   :  { %4256 = vtanh.f32 %v1842_v36  ;;  %v4162_v36 = vld [vmem:[#allocation13 + $0xac] sm:$0xf0]  ;;  %2374 = vmatpush.bf16.msrb.mxu3 %v3767_v42  ;;  %v4144_v42 = vld [vmem:[#allocation13 + $0x24] sm:$0xf] }
 0x372   :  { %4258 = vtanh.f32 %v1846_v10  ;;  %v4160_v10 = vld [vmem:[#allocation13 + $0xa4] sm:$0xf] }
 0x373   :  { %v1821_v17 = vpop.f32.mrf.mxu2  ;;  %v1834_v37 = vpop.f32.mrf.mxu3 }
 0x374   :  { %v1840_v2 = vadd.f32 %v1821_v17, %v4635_v13  ;;  %v1841_v38 = vadd.f32 %v1834_v37, %v4638_v29  ;;  %v1797_v12 = vpop.f32.mrf.mxu0  ;;  %v1810_v18 = vpop.f32.mrf.mxu1  ;;  %v3739_v17 = vor.u32 %v4162_v36, %v3738_v35  ;;  %v3740_v37 = vld [vmem:[#allocation13 + $0xb0] sm:$0xf0]  ;;  %v3675_v35 = vor.u32 %v4146_v27, %v3674_v33  ;;  %v3898_v33 = vld [vmem:[#allocation13 + $0xe0] sm:$0xf]  ;;  %v4202_v27 = vld [vmem:[#allocation13 + $0xec] sm:$0xf0] }
 0x375   :  { %v3743_v12 = vor.u32 %v4160_v10, %v3740_v37  ;;  %v3676_v36 = vld [vmem:[#allocation13 + $0x30] sm:$0xf0]  ;;  %v3682_v10 = vld [vmem:[#allocation13 + $0x28] sm:$0xf] }
 0x376   :  { %4260 = vtanh.f32 %v1840_v2  ;;  %v1851_v41 = vmul.f32 0.5, %v1841_v38  ;;  %v3746_v2 = vld [vmem:[#allocation13 + $0xa8] sm:$0xf]  ;;  %v4163_v38 = vld [vmem:[#allocation13 + $0xb4] sm:$0xf0]  ;;  %v3679_v37 = vor.u32 %v4144_v42, %v3676_v36 }
 0x377   :  { %v4257_v43 = vpop.eup %4256  ;;  %v3747_v18 = vor.u32 %v4163_v38, %v3746_v2  ;;  %2349 = vmatpush.bf16.msrb.mxu1 %v3743_v12  ;;  %v4145_v38 = vld [vmem:[#allocation13 + $0x2c] sm:$0xf]  ;;  %v3684_v12 = vld [vmem:[#allocation13 + $0x38] sm:$0xf0]  ;;  %v4200_v42 = vld [vmem:[#allocation13 + $0xe4] sm:$0xf] }
 0x378   :  { %v4259_v44 = vpop.eup %4258  ;;  %v1844_v45 = vmul.f32 0.5, %v4257_v43  ;;  %4262 = vtanh.f32 %v1851_v41  ;;  %v4161_v41 = vld [vmem:[#allocation13 + $0xac] sm:$0xf]  ;;  %v3748_v43 = vld [vmem:[#allocation13 + $0xb8] sm:$0xf0] }
 0x379   :  { %v1848_v47 = vmul.f32 0.5, %v4259_v44  ;;  %v3751_v44 = vor.u32 %v4161_v41, %v3748_v43  ;;  %2362 = vmatpush.bf16.msrb.mxu2 %v3747_v18  ;;  %v3687_v18 = vor.u32 %v4145_v38, %v3684_v12  ;;  %v3658_v41 = vld [vmem:[#allocation13] sm:$0xf]  ;;  %v4142_v43 = vld [vmem:[#allocation13 + $0xc] sm:$0xf0] }
 0x37a   :  { %v1845_v53 = vadd.f32 0.5, %v1844_v45  ;;  %v3722_v45 = vld [vmem:[#allocation13 + $0x80] sm:$0xf]  ;;  %v3906_v36 = vld [vmem:[#allocation13 + $0xe8] sm:$0xf] }
 0x37b   :  { %v1849_v48 = vadd.f32 0.5, %v1848_v47  ;;  %v1823_v49 = vpop.f32.mrf.mxu2  ;;  %v1836_v50 = vpop.f32.mrf.mxu3  ;;  %v4158_v47 = vld [vmem:[#allocation13 + $0x8c] sm:$0xf0]  ;;  %2375 = vmatpush.bf16.msrb.mxu3 %v3751_v44  ;;  %v4140_v44 = vld [vmem:[#allocation13 + $0x4] sm:$0xf] }
 0x37c   :  { %v4261_v52 = vpop.eup %4260  ;;  %v3724_v49 = vld [vmem:[#allocation13 + $0x90] sm:$0xf0]  ;;  %v3730_v50 = vld [vmem:[#allocation13 + $0x88] sm:$0xf]  ;;  %v3908_v38 = vld [vmem:[#allocation13 + $0xf8] sm:$0xf0] }
 0x37d   :  { %v1855_v54 = vmul.f32 %v1849_v48, %v4708_v3  ;;  %v1856_v57 = vmul.f32 %v4261_v52, %v1845_v53  ;;  %v3771_v3 = vor.u32 %v4170_v9, %v3770_v6  ;;  %v4156_v53 = vld [vmem:[#allocation13 + $0x84] sm:$0xf]  ;;  %v3723_v48 = vor.u32 %v4158_v47, %v3722_v45  ;;  %v4159_v52 = vld [vmem:[#allocation13 + $0x94] sm:$0xf0]  ;;  %v3708_v9 = vld [vmem:[#allocation13 + $0x70] sm:$0xf0] }
 0x37e   :  { %v4263_v13 = vpop.eup %4262  ;;  %v3659_v45 = vor.u32 %v4142_v43, %v3658_v41  ;;  %v3660_v47 = vld [vmem:[#allocation13 + $0x10] sm:$0xf0]  ;;  %v4198_v41 = vld [vmem:[#allocation13 + $0xcc] sm:$0xf0]  ;;  %v4196_v43 = vld [vmem:[#allocation13 + $0xc4] sm:$0xf] }
 0x37f   :  { %v4716_v58 = vadd.f32 %v1856_v57, %v1855_v54  ;;  %v1853_v29 = vmul.f32 0.5, %v4263_v13  ;;  %2334 = vmatpush.bf16.msrb.mxu0 %v3771_v3  ;;  %v3727_v54 = vor.u32 %v4156_v53, %v3724_v49  ;;  %v3731_v57 = vor.u32 %v4159_v52, %v3730_v50  ;;  %v4157_v13 = vld [vmem:[#allocation13 + $0x8c] sm:$0xf]  ;;  %v4155_v3 = vld [vmem:[#allocation13 + $0x74] sm:$0xf0] }
 0x380   :  { %v3715_v32 = vor.u32 %v4155_v3, %v3714_v7  ;;  %v3666_v53 = vld [vmem:[#allocation13 + $0x8] sm:$0xf]  ;;  %v3663_v49 = vor.u32 %v4140_v44, %v3660_v47  ;;  %v4141_v52 = vld [vmem:[#allocation13 + $0xc] sm:$0xf] }
 0x381   :  { %4264 = vtanh.f32 %v4716_v58  ;;  %v1854_v59 = vadd.f32 0.5, %v1853_v29  ;;  %v3732_v29 = vld [vmem:[#allocation13 + $0x98] sm:$0xf0]  ;;  %2350 = vmatpush.bf16.msrb.mxu1 %v3727_v54  ;;  %2363 = vmatpush.bf16.msrb.mxu2 %v3731_v57  ;;  %v3890_v47 = vld [vmem:[#allocation13 + $0xc8] sm:$0xf] }
 0x382   :  { %v3668_v54 = vld [vmem:[#allocation13 + $0x18] sm:$0xf0] }
 0x383   :  { %2335 = vmatpush.bf16.msrb.mxu0 %v3755_v8  ;;  %v4151_v8 = vld [vmem:[#allocation13 + $0x54] sm:$0xf0]  ;;  %v3671_v57 = vor.u32 %v4141_v52, %v3668_v54  ;;  %v3892_v52 = vld [vmem:[#allocation13 + $0xd8] sm:$0xf0] }
 0x384   :  { %v3699_v21 = vor.u32 %v4151_v8, %v3698_v46 }
 0x385   :  { %2364 = vmatpush.bf16.msrb.mxu2 %v3715_v32 }
 0x387   :  { %v4265_v60 = vpop.eup %4264  ;;  %2336 = vmatpush.bf16.msrb.mxu0 %v3739_v17  ;;  %v4147_v17 = vld [vmem:[#allocation13 + $0x34] sm:$0xf0] }
 0x388   :  { %v1859_v14 = vmul.f32 %v4265_v60, %v1854_v59  ;;  %v3735_v59 = vor.u32 %v4157_v13, %v3732_v29  ;;  %v3706_v60 = vld [vmem:[#allocation13 + $0x60] sm:$0xf]  ;;  %v3683_v2 = vor.u32 %v4147_v17, %v3682_v10  ;;  %v4203_v10 = vld [vmem:[#allocation13 + $0xf4] sm:$0xf0] }
 0x389   :  { %2365 = vmatpush.bf16.msrb.mxu2 %v3699_v21 }
 0x38a   :  { %v1860_v16 = vpack.c.bf16 %v1859_v14, %v1859_v14  ;;  %v4154_v14 = vld [vmem:[#allocation13 + $0x6c] sm:$0xf0]  ;;  %2376 = vmatpush.bf16.msrb.mxu3 %v3735_v59 }
 0x38b   :  { %2337 = vmatpush.bf16.msrb.mxu0 %v3723_v48  ;;  %v3707_v6 = vor.u32 %v4154_v14, %v3706_v60  ;;  %v4143_v48 = vld [vmem:[#allocation13 + $0x14] sm:$0xf0] }
 0x38c   :  { %1862 = vst [vmem:[#allocation14 + $0x10] sm:$0xf] %v1860_v16  ;;  %2068 = vmatmul.bf16.vlgmr.msra.gmra.mxu0 %v1860_v16  ;;  %2081 = vmatmul.bf16.vlgmr.msra.gmra.mxu1 %v1860_v16  ;;  %v3667_v50 = vor.u32 %v4143_v48, %v3666_v53  ;;  %v4199_v53 = vld [vmem:[#allocation13 + $0xd4] sm:$0xf0] }
 0x38d   :  { %2094 = vmatmul.bf16.vlgmr.msra.gmra.mxu2 %v1860_v16  ;;  %2107 = vmatmul.bf16.vlgmr.msra.gmra.mxu3 %v1860_v16  ;;  %v4152_v16 = vld [vmem:[#allocation13 + $0x64] sm:$0xf] }
 0x38e   :  { %v3711_v11 = vor.u32 %v4152_v16, %v3708_v9  ;;  %2377 = vmatpush.bf16.msrb.mxu3 %v3719_v1  ;;  %2366 = vmatpush.bf16.msrb.mxu2 %v3683_v2  ;;  %v4201_v2 = vld [vmem:[#allocation13 + $0xec] sm:$0xf] }
 0x38f   :  { %2338 = vmatpush.bf16.msrb.mxu0 %v3707_v6  ;;  %v3911_v12 = vor.u32 %v4201_v2, %v3908_v38  ;;  %v3820_v2 = vld [vmem:[#allocation13 + $0x50] sm:$0xf0]  ;;  %v3826_v38 = vld [vmem:[#allocation13 + $0x48] sm:$0xf] }
 0x390   :  { %2351 = vmatpush.bf16.msrb.mxu1 %v3711_v11 }
 0x392   :  { %2378 = vmatpush.bf16.msrb.mxu3 %v3703_v31  ;;  %2367 = vmatpush.bf16.msrb.mxu2 %v3667_v50  ;;  %v4197_v50 = vld [vmem:[#allocation13 + $0xcc] sm:$0xf] }
 0x393   :  { %2339 = vmatpush.bf16.msrb.mxu0 %v3691_v23  ;;  %v3895_v54 = vor.u32 %v4197_v50, %v3892_v52  ;;  %v3804_v50 = vld [vmem:[#allocation13 + $0x30] sm:$0xf0]  ;;  %v3810_v52 = vld [vmem:[#allocation13 + $0x28] sm:$0xf] }
 0x394   :  { %2352 = vmatpush.bf16.msrb.mxu1 %v3695_v15 }
 0x396   :  { %2379 = vmatpush.bf16.msrb.mxu3 %v3687_v18  ;;  %v3882_v18 = vld [vmem:[#allocation13 + $0xc0] sm:$0xf] }
 0x397   :  { %2340 = vmatpush.bf16.msrb.mxu0 %v3675_v35  ;;  %v3900_v35 = vld [vmem:[#allocation13 + $0xf0] sm:$0xf0]  ;;  %v3883_v44 = vor.u32 %v4198_v41, %v3882_v18 }
 0x398   :  { %2353 = vmatpush.bf16.msrb.mxu1 %v3679_v37  ;;  %v3903_v17 = vor.u32 %v4200_v42, %v3900_v35  ;;  %v3907_v37 = vor.u32 %v4203_v10, %v3906_v36  ;;  %v4185_v42 = vld [vmem:[#allocation13 + $0x6c] sm:$0xf]  ;;  %v3818_v36 = vld [vmem:[#allocation13 + $0x40] sm:$0xf]  ;;  %v4182_v10 = vld [vmem:[#allocation13 + $0x4c] sm:$0xf0] }
 0x39a   :  { %2380 = vmatpush.bf16.msrb.mxu3 %v3671_v57  ;;  %2634 = vmatpush.bf16.msra.mxu2 %v3907_v37  ;;  %v3866_v57 = vld [vmem:[#allocation13 + $0xa0] sm:$0xf]  ;;  %v3819_v37 = vor.u32 %v4182_v10, %v3818_v36 }
 0x39b   :  { %2341 = vmatpush.bf16.msrb.mxu0 %v3659_v45  ;;  %v3884_v45 = vld [vmem:[#allocation13 + $0xd0] sm:$0xf0] }
 0x39c   :  { %2354 = vmatpush.bf16.msrb.mxu1 %v3663_v49  ;;  %v3887_v48 = vor.u32 %v4196_v43, %v3884_v45  ;;  %v3891_v49 = vor.u32 %v4199_v53, %v3890_v47  ;;  %v4181_v43 = vld [vmem:[#allocation13 + $0x4c] sm:$0xf]  ;;  %v3802_v47 = vld [vmem:[#allocation13 + $0x20] sm:$0xf]  ;;  %v4178_v53 = vld [vmem:[#allocation13 + $0x2c] sm:$0xf0] }
 0x39e   :  { %2647 = vmatpush.bf16.msra.mxu3 %v3911_v12  ;;  %2635 = vmatpush.bf16.msra.mxu2 %v3891_v49  ;;  %v4183_v12 = vld [vmem:[#allocation13 + $0x54] sm:$0xf0]  ;;  %v3803_v49 = vor.u32 %v4178_v53, %v3802_v47 }
 0x39f   :  { %v3827_v41 = vor.u32 %v4183_v12, %v3826_v38 }
 0x3a0   :  { %2621 = vmatpush.bf16.msra.mxu1 %v3903_v17  ;;  %v4180_v17 = vld [vmem:[#allocation13 + $0x44] sm:$0xf] }
 0x3a1   :  { %v3823_v18 = vor.u32 %v4180_v17, %v3820_v2 }
 0x3a2   :  { %2648 = vmatpush.bf16.msra.mxu3 %v3895_v54  ;;  %v4179_v54 = vld [vmem:[#allocation13 + $0x34] sm:$0xf0] }
 0x3a4   :  { %2622 = vmatpush.bf16.msra.mxu1 %v3887_v48  ;;  %v4176_v48 = vld [vmem:[#allocation13 + $0x24] sm:$0xf] }
 0x409   :  { %v2069_v13 = vpop.f32.mrf.mxu0  ;;  %v2082_v29 = vpop.f32.mrf.mxu1 }
 0x40a   :  { %v2112_v59 = vadd.f32 %v2069_v13, %v4641_v30  ;;  %v2113_v60 = vadd.f32 %v2082_v29, %v4644_v40  ;;  %v4194_v13 = vld [vmem:[#allocation13 + $0xac] sm:$0xf0]  ;;  %v4192_v29 = vld [vmem:[#allocation13 + $0xa4] sm:$0xf] }
 0x40c   :  { %v2116_v14 = vmul.f32 0.5, %v2112_v59  ;;  %v2120_v16 = vmul.f32 0.5, %v2113_v60  ;;  %v3867_v59 = vor.u32 %v4194_v13, %v3866_v57  ;;  %v3868_v60 = vld [vmem:[#allocation13 + $0xb0] sm:$0xf0]  ;;  %v3807_v57 = vor.u32 %v4176_v48, %v3804_v50 }
 0x40d   :  { %v3811_v13 = vor.u32 %v4179_v54, %v3810_v52 }
 0x40e   :  { %4266 = vtanh.f32 %v2116_v14  ;;  %v3874_v14 = vld [vmem:[#allocation13 + $0xa8] sm:$0xf] }
 0x40f   :  { %4268 = vtanh.f32 %v2120_v16  ;;  %v4195_v16 = vld [vmem:[#allocation13 + $0xb4] sm:$0xf0] }
 0x410   :  { %v2095_v6 = vpop.f32.mrf.mxu2  ;;  %v2108_v9 = vpop.f32.mrf.mxu3 }
 0x411   :  { %v2114_v7 = vadd.f32 %v2095_v6, %v4647_v61  ;;  %v2115_v3 = vadd.f32 %v2108_v9, %v4650_v4  ;;  %v2071_v11 = vpop.f32.mrf.mxu0  ;;  %v2084_v32 = vpop.f32.mrf.mxu1  ;;  %v3871_v6 = vor.u32 %v4192_v29, %v3868_v60  ;;  %v3875_v9 = vor.u32 %v4195_v16, %v3874_v14  ;;  %v4177_v29 = vld [vmem:[#allocation13 + $0x2c] sm:$0xf]  ;;  %v3786_v14 = vld [vmem:[#allocation13] sm:$0xf]  ;;  %v4174_v16 = vld [vmem:[#allocation13 + $0xc] sm:$0xf0] }
 0x412   :  { %v3850_v32 = vld [vmem:[#allocation13 + $0x80] sm:$0xf] }
 0x413   :  { %4270 = vtanh.f32 %v2114_v7  ;;  %v2125_v34 = vmul.f32 0.5, %v2115_v3  ;;  %v4193_v7 = vld [vmem:[#allocation13 + $0xac] sm:$0xf]  ;;  %v3876_v3 = vld [vmem:[#allocation13 + $0xb8] sm:$0xf0]  ;;  %2623 = vmatpush.bf16.msra.mxu1 %v3871_v6  ;;  %2636 = vmatpush.bf16.msra.mxu2 %v3875_v9  ;;  %v3787_v9 = vor.u32 %v4174_v16, %v3786_v14 }
 0x414   :  { %v4267_v62 = vpop.eup %4266  ;;  %v3879_v11 = vor.u32 %v4193_v7, %v3876_v3  ;;  %v4172_v6 = vld [vmem:[#allocation13 + $0x4] sm:$0xf]  ;;  %v3788_v7 = vld [vmem:[#allocation13 + $0x10] sm:$0xf0]  ;;  %v3794_v3 = vld [vmem:[#allocation13 + $0x8] sm:$0xf] }
 0x415   :  { %v4269_v1 = vpop.eup %4268  ;;  %v2118_v20 = vmul.f32 0.5, %v4267_v62  ;;  %4272 = vtanh.f32 %v2125_v34  ;;  %v4190_v34 = vld [vmem:[#allocation13 + $0x8c] sm:$0xf0]  ;;  %v4188_v62 = vld [vmem:[#allocation13 + $0x84] sm:$0xf] }
 0x416   :  { %v2122_v30 = vmul.f32 0.5, %v4269_v1  ;;  %2649 = vmatpush.bf16.msra.mxu3 %v3879_v11  ;;  %v3851_v1 = vor.u32 %v4190_v34, %v3850_v32  ;;  %v4175_v11 = vld [vmem:[#allocation13 + $0x14] sm:$0xf0]  ;;  %v3791_v32 = vor.u32 %v4172_v6, %v3788_v7 }
 0x417   :  { %v2119_v40 = vadd.f32 0.5, %v2118_v20  ;;  %v3852_v20 = vld [vmem:[#allocation13 + $0x90] sm:$0xf0]  ;;  %v3795_v34 = vor.u32 %v4175_v11, %v3794_v3 }
 0x418   :  { %v2123_v24 = vadd.f32 0.5, %v2122_v30  ;;  %v2097_v26 = vpop.f32.mrf.mxu2  ;;  %v2110_v23 = vpop.f32.mrf.mxu3  ;;  %v3858_v30 = vld [vmem:[#allocation13 + $0x88] sm:$0xf] }
 0x419   :  { %v4271_v39 = vpop.eup %4270  ;;  %v4189_v23 = vld [vmem:[#allocation13 + $0x8c] sm:$0xf] }
 0x41a   :  { %v2129_v46 = vmul.f32 %v2123_v24, %v4716_v58  ;;  %v2130_v8 = vmul.f32 %v4271_v39, %v2119_v40  ;;  %v3899_v58 = vor.u32 %v4202_v27, %v3898_v33  ;;  %v4191_v40 = vld [vmem:[#allocation13 + $0x94] sm:$0xf0]  ;;  %v3855_v24 = vor.u32 %v4188_v62, %v3852_v20  ;;  %v3860_v39 = vld [vmem:[#allocation13 + $0x98] sm:$0xf0]  ;;  %v4173_v62 = vld [vmem:[#allocation13 + $0xc] sm:$0xf] }
 0x41b   :  { %v4273_v61 = vpop.eup %4272  ;;  %v3859_v26 = vor.u32 %v4191_v40, %v3858_v30 }
 0x41c   :  { %v4724_v15 = vadd.f32 %v2130_v8, %v2129_v46  ;;  %v2127_v4 = vmul.f32 0.5, %v4273_v61  ;;  %2608 = vmatpush.bf16.msra.mxu0 %v3899_v58  ;;  %v3863_v46 = vor.u32 %v4189_v23, %v3860_v39  ;;  %2624 = vmatpush.bf16.msra.mxu1 %v3855_v24  ;;  %v3834_v8 = vld [vmem:[#allocation13 + $0x60] sm:$0xf]  ;;  %v4186_v61 = vld [vmem:[#allocation13 + $0x6c] sm:$0xf0] }
 0x41d   :  { %2637 = vmatpush.bf16.msra.mxu2 %v3859_v26  ;;  %v3844_v58 = vld [vmem:[#allocation13 + $0x78] sm:$0xf0] }
 0x41e   :  { %4274 = vtanh.f32 %v4724_v15  ;;  %v2128_v21 = vadd.f32 0.5, %v2127_v4  ;;  %v4184_v4 = vld [vmem:[#allocation13 + $0x64] sm:$0xf]  ;;  %2650 = vmatpush.bf16.msra.mxu3 %v3863_v46  ;;  %v3847_v35 = vor.u32 %v4185_v42, %v3844_v58 }
 0x420   :  { %2609 = vmatpush.bf16.msra.mxu0 %v3883_v44  ;;  %v3828_v44 = vld [vmem:[#allocation13 + $0x58] sm:$0xf0] }
 0x421   :  { %v3831_v45 = vor.u32 %v4181_v43, %v3828_v44 }
 0x422   :  { %2651 = vmatpush.bf16.msra.mxu3 %v3847_v35 }
 0x424   :  { %v4275_v22 = vpop.eup %4274  ;;  %2610 = vmatpush.bf16.msra.mxu0 %v3867_v59  ;;  %v3812_v59 = vld [vmem:[#allocation13 + $0x38] sm:$0xf0] }
 0x425   :  { %v2133_v28 = vmul.f32 %v4275_v22, %v2128_v21  ;;  %v3835_v21 = vor.u32 %v4186_v61, %v3834_v8  ;;  %v3836_v22 = vld [vmem:[#allocation13 + $0x70] sm:$0xf0]  ;;  %v3815_v60 = vor.u32 %v4177_v29, %v3812_v59 }
 0x426   :  { %v3839_v33 = vor.u32 %v4184_v4, %v3836_v22  ;;  %2652 = vmatpush.bf16.msra.mxu3 %v3831_v45 }
 0x427   :  { %v2134_v31 = vpack.c.bf16 %v2133_v28, %v2133_v28  ;;  %v3842_v28 = vld [vmem:[#allocation13 + $0x68] sm:$0xf] }
 0x428   :  { %2611 = vmatpush.bf16.msra.mxu0 %v3851_v1  ;;  %2625 = vmatpush.bf16.msra.mxu1 %v3839_v33  ;;  %v3796_v1 = vld [vmem:[#allocation13 + $0x18] sm:$0xf0] }
 0x429   :  { %2136 = vst [vmem:[#allocation14 + $0x14] sm:$0xf] %v2134_v31  ;;  %2342 = vmatmul.bf16.vlgmr.msrb.gmra.mxu0 %v2134_v31  ;;  %2355 = vmatmul.bf16.vlgmr.msrb.gmra.mxu1 %v2134_v31  ;;  %v3799_v20 = vor.u32 %v4173_v62, %v3796_v1 }
 0x42a   :  { %2368 = vmatmul.bf16.vlgmr.msrb.gmra.mxu2 %v2134_v31  ;;  %2381 = vmatmul.bf16.vlgmr.msrb.gmra.mxu3 %v2134_v31  ;;  %v4187_v31 = vld [vmem:[#allocation13 + $0x74] sm:$0xf0] }
 0x42b   :  { %v3843_v27 = vor.u32 %v4187_v31, %v3842_v28  ;;  %2653 = vmatpush.bf16.msra.mxu3 %v3815_v60 }
 0x42c   :  { %2612 = vmatpush.bf16.msra.mxu0 %v3835_v21  ;;  %2626 = vmatpush.bf16.msra.mxu1 %v3823_v18 }
 0x42d   :  { %2638 = vmatpush.bf16.msra.mxu2 %v3843_v27 }
 0x42f   :  { %2654 = vmatpush.bf16.msra.mxu3 %v3799_v20 }
 0x430   :  { %2613 = vmatpush.bf16.msra.mxu0 %v3819_v37  ;;  %2627 = vmatpush.bf16.msra.mxu1 %v3807_v57 }
 0x431   :  { %2639 = vmatpush.bf16.msra.mxu2 %v3827_v41 }
 0x434   :  { %2614 = vmatpush.bf16.msra.mxu0 %v3803_v49  ;;  %2628 = vmatpush.bf16.msra.mxu1 %v3791_v32 }
 0x435   :  { %2640 = vmatpush.bf16.msra.mxu2 %v3811_v13 }
 0x438   :  { %2615 = vmatpush.bf16.msra.mxu0 %v3787_v9 }
 0x439   :  { %2641 = vmatpush.bf16.msra.mxu2 %v3795_v34 }
 0x4a6   :  { %v2343_v30 = vpop.f32.mrf.mxu0  ;;  %v2356_v40 = vpop.f32.mrf.mxu1 }
 0x4a7   :  { %v2386_v24 = vadd.f32 %v2343_v30, %v4653_v5  ;;  %v2387_v26 = vadd.f32 %v2356_v40, %v4656_v25 }
 0x4a9   :  { %v2390_v23 = vmul.f32 0.5, %v2386_v24  ;;  %v2394_v39 = vmul.f32 0.5, %v2387_v26 }
 0x4ab   :  { %4276 = vtanh.f32 %v2390_v23 }
 0x4ac   :  { %4278 = vtanh.f32 %v2394_v39 }
 0x4ad   :  { %v2369_v46 = vpop.f32.mrf.mxu2  ;;  %v2382_v8 = vpop.f32.mrf.mxu3 }
 0x4ae   :  { %v2388_v61 = vadd.f32 %v2369_v46, %v4659_v55  ;;  %v2389_v4 = vadd.f32 %v2382_v8, %v4662_v63  ;;  %v2345_v21 = vpop.f32.mrf.mxu0  ;;  %v2358_v22 = vpop.f32.mrf.mxu1 }
 0x4b0   :  { %4280 = vtanh.f32 %v2388_v61  ;;  %v2399_v28 = vmul.f32 0.5, %v2389_v4 }
 0x4b1   :  { %v4277_v31 = vpop.eup %4276 }
 0x4b2   :  { %v4279_v33 = vpop.eup %4278  ;;  %v2392_v27 = vmul.f32 0.5, %v4277_v31  ;;  %4282 = vtanh.f32 %v2399_v28 }
 0x4b3   :  { %v2396_v5 = vmul.f32 0.5, %v4279_v33 }
 0x4b4   :  { %v2393_v25 = vadd.f32 0.5, %v2392_v27 }
 0x4b5   :  { %v2397_v42 = vadd.f32 0.5, %v2396_v5  ;;  %v2371_v58 = vpop.f32.mrf.mxu2  ;;  %v2384_v35 = vpop.f32.mrf.mxu3 }
 0x4b6   :  { %v4281_v36 = vpop.eup %4280 }
 0x4b7   :  { %v2403_v10 = vmul.f32 %v2397_v42, %v4724_v15  ;;  %v2404_v17 = vmul.f32 %v4281_v36, %v2393_v25 }
 0x4b8   :  { %v4283_v55 = vpop.eup %4282 }
 0x4b9   :  { %v2405_v37 = vadd.f32 %v2404_v17, %v2403_v10  ;;  %v2401_v63 = vmul.f32 0.5, %v4283_v55 }
 0x4bb   :  { %4284 = vtanh.f32 %v2405_v37  ;;  %v2402_v2 = vadd.f32 0.5, %v2401_v63 }
 0x4c1   :  { %v4285_v38 = vpop.eup %4284 }
 0x4c2   :  { %v2407_v12 = vmul.f32 %v4285_v38, %v2402_v2 }
 0x4c4   :  { %v2408_v18 = vpack.c.bf16 %v2407_v12, %v2407_v12 }
 0x4c6   :  { %2410 = vst [vmem:[#allocation14 + $0x18] sm:$0xf] %v2408_v18  ;;  %2616 = vmatmul.bf16.vlgmr.msra.gmra.mxu0 %v2408_v18  ;;  %2629 = vmatmul.bf16.vlgmr.msra.gmra.mxu1 %v2408_v18 }
 0x4c7   :  { %2642 = vmatmul.bf16.vlgmr.msra.gmra.mxu2 %v2408_v18  ;;  %2655 = vmatmul.bf16.vlgmr.msra.gmra.mxu3 %v2408_v18 }
 0x543   :  { %v2617_v41 = vpop.f32.mrf.mxu0  ;;  %v2630_v43 = vpop.f32.mrf.mxu1 }
 0x544   :  { %v2660_v44 = vadd.f32 %v2617_v41, %v4665_v0  ;;  %v2661_v15 = vadd.f32 %v2630_v43, %v4668_v19 }
 0x546   :  { %v2664_v45 = vmul.f32 0.5, %v2660_v44  ;;  %v2668_v47 = vmul.f32 0.5, %v2661_v15 }
 0x548   :  { %4286 = vtanh.f32 %v2664_v45 }
 0x549   :  { %4288 = vtanh.f32 %v2668_v47 }
 0x54a   :  { %v2643_v53 = vpop.f32.mrf.mxu2  ;;  %v2656_v48 = vpop.f32.mrf.mxu3 }
 0x54b   :  { %v2662_v49 = vadd.f32 %v2643_v53, %v4675_v51  ;;  %v2663_v50 = vadd.f32 %v2656_v48, %v4678_v56  ;;  %v2619_v52 = vpop.f32.mrf.mxu0  ;;  %v2632_v54 = vpop.f32.mrf.mxu1 }
 0x54d   :  { %4290 = vtanh.f32 %v2662_v49  ;;  %v2673_v57 = vmul.f32 0.5, %v2663_v50 }
 0x54e   :  { %v4287_v13 = vpop.eup %4286 }
 0x54f   :  { %v4289_v29 = vpop.eup %4288  ;;  %v2666_v59 = vmul.f32 0.5, %v4287_v13  ;;  %4292 = vtanh.f32 %v2673_v57 }
 0x550   :  { %v2670_v0 = vmul.f32 0.5, %v4289_v29 }
 0x551   :  { %v2667_v19 = vadd.f32 0.5, %v2666_v59 }
 0x552   :  { %v2671_v60 = vadd.f32 0.5, %v2670_v0  ;;  %v2645_v14 = vpop.f32.mrf.mxu2  ;;  %v2658_v16 = vpop.f32.mrf.mxu3 }
 0x553   :  { %v4291_v6 = vpop.eup %4290 }
 0x554   :  { %v2677_v9 = vmul.f32 %v2671_v60, %v2405_v37  ;;  %v2678_v7 = vmul.f32 %v4291_v6, %v2667_v19 }
 0x555   :  { %v4293_v3 = vpop.eup %4292 }
 0x556   :  { %v2679_v51 = vadd.f32 %v2678_v7, %v2677_v9  ;;  %v2675_v56 = vmul.f32 0.5, %v4293_v3 }
 0x558   :  { %4294 = vtanh.f32 %v2679_v51  ;;  %2691 = vst [vmem:[#allocation17] sm:$0xff] %v2679_v51  ;;  %v2676_v11 = vadd.f32 0.5, %v2675_v56 }
 0x55e   :  { %v4295_v32 = vpop.eup %4294 }
 0x55f   :  { %v2681_v34 = vmul.f32 %v4295_v32, %v2676_v11 }
 0x561   :  { %v2682_v62 = vpack.c.bf16 %v2681_v34, %v2681_v34  ;;  %2690 = vst [vmem:[#allocation15] sm:$0xff] %v2681_v34 }
 0x562   :  { %2715 = dma.vmem_to_hbm [thread:$0]  %s2711_s9, 128, %s2713_s12, [#allocation16]  }
 0x563   :  { %2684 = vst [vmem:[#allocation14 + $0x1c] sm:$0xf] %v2682_v62  ;;  %2726 = dma.vmem_to_hbm [thread:$0]  %s2722_s14, 128, %s2724_s17, [#allocation16]  }
 0x564   :  { %2704 = dma.vmem_to_hbm [thread:$0]  %s2697_s1, 512, %s2699_s21, [#allocation7], %s4503_s23, %s4503_s23, %s4504_s24  }
 0x565   :  { %4494 = dma.done.wait [#allocation7], 512  }
 0x566   :  { %4495 = vsyncadd [#allocation7], 4294966784 }
 0x567   :  { %4496 = dma.done.wait [#allocation16], 256  }
 0x568   :  { %4497 = vsyncadd [#allocation16], 4294967040 }
 0x569   :  { %2739 = vsyncpa [#allocation6], 1 }
 0x56a   :  { %2740 = vsyncpa [#allocation9], 1 }
 0x56b   :  { %2741 = vsyncpa [#allocation12], 1 }
 0x56c   :  { %2742 = vsyncpa [#allocation7], 1 }
 0x56d   :  { %2743 = vsyncpa [#allocation16], 1 }

</bundles_post_ra>
